<compile_context>
chip_gen: v7x
topology: tpu7x:2x2x1
jax: 0.10.0
libtpu: 0.0.40
codegen_flags: <defaults>
</compile_context>

<pallas_src>
import jax
import jax.numpy as jnp
from jax import lax
from jax.experimental import pallas as pl
from jax.experimental.pallas import tpu as pltpu

KSIZE = 3
C_OUT1 = 20
C_OUT2 = 40


def _full_width_len(h_out, w_out, w_full):
    # lanes needed for an (h_out, w_out) activation stored with row stride w_full
    return (h_out - 1) * w_full + w_out


# ----------------------------- fused Pallas kernel -----------------------------

def make_fused_forward(*, batch, c_in, h, w, c1, c2, n_actions, k=KSIZE):
    h1, w1 = h - (k - 1), w - (k - 1)
    h2, w2 = h1 - (k - 1), w1 - (k - 1)
    n1 = _full_width_len(h1, w1, w)   # conv1 output lanes (222 for 16x16)
    n2 = _full_width_len(h2, w2, w)   # conv2 output lanes (188 for 16x16)
    kk = k * k

    def kernel(x_ref, w1_ref, b_ref, w2_ref, wfc_ref, o_ref, xtap_ref, y1cat_ref):
        # x_ref    : (1, c_in, h*w)        current sample, pixels in lanes
        # w1_ref   : (c1, kk*c_in)         conv1 weight, column t*c_in+ci (t = kh*k+kw)
        # b_ref    : (c1+c2, 1)            conv biases concatenated
        # w2_ref   : (c2, kk*c1)           conv2 weight, column t*c1+i
        # wfc_ref  : (c2, n_actions, n2)   fc weight in conv2 layout, garbage lanes zeroed
        # o_ref    : (1, n_actions, 1)     softmax probabilities for this sample
        # xtap_ref : (kk*c_in, n1)         scratch: conv1 im2row operand
        # y1cat_ref: (kk*c1, n2)           scratch: conv2 im2row operand
        x = x_ref[0]                                                    # (c_in, h*w)

        # ---- conv1: build tap matrix, one MXU matmul, bias + ReLU ----
        for t in range(kk):
            off = (t // k) * w + (t % k)
            for ci in range(c_in):
                r = t * c_in + ci
                xtap_ref[r:r + 1, :] = x[ci:ci + 1, off:off + n1]
        y1 = jnp.dot(w1_ref[...], xtap_ref[...],
                     preferred_element_type=jnp.float32,
                     precision=lax.Precision.HIGHEST)                   # (c1, n1)
        y1 = jnp.maximum(y1 + b_ref[0:c1, :], 0.0)

        # ---- conv2: build (kk*c1, n2) operand in VMEM, ONE MXU matmul, bias + ReLU ----
        for t in range(kk):
            off = (t // k) * w + (t % k)
            y1cat_ref[t * c1:(t + 1) * c1, :] = y1[:, off:off + n2]
        y2 = jnp.dot(w2_ref[...], y1cat_ref[...],
                     preferred_element_type=jnp.float32,
                     precision=lax.Precision.HIGHEST)                   # (c2, n2)
        y2 = jnp.maximum(y2 + b_ref[c1:c1 + c2, :], 0.0)

        # ---- FC (no bias): channel-looped VPU accumulation (no (A,c2,n2) materialization) ----
        acc = jnp.zeros((n_actions, n2), jnp.float32)
        for c in range(c2):
            acc = acc + wfc_ref[c] * y2[c:c + 1, :]                     # (A, n2)
        logits = jnp.sum(acc, axis=1, keepdims=True)                    # (A, 1)

        # ---- softmax (exact divide kept for tight f32 parity with the reference) ----
        m = jnp.max(logits, axis=0, keepdims=True)
        e = jnp.exp(logits - m)
        s = jnp.sum(e, axis=0, keepdims=True)
        o_ref[...] = (e / s)[None]                                      # (1, A, 1)

    call = pl.pallas_call(
        kernel,
        out_shape=jax.ShapeDtypeStruct((batch, n_actions, 1), jnp.float32),
        grid=(batch,),
        in_specs=[
            pl.BlockSpec((1, c_in, h * w), lambda b: (b, 0, 0)),        # per-sample input
            pl.BlockSpec((c1, kk * c_in), lambda b: (0, 0)),            # weights: constant block
            pl.BlockSpec((c1 + c2, 1), lambda b: (0, 0)),               #   -> stay VMEM-resident
            pl.BlockSpec((c2, kk * c1), lambda b: (0, 0)),
            pl.BlockSpec((c2, n_actions, n2), lambda b: (0, 0, 0)),
        ],
        out_specs=pl.BlockSpec((1, n_actions, 1), lambda b: (b, 0, 0)),
        scratch_shapes=[
            pltpu.VMEM((kk * c_in, n1), jnp.float32),
            pltpu.VMEM((kk * c1, n2), jnp.float32),
        ],
        compiler_params=pltpu.CompilerParams(
            dimension_semantics=("parallel",)),                         # 2 TCs on v7x
    )
    dims = dict(h1=h1, w1=w1, h2=h2, w2=w2, n1=n1, n2=n2)
    return call, dims


# ------------------------------- parameter glue --------------------------------

def init_params(key, c_in, h, w, n_actions, k=KSIZE, c1=C_OUT1, c2=C_OUT2):
    """Deterministic PyTorch-shaped parameters (OIHW conv weights, (A, F) fc weight)."""
    h2 = h - 2 * (k - 1)
    w2 = w - 2 * (k - 1)
    keys = jax.random.split(key, 5)

    def uni(kk, shape, fan_in):
        bound = 1.0 / jnp.sqrt(jnp.float32(fan_in))
        return jax.random.uniform(kk, shape, jnp.float32, -bound, bound)

    return {
        "conv1_w": uni(keys[0], (c1, c_in, k, k), c_in * k * k),
        "conv1_b": uni(keys[1], (c1,), c_in * k * k),
        "conv2_w": uni(keys[2], (c2, c1, k, k), c1 * k * k),
        "conv2_b": uni(keys[3], (c2,), c1 * k * k),
        "fc_w": uni(keys[4], (n_actions, c2 * h2 * w2), c2 * h2 * w2),
    }


def prepare_kernel_inputs(params, *, c_in, h, w, k=KSIZE):
    """One-time layout transform of PyTorch weights into the kernel's lane-dense layouts."""
    c1 = params["conv1_w"].shape[0]
    c2 = params["conv2_w"].shape[0]
    n_actions = params["fc_w"].shape[0]
    h1, w1 = h - (k - 1), w - (k - 1)
    h2, w2 = h1 - (k - 1), w1 - (k - 1)
    n2 = _full_width_len(h2, w2, w)

    # conv1: (C1, Cin, kh, kw) -> (C1, k*k*Cin), column = (kh*k+kw)*Cin + ci
    w1_mat = jnp.transpose(params["conv1_w"], (0, 2, 3, 1)).reshape(c1, k * k * c_in)
    # conv2: (C2, C1, kh, kw) -> (C2, k*k*C1), column = (kh*k+kw)*C1 + i  (matches y1cat rows)
    w2_mat = jnp.transpose(params["conv2_w"], (0, 2, 3, 1)).reshape(c2, k * k * c1)
    # biases consolidated into a single small (C1+C2, 1) input
    bias = jnp.concatenate([params["conv1_b"], params["conv2_b"]]).reshape(c1 + c2, 1)
    # fc: (A, C2*H2*W2) in PyTorch (C,H,W) flatten order -> (C2, A, n2) full-width layout,
    # zero at the garbage lanes (ow >= W2) so they contribute nothing.  Channel-major so the
    # kernel's c2-loop slices a contiguous (A, n2) tile per step.
    wfc = params["fc_w"].reshape(n_actions, c2, h2, w2)
    wfc = jnp.pad(wfc, ((0, 0), (0, 0), (0, 0), (0, w - w2)))
    wfc = wfc.reshape(n_actions, c2, h2 * w)[:, :, :n2]
    wfc = jnp.transpose(wfc, (1, 0, 2))                                  # (C2, A, n2)
    return {"w1": w1_mat, "w2": w2_mat, "b": bias, "wfc": wfc}


def base_policy_2_forward(x_nchw, fused_call, kin, *, c_in, h, w):
    """x_nchw: (B, Cin, H, W) float32. Returns (B, n_actions) softmax probabilities per sample
    (each sample processed independently, matching the reference's x.view(-1) per state)."""
    b = x_nchw.shape[0]
    x_flat = x_nchw.reshape(b, c_in, h * w).astype(jnp.float32)          # free reshape
    probs = fused_call(x_flat, kin["w1"], kin["b"], kin["w2"], kin["wfc"])   # (B, A, 1)
    return probs[:, :, 0]


# ----------------------------- pure-JAX reference -------------------------------

def reference_forward(x_nchw, params):
    y = lax.conv_general_dilated(
        x_nchw, params["conv1_w"], (1, 1), "VALID",
        dimension_numbers=("NCHW", "OIHW", "NCHW"), precision=lax.Precision.HIGHEST)
    y = jnp.maximum(y + params["conv1_b"][None, :, None, None], 0.0)
    y = lax.conv_general_dilated(
        y, params["conv2_w"], (1, 1), "VALID",
        dimension_numbers=("NCHW", "OIHW", "NCHW"), precision=lax.Precision.HIGHEST)
    y = jnp.maximum(y + params["conv2_b"][None, :, None, None], 0.0)
    flat = y.reshape(y.shape[0], -1)                                     # (B, C2*H2*W2), (C,H,W) order
    logits = jnp.dot(flat, params["fc_w"].T, precision=lax.Precision.HIGHEST)
    return jax.nn.softmax(logits, axis=-1)


# ------------------------------------ main ---------------------------------------

if __name__ == "__main__":
    # Shapes consistent with the module: 1 input channel, 16x16 spatial, 18 actions
    # (full Atari action set).  Batch of 8 states shows the weight-resident grid path.
    B, C_IN, H, W, N_ACTIONS = 8, 1, 16, 16, 18

    key = jax.random.PRNGKey(0)
    kx, kp = jax.random.split(key)
    x = jax.random.normal(kx, (B, C_IN, H, W), dtype=jnp.float32)
    params = init_params(kp, C_IN, H, W, N_ACTIONS)

    fused_call, _dims = make_fused_forward(
        batch=B, c_in=C_IN, h=H, w=W, c1=C_OUT1, c2=C_OUT2, n_actions=N_ACTIONS)
    kin = prepare_kernel_inputs(params, c_in=C_IN, h=H, w=W)

    out = jax.block_until_ready(
        base_policy_2_forward(x, fused_call, kin, c_in=C_IN, h=H, w=W))
    ref = jax.block_until_ready(reference_forward(x, params))

    assert out.shape == (B, N_ACTIONS)
    assert jnp.allclose(jnp.sum(out, axis=-1), 1.0, atol=1e-5)
    assert jnp.allclose(out, ref, atol=1e-4, rtol=1e-4), (out, ref)
    print("KERNEL_OK")
</pallas_src>

<mosaic_0001>
module attributes {stable_mosaic.version = 11 : i64} {
  func.func @kernel(%arg0: i32, %arg1: memref<1x1x256xf32, #tpu.memory_space<vmem>>, %arg2: memref<20x9xf32, #tpu.memory_space<vmem>>, %arg3: memref<60x1xf32, #tpu.memory_space<vmem>>, %arg4: memref<40x180xf32, #tpu.memory_space<vmem>>, %arg5: memref<40x18x188xf32, #tpu.memory_space<vmem>>, %arg6: memref<1x18x1xf32, #tpu.memory_space<vmem>>, %arg7: memref<9x222xf32, #tpu.memory_space<vmem>>, %arg8: memref<180x188xf32, #tpu.memory_space<vmem>>) attributes {dimension_semantics = [#tpu.dimension_semantics<parallel>], iteration_bounds = array<i64: 8>, scalar_prefetch = 0 : i64, scratch_operands = 2 : i64, tpu.core_type = #tpu.core_type<tc>, window_params = [{transform_indices = @transform_0, window_bounds = array<i64: 1, 1, 256>}, {pipeline_mode = #tpu.pipeline_mode<synchronous>, transform_indices = @transform_1, window_bounds = array<i64: 20, 9>}, {pipeline_mode = #tpu.pipeline_mode<synchronous>, transform_indices = @transform_2, window_bounds = array<i64: 60, 1>}, {pipeline_mode = #tpu.pipeline_mode<synchronous>, transform_indices = @transform_3, window_bounds = array<i64: 40, 180>}, {pipeline_mode = #tpu.pipeline_mode<synchronous>, transform_indices = @transform_4, window_bounds = array<i64: 40, 18, 188>}, {transform_indices = @transform_5, window_bounds = array<i64: 1, 18, 1>}]} {
    %c0 = arith.constant 0 : index
    %c0_0 = arith.constant 0 : index
    %c0_1 = arith.constant 0 : index
    %0 = vector.load %arg1[%c0, %c0_0, %c0_1] : memref<1x1x256xf32, #tpu.memory_space<vmem>>, vector<1x1x256xf32>
    %1 = vector.shape_cast %0 : vector<1x1x256xf32> to vector<1x256xf32>
    %2 = vector.extract_strided_slice %1 {offsets = [0, 0], sizes = [1, 222], strides = [1, 1]} : vector<1x256xf32> to vector<1x222xf32>
    %c0_2 = arith.constant 0 : index
    %c0_3 = arith.constant 0 : index
    %3 = vector.load %arg7[%c0_2, %c0_3] : memref<9x222xf32, #tpu.memory_space<vmem>>, vector<1x222xf32>
    tpu.vector_store %arg7[%c0_2, %c0_3], %2 {strides = array<i32>} : memref<9x222xf32, #tpu.memory_space<vmem>>, vector<1x222xf32>,
    %4 = vector.extract_strided_slice %1 {offsets = [0, 1], sizes = [1, 222], strides = [1, 1]} : vector<1x256xf32> to vector<1x222xf32>
    %c1 = arith.constant 1 : index
    %c0_4 = arith.constant 0 : index
    %5 = vector.load %arg7[%c1, %c0_4] : memref<9x222xf32, #tpu.memory_space<vmem>>, vector<1x222xf32>
    tpu.vector_store %arg7[%c1, %c0_4], %4 {strides = array<i32>} : memref<9x222xf32, #tpu.memory_space<vmem>>, vector<1x222xf32>,
    %6 = vector.extract_strided_slice %1 {offsets = [0, 2], sizes = [1, 222], strides = [1, 1]} : vector<1x256xf32> to vector<1x222xf32>
    %c2 = arith.constant 2 : index
    %c0_5 = arith.constant 0 : index
    %7 = vector.load %arg7[%c2, %c0_5] : memref<9x222xf32, #tpu.memory_space<vmem>>, vector<1x222xf32>
    tpu.vector_store %arg7[%c2, %c0_5], %6 {strides = array<i32>} : memref<9x222xf32, #tpu.memory_space<vmem>>, vector<1x222xf32>,
    %8 = vector.extract_strided_slice %1 {offsets = [0, 16], sizes = [1, 222], strides = [1, 1]} : vector<1x256xf32> to vector<1x222xf32>
    %c3 = arith.constant 3 : index
    %c0_6 = arith.constant 0 : index
    %9 = vector.load %arg7[%c3, %c0_6] : memref<9x222xf32, #tpu.memory_space<vmem>>, vector<1x222xf32>
    tpu.vector_store %arg7[%c3, %c0_6], %8 {strides = array<i32>} : memref<9x222xf32, #tpu.memory_space<vmem>>, vector<1x222xf32>,
    %10 = vector.extract_strided_slice %1 {offsets = [0, 17], sizes = [1, 222], strides = [1, 1]} : vector<1x256xf32> to vector<1x222xf32>
    %c4 = arith.constant 4 : index
    %c0_7 = arith.constant 0 : index
    %11 = vector.load %arg7[%c4, %c0_7] : memref<9x222xf32, #tpu.memory_space<vmem>>, vector<1x222xf32>
    tpu.vector_store %arg7[%c4, %c0_7], %10 {strides = array<i32>} : memref<9x222xf32, #tpu.memory_space<vmem>>, vector<1x222xf32>,
    %12 = vector.extract_strided_slice %1 {offsets = [0, 18], sizes = [1, 222], strides = [1, 1]} : vector<1x256xf32> to vector<1x222xf32>
    %c5 = arith.constant 5 : index
    %c0_8 = arith.constant 0 : index
    %13 = vector.load %arg7[%c5, %c0_8] : memref<9x222xf32, #tpu.memory_space<vmem>>, vector<1x222xf32>
    tpu.vector_store %arg7[%c5, %c0_8], %12 {strides = array<i32>} : memref<9x222xf32, #tpu.memory_space<vmem>>, vector<1x222xf32>,
    %14 = vector.extract_strided_slice %1 {offsets = [0, 32], sizes = [1, 222], strides = [1, 1]} : vector<1x256xf32> to vector<1x222xf32>
    %c6 = arith.constant 6 : index
    %c0_9 = arith.constant 0 : index
    %15 = vector.load %arg7[%c6, %c0_9] : memref<9x222xf32, #tpu.memory_space<vmem>>, vector<1x222xf32>
    tpu.vector_store %arg7[%c6, %c0_9], %14 {strides = array<i32>} : memref<9x222xf32, #tpu.memory_space<vmem>>, vector<1x222xf32>,
    %16 = vector.extract_strided_slice %1 {offsets = [0, 33], sizes = [1, 222], strides = [1, 1]} : vector<1x256xf32> to vector<1x222xf32>
    %c7 = arith.constant 7 : index
    %c0_10 = arith.constant 0 : index
    %17 = vector.load %arg7[%c7, %c0_10] : memref<9x222xf32, #tpu.memory_space<vmem>>, vector<1x222xf32>
    tpu.vector_store %arg7[%c7, %c0_10], %16 {strides = array<i32>} : memref<9x222xf32, #tpu.memory_space<vmem>>, vector<1x222xf32>,
    %18 = vector.extract_strided_slice %1 {offsets = [0, 34], sizes = [1, 222], strides = [1, 1]} : vector<1x256xf32> to vector<1x222xf32>
    %c8 = arith.constant 8 : index
    %c0_11 = arith.constant 0 : index
    %19 = vector.load %arg7[%c8, %c0_11] : memref<9x222xf32, #tpu.memory_space<vmem>>, vector<1x222xf32>
    tpu.vector_store %arg7[%c8, %c0_11], %18 {strides = array<i32>} : memref<9x222xf32, #tpu.memory_space<vmem>>, vector<1x222xf32>,
    %c0_12 = arith.constant 0 : index
    %c0_13 = arith.constant 0 : index
    %20 = vector.load %arg2[%c0_12, %c0_13] : memref<20x9xf32, #tpu.memory_space<vmem>>, vector<20x9xf32>
    %c0_14 = arith.constant 0 : index
    %c0_15 = arith.constant 0 : index
    %21 = vector.load %arg7[%c0_14, %c0_15] : memref<9x222xf32, #tpu.memory_space<vmem>>, vector<9x222xf32>
    %cst = arith.constant dense<0.000000e+00> : vector<20x222xf32>
    %22 = tpu.matmul %20, %21, %cst {dimension_numbers = #tpu.dot_dimension_numbers<[1], [0], [0], [1], [0, 0, 1, 1], [], []>, precision = #tpu.contract_precision<fp32>} : vector<20x9xf32>, vector<9x222xf32>, vector<20x222xf32> -> vector<20x222xf32>
    %c0_16 = arith.constant 0 : index
    %c0_17 = arith.constant 0 : index
    %23 = vector.load %arg3[%c0_16, %c0_17] : memref<60x1xf32, #tpu.memory_space<vmem>>, vector<20x1xf32>
    %24 = vector.broadcast %23 : vector<20x1xf32> to vector<20x222xf32>
    %25 = arith.addf %22, %24 : vector<20x222xf32>
    %cst_18 = arith.constant 0.000000e+00 : f32
    %26 = vector.broadcast %cst_18 : f32 to vector<20x222xf32>
    %27 = arith.maximumf %25, %26 : vector<20x222xf32>
    %28 = vector.extract_strided_slice %27 {offsets = [0, 0], sizes = [20, 188], strides = [1, 1]} : vector<20x222xf32> to vector<20x188xf32>
    %c0_19 = arith.constant 0 : index
    %c0_20 = arith.constant 0 : index
    %29 = vector.load %arg8[%c0_19, %c0_20] : memref<180x188xf32, #tpu.memory_space<vmem>>, vector<20x188xf32>
    tpu.vector_store %arg8[%c0_19, %c0_20], %28 {strides = array<i32>} : memref<180x188xf32, #tpu.memory_space<vmem>>, vector<20x188xf32>,
    %30 = vector.extract_strided_slice %27 {offsets = [0, 1], sizes = [20, 188], strides = [1, 1]} : vector<20x222xf32> to vector<20x188xf32>
    %c20 = arith.constant 20 : index
    %c0_21 = arith.constant 0 : index
    %31 = vector.load %arg8[%c20, %c0_21] : memref<180x188xf32, #tpu.memory_space<vmem>>, vector<20x188xf32>
    tpu.vector_store %arg8[%c20, %c0_21], %30 {strides = array<i32>} : memref<180x188xf32, #tpu.memory_space<vmem>>, vector<20x188xf32>,
    %32 = vector.extract_strided_slice %27 {offsets = [0, 2], sizes = [20, 188], strides = [1, 1]} : vector<20x222xf32> to vector<20x188xf32>
    %c40 = arith.constant 40 : index
    %c0_22 = arith.constant 0 : index
    %33 = vector.load %arg8[%c40, %c0_22] : memref<180x188xf32, #tpu.memory_space<vmem>>, vector<20x188xf32>
    tpu.vector_store %arg8[%c40, %c0_22], %32 {strides = array<i32>} : memref<180x188xf32, #tpu.memory_space<vmem>>, vector<20x188xf32>,
    %34 = vector.extract_strided_slice %27 {offsets = [0, 16], sizes = [20, 188], strides = [1, 1]} : vector<20x222xf32> to vector<20x188xf32>
    %c60 = arith.constant 60 : index
    %c0_23 = arith.constant 0 : index
    %35 = vector.load %arg8[%c60, %c0_23] : memref<180x188xf32, #tpu.memory_space<vmem>>, vector<20x188xf32>
    tpu.vector_store %arg8[%c60, %c0_23], %34 {strides = array<i32>} : memref<180x188xf32, #tpu.memory_space<vmem>>, vector<20x188xf32>,
    %36 = vector.extract_strided_slice %27 {offsets = [0, 17], sizes = [20, 188], strides = [1, 1]} : vector<20x222xf32> to vector<20x188xf32>
    %c80 = arith.constant 80 : index
    %c0_24 = arith.constant 0 : index
    %37 = vector.load %arg8[%c80, %c0_24] : memref<180x188xf32, #tpu.memory_space<vmem>>, vector<20x188xf32>
    tpu.vector_store %arg8[%c80, %c0_24], %36 {strides = array<i32>} : memref<180x188xf32, #tpu.memory_space<vmem>>, vector<20x188xf32>,
    %38 = vector.extract_strided_slice %27 {offsets = [0, 18], sizes = [20, 188], strides = [1, 1]} : vector<20x222xf32> to vector<20x188xf32>
    %c100 = arith.constant 100 : index
    %c0_25 = arith.constant 0 : index
    %39 = vector.load %arg8[%c100, %c0_25] : memref<180x188xf32, #tpu.memory_space<vmem>>, vector<20x188xf32>
    tpu.vector_store %arg8[%c100, %c0_25], %38 {strides = array<i32>} : memref<180x188xf32, #tpu.memory_space<vmem>>, vector<20x188xf32>,
    %40 = vector.extract_strided_slice %27 {offsets = [0, 32], sizes = [20, 188], strides = [1, 1]} : vector<20x222xf32> to vector<20x188xf32>
    %c120 = arith.constant 120 : index
    %c0_26 = arith.constant 0 : index
    %41 = vector.load %arg8[%c120, %c0_26] : memref<180x188xf32, #tpu.memory_space<vmem>>, vector<20x188xf32>
    tpu.vector_store %arg8[%c120, %c0_26], %40 {strides = array<i32>} : memref<180x188xf32, #tpu.memory_space<vmem>>, vector<20x188xf32>,
    %42 = vector.extract_strided_slice %27 {offsets = [0, 33], sizes = [20, 188], strides = [1, 1]} : vector<20x222xf32> to vector<20x188xf32>
    %c140 = arith.constant 140 : index
    %c0_27 = arith.constant 0 : index
    %43 = vector.load %arg8[%c140, %c0_27] : memref<180x188xf32, #tpu.memory_space<vmem>>, vector<20x188xf32>
    tpu.vector_store %arg8[%c140, %c0_27], %42 {strides = array<i32>} : memref<180x188xf32, #tpu.memory_space<vmem>>, vector<20x188xf32>,
    %44 = vector.extract_strided_slice %27 {offsets = [0, 34], sizes = [20, 188], strides = [1, 1]} : vector<20x222xf32> to vector<20x188xf32>
    %c160 = arith.constant 160 : index
    %c0_28 = arith.constant 0 : index
    %45 = vector.load %arg8[%c160, %c0_28] : memref<180x188xf32, #tpu.memory_space<vmem>>, vector<20x188xf32>
    tpu.vector_store %arg8[%c160, %c0_28], %44 {strides = array<i32>} : memref<180x188xf32, #tpu.memory_space<vmem>>, vector<20x188xf32>,
    %c0_29 = arith.constant 0 : index
    %c0_30 = arith.constant 0 : index
    %46 = vector.load %arg4[%c0_29, %c0_30] : memref<40x180xf32, #tpu.memory_space<vmem>>, vector<40x180xf32>
    %c0_31 = arith.constant 0 : index
    %c0_32 = arith.constant 0 : index
    %47 = vector.load %arg8[%c0_31, %c0_32] : memref<180x188xf32, #tpu.memory_space<vmem>>, vector<180x188xf32>
    %cst_33 = arith.constant dense<0.000000e+00> : vector<40x188xf32>
    %48 = tpu.matmul %46, %47, %cst_33 {dimension_numbers = #tpu.dot_dimension_numbers<[1], [0], [0], [1], [0, 0, 1, 1], [], []>, precision = #tpu.contract_precision<fp32>} : vector<40x180xf32>, vector<180x188xf32>, vector<40x188xf32> -> vector<40x188xf32>
    %c20_34 = arith.constant 20 : index
    %c0_35 = arith.constant 0 : index
    %49 = vector.load %arg3[%c20_34, %c0_35] : memref<60x1xf32, #tpu.memory_space<vmem>>, vector<40x1xf32>
    %50 = vector.broadcast %49 : vector<40x1xf32> to vector<40x188xf32>
    %51 = arith.addf %48, %50 : vector<40x188xf32>
    %cst_36 = arith.constant 0.000000e+00 : f32
    %52 = vector.broadcast %cst_36 : f32 to vector<40x188xf32>
    %53 = arith.maximumf %51, %52 : vector<40x188xf32>
    %cst_37 = arith.constant 0.000000e+00 : f32
    %54 = vector.broadcast %cst_37 : f32 to vector<18x188xf32>
    %c0_38 = arith.constant 0 : index
    %c0_39 = arith.constant 0 : index
    %c0_40 = arith.constant 0 : index
    %55 = vector.load %arg5[%c0_38, %c0_39, %c0_40] : memref<40x18x188xf32, #tpu.memory_space<vmem>>, vector<1x18x188xf32>
    %56 = vector.shape_cast %55 : vector<1x18x188xf32> to vector<18x188xf32>
    %57 = vector.extract_strided_slice %53 {offsets = [0, 0], sizes = [1, 188], strides = [1, 1]} : vector<40x188xf32> to vector<1x188xf32>
    %58 = vector.broadcast %57 : vector<1x188xf32> to vector<18x188xf32>
    %59 = arith.mulf %56, %58 : vector<18x188xf32>
    %60 = arith.addf %54, %59 : vector<18x188xf32>
    %c1_41 = arith.constant 1 : index
    %c0_42 = arith.constant 0 : index
    %c0_43 = arith.constant 0 : index
    %61 = vector.load %arg5[%c1_41, %c0_42, %c0_43] : memref<40x18x188xf32, #tpu.memory_space<vmem>>, vector<1x18x188xf32>
    %62 = vector.shape_cast %61 : vector<1x18x188xf32> to vector<18x188xf32>
    %63 = vector.extract_strided_slice %53 {offsets = [1, 0], sizes = [1, 188], strides = [1, 1]} : vector<40x188xf32> to vector<1x188xf32>
    %64 = vector.broadcast %63 : vector<1x188xf32> to vector<18x188xf32>
    %65 = arith.mulf %62, %64 : vector<18x188xf32>
    %66 = arith.addf %60, %65 : vector<18x188xf32>
    %c2_44 = arith.constant 2 : index
    %c0_45 = arith.constant 0 : index
    %c0_46 = arith.constant 0 : index
    %67 = vector.load %arg5[%c2_44, %c0_45, %c0_46] : memref<40x18x188xf32, #tpu.memory_space<vmem>>, vector<1x18x188xf32>
    %68 = vector.shape_cast %67 : vector<1x18x188xf32> to vector<18x188xf32>
    %69 = vector.extract_strided_slice %53 {offsets = [2, 0], sizes = [1, 188], strides = [1, 1]} : vector<40x188xf32> to vector<1x188xf32>
    %70 = vector.broadcast %69 : vector<1x188xf32> to vector<18x188xf32>
    %71 = arith.mulf %68, %70 : vector<18x188xf32>
    %72 = arith.addf %66, %71 : vector<18x188xf32>
    %c3_47 = arith.constant 3 : index
    %c0_48 = arith.constant 0 : index
    %c0_49 = arith.constant 0 : index
    %73 = vector.load %arg5[%c3_47, %c0_48, %c0_49] : memref<40x18x188xf32, #tpu.memory_space<vmem>>, vector<1x18x188xf32>
    %74 = vector.shape_cast %73 : vector<1x18x188xf32> to vector<18x188xf32>
    %75 = vector.extract_strided_slice %53 {offsets = [3, 0], sizes = [1, 188], strides = [1, 1]} : vector<40x188xf32> to vector<1x188xf32>
    %76 = vector.broadcast %75 : vector<1x188xf32> to vector<18x188xf32>
    %77 = arith.mulf %74, %76 : vector<18x188xf32>
    %78 = arith.addf %72, %77 : vector<18x188xf32>
    %c4_50 = arith.constant 4 : index
    %c0_51 = arith.constant 0 : index
    %c0_52 = arith.constant 0 : index
    %79 = vector.load %arg5[%c4_50, %c0_51, %c0_52] : memref<40x18x188xf32, #tpu.memory_space<vmem>>, vector<1x18x188xf32>
    %80 = vector.shape_cast %79 : vector<1x18x188xf32> to vector<18x188xf32>
    %81 = vector.extract_strided_slice %53 {offsets = [4, 0], sizes = [1, 188], strides = [1, 1]} : vector<40x188xf32> to vector<1x188xf32>
    %82 = vector.broadcast %81 : vector<1x188xf32> to vector<18x188xf32>
    %83 = arith.mulf %80, %82 : vector<18x188xf32>
    %84 = arith.addf %78, %83 : vector<18x188xf32>
    %c5_53 = arith.constant 5 : index
    %c0_54 = arith.constant 0 : index
    %c0_55 = arith.constant 0 : index
    %85 = vector.load %arg5[%c5_53, %c0_54, %c0_55] : memref<40x18x188xf32, #tpu.memory_space<vmem>>, vector<1x18x188xf32>
    %86 = vector.shape_cast %85 : vector<1x18x188xf32> to vector<18x188xf32>
    %87 = vector.extract_strided_slice %53 {offsets = [5, 0], sizes = [1, 188], strides = [1, 1]} : vector<40x188xf32> to vector<1x188xf32>
    %88 = vector.broadcast %87 : vector<1x188xf32> to vector<18x188xf32>
    %89 = arith.mulf %86, %88 : vector<18x188xf32>
    %90 = arith.addf %84, %89 : vector<18x188xf32>
    %c6_56 = arith.constant 6 : index
    %c0_57 = arith.constant 0 : index
    %c0_58 = arith.constant 0 : index
    %91 = vector.load %arg5[%c6_56, %c0_57, %c0_58] : memref<40x18x188xf32, #tpu.memory_space<vmem>>, vector<1x18x188xf32>
    %92 = vector.shape_cast %91 : vector<1x18x188xf32> to vector<18x188xf32>
    %93 = vector.extract_strided_slice %53 {offsets = [6, 0], sizes = [1, 188], strides = [1, 1]} : vector<40x188xf32> to vector<1x188xf32>
    %94 = vector.broadcast %93 : vector<1x188xf32> to vector<18x188xf32>
    %95 = arith.mulf %92, %94 : vector<18x188xf32>
    %96 = arith.addf %90, %95 : vector<18x188xf32>
    %c7_59 = arith.constant 7 : index
    %c0_60 = arith.constant 0 : index
    %c0_61 = arith.constant 0 : index
    %97 = vector.load %arg5[%c7_59, %c0_60, %c0_61] : memref<40x18x188xf32, #tpu.memory_space<vmem>>, vector<1x18x188xf32>
    %98 = vector.shape_cast %97 : vector<1x18x188xf32> to vector<18x188xf32>
    %99 = vector.extract_strided_slice %53 {offsets = [7, 0], sizes = [1, 188], strides = [1, 1]} : vector<40x188xf32> to vector<1x188xf32>
    %100 = vector.broadcast %99 : vector<1x188xf32> to vector<18x188xf32>
    %101 = arith.mulf %98, %100 : vector<18x188xf32>
    %102 = arith.addf %96, %101 : vector<18x188xf32>
    %c8_62 = arith.constant 8 : index
    %c0_63 = arith.constant 0 : index
    %c0_64 = arith.constant 0 : index
    %103 = vector.load %arg5[%c8_62, %c0_63, %c0_64] : memref<40x18x188xf32, #tpu.memory_space<vmem>>, vector<1x18x188xf32>
    %104 = vector.shape_cast %103 : vector<1x18x188xf32> to vector<18x188xf32>
    %105 = vector.extract_strided_slice %53 {offsets = [8, 0], sizes = [1, 188], strides = [1, 1]} : vector<40x188xf32> to vector<1x188xf32>
    %106 = vector.broadcast %105 : vector<1x188xf32> to vector<18x188xf32>
    %107 = arith.mulf %104, %106 : vector<18x188xf32>
    %108 = arith.addf %102, %107 : vector<18x188xf32>
    %c9 = arith.constant 9 : index
    %c0_65 = arith.constant 0 : index
    %c0_66 = arith.constant 0 : index
    %109 = vector.load %arg5[%c9, %c0_65, %c0_66] : memref<40x18x188xf32, #tpu.memory_space<vmem>>, vector<1x18x188xf32>
    %110 = vector.shape_cast %109 : vector<1x18x188xf32> to vector<18x188xf32>
    %111 = vector.extract_strided_slice %53 {offsets = [9, 0], sizes = [1, 188], strides = [1, 1]} : vector<40x188xf32> to vector<1x188xf32>
    %112 = vector.broadcast %111 : vector<1x188xf32> to vector<18x188xf32>
    %113 = arith.mulf %110, %112 : vector<18x188xf32>
    %114 = arith.addf %108, %113 : vector<18x188xf32>
    %c10 = arith.constant 10 : index
    %c0_67 = arith.constant 0 : index
    %c0_68 = arith.constant 0 : index
    %115 = vector.load %arg5[%c10, %c0_67, %c0_68] : memref<40x18x188xf32, #tpu.memory_space<vmem>>, vector<1x18x188xf32>
    %116 = vector.shape_cast %115 : vector<1x18x188xf32> to vector<18x188xf32>
    %117 = vector.extract_strided_slice %53 {offsets = [10, 0], sizes = [1, 188], strides = [1, 1]} : vector<40x188xf32> to vector<1x188xf32>
    %118 = vector.broadcast %117 : vector<1x188xf32> to vector<18x188xf32>
    %119 = arith.mulf %116, %118 : vector<18x188xf32>
    %120 = arith.addf %114, %119 : vector<18x188xf32>
    %c11 = arith.constant 11 : index
    %c0_69 = arith.constant 0 : index
    %c0_70 = arith.constant 0 : index
    %121 = vector.load %arg5[%c11, %c0_69, %c0_70] : memref<40x18x188xf32, #tpu.memory_space<vmem>>, vector<1x18x188xf32>
    %122 = vector.shape_cast %121 : vector<1x18x188xf32> to vector<18x188xf32>
    %123 = vector.extract_strided_slice %53 {offsets = [11, 0], sizes = [1, 188], strides = [1, 1]} : vector<40x188xf32> to vector<1x188xf32>
    %124 = vector.broadcast %123 : vector<1x188xf32> to vector<18x188xf32>
    %125 = arith.mulf %122, %124 : vector<18x188xf32>
    %126 = arith.addf %120, %125 : vector<18x188xf32>
    %c12 = arith.constant 12 : index
    %c0_71 = arith.constant 0 : index
    %c0_72 = arith.constant 0 : index
    %127 = vector.load %arg5[%c12, %c0_71, %c0_72] : memref<40x18x188xf32, #tpu.memory_space<vmem>>, vector<1x18x188xf32>
    %128 = vector.shape_cast %127 : vector<1x18x188xf32> to vector<18x188xf32>
    %129 = vector.extract_strided_slice %53 {offsets = [12, 0], sizes = [1, 188], strides = [1, 1]} : vector<40x188xf32> to vector<1x188xf32>
    %130 = vector.broadcast %129 : vector<1x188xf32> to vector<18x188xf32>
    %131 = arith.mulf %128, %130 : vector<18x188xf32>
    %132 = arith.addf %126, %131 : vector<18x188xf32>
    %c13 = arith.constant 13 : index
    %c0_73 = arith.constant 0 : index
    %c0_74 = arith.constant 0 : index
    %133 = vector.load %arg5[%c13, %c0_73, %c0_74] : memref<40x18x188xf32, #tpu.memory_space<vmem>>, vector<1x18x188xf32>
    %134 = vector.shape_cast %133 : vector<1x18x188xf32> to vector<18x188xf32>
    %135 = vector.extract_strided_slice %53 {offsets = [13, 0], sizes = [1, 188], strides = [1, 1]} : vector<40x188xf32> to vector<1x188xf32>
    %136 = vector.broadcast %135 : vector<1x188xf32> to vector<18x188xf32>
    %137 = arith.mulf %134, %136 : vector<18x188xf32>
    %138 = arith.addf %132, %137 : vector<18x188xf32>
    %c14 = arith.constant 14 : index
    %c0_75 = arith.constant 0 : index
    %c0_76 = arith.constant 0 : index
    %139 = vector.load %arg5[%c14, %c0_75, %c0_76] : memref<40x18x188xf32, #tpu.memory_space<vmem>>, vector<1x18x188xf32>
    %140 = vector.shape_cast %139 : vector<1x18x188xf32> to vector<18x188xf32>
    %141 = vector.extract_strided_slice %53 {offsets = [14, 0], sizes = [1, 188], strides = [1, 1]} : vector<40x188xf32> to vector<1x188xf32>
    %142 = vector.broadcast %141 : vector<1x188xf32> to vector<18x188xf32>
    %143 = arith.mulf %140, %142 : vector<18x188xf32>
    %144 = arith.addf %138, %143 : vector<18x188xf32>
    %c15 = arith.constant 15 : index
    %c0_77 = arith.constant 0 : index
    %c0_78 = arith.constant 0 : index
    %145 = vector.load %arg5[%c15, %c0_77, %c0_78] : memref<40x18x188xf32, #tpu.memory_space<vmem>>, vector<1x18x188xf32>
    %146 = vector.shape_cast %145 : vector<1x18x188xf32> to vector<18x188xf32>
    %147 = vector.extract_strided_slice %53 {offsets = [15, 0], sizes = [1, 188], strides = [1, 1]} : vector<40x188xf32> to vector<1x188xf32>
    %148 = vector.broadcast %147 : vector<1x188xf32> to vector<18x188xf32>
    %149 = arith.mulf %146, %148 : vector<18x188xf32>
    %150 = arith.addf %144, %149 : vector<18x188xf32>
    %c16 = arith.constant 16 : index
    %c0_79 = arith.constant 0 : index
    %c0_80 = arith.constant 0 : index
    %151 = vector.load %arg5[%c16, %c0_79, %c0_80] : memref<40x18x188xf32, #tpu.memory_space<vmem>>, vector<1x18x188xf32>
    %152 = vector.shape_cast %151 : vector<1x18x188xf32> to vector<18x188xf32>
    %153 = vector.extract_strided_slice %53 {offsets = [16, 0], sizes = [1, 188], strides = [1, 1]} : vector<40x188xf32> to vector<1x188xf32>
    %154 = vector.broadcast %153 : vector<1x188xf32> to vector<18x188xf32>
    %155 = arith.mulf %152, %154 : vector<18x188xf32>
    %156 = arith.addf %150, %155 : vector<18x188xf32>
    %c17 = arith.constant 17 : index
    %c0_81 = arith.constant 0 : index
    %c0_82 = arith.constant 0 : index
    %157 = vector.load %arg5[%c17, %c0_81, %c0_82] : memref<40x18x188xf32, #tpu.memory_space<vmem>>, vector<1x18x188xf32>
    %158 = vector.shape_cast %157 : vector<1x18x188xf32> to vector<18x188xf32>
    %159 = vector.extract_strided_slice %53 {offsets = [17, 0], sizes = [1, 188], strides = [1, 1]} : vector<40x188xf32> to vector<1x188xf32>
    %160 = vector.broadcast %159 : vector<1x188xf32> to vector<18x188xf32>
    %161 = arith.mulf %158, %160 : vector<18x188xf32>
    %162 = arith.addf %156, %161 : vector<18x188xf32>
    %c18 = arith.constant 18 : index
    %c0_83 = arith.constant 0 : index
    %c0_84 = arith.constant 0 : index
    %163 = vector.load %arg5[%c18, %c0_83, %c0_84] : memref<40x18x188xf32, #tpu.memory_space<vmem>>, vector<1x18x188xf32>
    %164 = vector.shape_cast %163 : vector<1x18x188xf32> to vector<18x188xf32>
    %165 = vector.extract_strided_slice %53 {offsets = [18, 0], sizes = [1, 188], strides = [1, 1]} : vector<40x188xf32> to vector<1x188xf32>
    %166 = vector.broadcast %165 : vector<1x188xf32> to vector<18x188xf32>
    %167 = arith.mulf %164, %166 : vector<18x188xf32>
    %168 = arith.addf %162, %167 : vector<18x188xf32>
    %c19 = arith.constant 19 : index
    %c0_85 = arith.constant 0 : index
    %c0_86 = arith.constant 0 : index
    %169 = vector.load %arg5[%c19, %c0_85, %c0_86] : memref<40x18x188xf32, #tpu.memory_space<vmem>>, vector<1x18x188xf32>
    %170 = vector.shape_cast %169 : vector<1x18x188xf32> to vector<18x188xf32>
    %171 = vector.extract_strided_slice %53 {offsets = [19, 0], sizes = [1, 188], strides = [1, 1]} : vector<40x188xf32> to vector<1x188xf32>
    %172 = vector.broadcast %171 : vector<1x188xf32> to vector<18x188xf32>
    %173 = arith.mulf %170, %172 : vector<18x188xf32>
    %174 = arith.addf %168, %173 : vector<18x188xf32>
    %c20_87 = arith.constant 20 : index
    %c0_88 = arith.constant 0 : index
    %c0_89 = arith.constant 0 : index
    %175 = vector.load %arg5[%c20_87, %c0_88, %c0_89] : memref<40x18x188xf32, #tpu.memory_space<vmem>>, vector<1x18x188xf32>
    %176 = vector.shape_cast %175 : vector<1x18x188xf32> to vector<18x188xf32>
    %177 = vector.extract_strided_slice %53 {offsets = [20, 0], sizes = [1, 188], strides = [1, 1]} : vector<40x188xf32> to vector<1x188xf32>
    %178 = vector.broadcast %177 : vector<1x188xf32> to vector<18x188xf32>
    %179 = arith.mulf %176, %178 : vector<18x188xf32>
    %180 = arith.addf %174, %179 : vector<18x188xf32>
    %c21 = arith.constant 21 : index
    %c0_90 = arith.constant 0 : index
    %c0_91 = arith.constant 0 : index
    %181 = vector.load %arg5[%c21, %c0_90, %c0_91] : memref<40x18x188xf32, #tpu.memory_space<vmem>>, vector<1x18x188xf32>
    %182 = vector.shape_cast %181 : vector<1x18x188xf32> to vector<18x188xf32>
    %183 = vector.extract_strided_slice %53 {offsets = [21, 0], sizes = [1, 188], strides = [1, 1]} : vector<40x188xf32> to vector<1x188xf32>
    %184 = vector.broadcast %183 : vector<1x188xf32> to vector<18x188xf32>
    %185 = arith.mulf %182, %184 : vector<18x188xf32>
    %186 = arith.addf %180, %185 : vector<18x188xf32>
    %c22 = arith.constant 22 : index
    %c0_92 = arith.constant 0 : index
    %c0_93 = arith.constant 0 : index
    %187 = vector.load %arg5[%c22, %c0_92, %c0_93] : memref<40x18x188xf32, #tpu.memory_space<vmem>>, vector<1x18x188xf32>
    %188 = vector.shape_cast %187 : vector<1x18x188xf32> to vector<18x188xf32>
    %189 = vector.extract_strided_slice %53 {offsets = [22, 0], sizes = [1, 188], strides = [1, 1]} : vector<40x188xf32> to vector<1x188xf32>
    %190 = vector.broadcast %189 : vector<1x188xf32> to vector<18x188xf32>
    %191 = arith.mulf %188, %190 : vector<18x188xf32>
    %192 = arith.addf %186, %191 : vector<18x188xf32>
    %c23 = arith.constant 23 : index
    %c0_94 = arith.constant 0 : index
    %c0_95 = arith.constant 0 : index
    %193 = vector.load %arg5[%c23, %c0_94, %c0_95] : memref<40x18x188xf32, #tpu.memory_space<vmem>>, vector<1x18x188xf32>
    %194 = vector.shape_cast %193 : vector<1x18x188xf32> to vector<18x188xf32>
    %195 = vector.extract_strided_slice %53 {offsets = [23, 0], sizes = [1, 188], strides = [1, 1]} : vector<40x188xf32> to vector<1x188xf32>
    %196 = vector.broadcast %195 : vector<1x188xf32> to vector<18x188xf32>
    %197 = arith.mulf %194, %196 : vector<18x188xf32>
    %198 = arith.addf %192, %197 : vector<18x188xf32>
    %c24 = arith.constant 24 : index
    %c0_96 = arith.constant 0 : index
    %c0_97 = arith.constant 0 : index
    %199 = vector.load %arg5[%c24, %c0_96, %c0_97] : memref<40x18x188xf32, #tpu.memory_space<vmem>>, vector<1x18x188xf32>
    %200 = vector.shape_cast %199 : vector<1x18x188xf32> to vector<18x188xf32>
    %201 = vector.extract_strided_slice %53 {offsets = [24, 0], sizes = [1, 188], strides = [1, 1]} : vector<40x188xf32> to vector<1x188xf32>
    %202 = vector.broadcast %201 : vector<1x188xf32> to vector<18x188xf32>
    %203 = arith.mulf %200, %202 : vector<18x188xf32>
    %204 = arith.addf %198, %203 : vector<18x188xf32>
    %c25 = arith.constant 25 : index
    %c0_98 = arith.constant 0 : index
    %c0_99 = arith.constant 0 : index
    %205 = vector.load %arg5[%c25, %c0_98, %c0_99] : memref<40x18x188xf32, #tpu.memory_space<vmem>>, vector<1x18x188xf32>
    %206 = vector.shape_cast %205 : vector<1x18x188xf32> to vector<18x188xf32>
    %207 = vector.extract_strided_slice %53 {offsets = [25, 0], sizes = [1, 188], strides = [1, 1]} : vector<40x188xf32> to vector<1x188xf32>
    %208 = vector.broadcast %207 : vector<1x188xf32> to vector<18x188xf32>
    %209 = arith.mulf %206, %208 : vector<18x188xf32>
    %210 = arith.addf %204, %209 : vector<18x188xf32>
    %c26 = arith.constant 26 : index
    %c0_100 = arith.constant 0 : index
    %c0_101 = arith.constant 0 : index
    %211 = vector.load %arg5[%c26, %c0_100, %c0_101] : memref<40x18x188xf32, #tpu.memory_space<vmem>>, vector<1x18x188xf32>
    %212 = vector.shape_cast %211 : vector<1x18x188xf32> to vector<18x188xf32>
    %213 = vector.extract_strided_slice %53 {offsets = [26, 0], sizes = [1, 188], strides = [1, 1]} : vector<40x188xf32> to vector<1x188xf32>
    %214 = vector.broadcast %213 : vector<1x188xf32> to vector<18x188xf32>
    %215 = arith.mulf %212, %214 : vector<18x188xf32>
    %216 = arith.addf %210, %215 : vector<18x188xf32>
    %c27 = arith.constant 27 : index
    %c0_102 = arith.constant 0 : index
    %c0_103 = arith.constant 0 : index
    %217 = vector.load %arg5[%c27, %c0_102, %c0_103] : memref<40x18x188xf32, #tpu.memory_space<vmem>>, vector<1x18x188xf32>
    %218 = vector.shape_cast %217 : vector<1x18x188xf32> to vector<18x188xf32>
    %219 = vector.extract_strided_slice %53 {offsets = [27, 0], sizes = [1, 188], strides = [1, 1]} : vector<40x188xf32> to vector<1x188xf32>
    %220 = vector.broadcast %219 : vector<1x188xf32> to vector<18x188xf32>
    %221 = arith.mulf %218, %220 : vector<18x188xf32>
    %222 = arith.addf %216, %221 : vector<18x188xf32>
    %c28 = arith.constant 28 : index
    %c0_104 = arith.constant 0 : index
    %c0_105 = arith.constant 0 : index
    %223 = vector.load %arg5[%c28, %c0_104, %c0_105] : memref<40x18x188xf32, #tpu.memory_space<vmem>>, vector<1x18x188xf32>
    %224 = vector.shape_cast %223 : vector<1x18x188xf32> to vector<18x188xf32>
    %225 = vector.extract_strided_slice %53 {offsets = [28, 0], sizes = [1, 188], strides = [1, 1]} : vector<40x188xf32> to vector<1x188xf32>
    %226 = vector.broadcast %225 : vector<1x188xf32> to vector<18x188xf32>
    %227 = arith.mulf %224, %226 : vector<18x188xf32>
    %228 = arith.addf %222, %227 : vector<18x188xf32>
    %c29 = arith.constant 29 : index
    %c0_106 = arith.constant 0 : index
    %c0_107 = arith.constant 0 : index
    %229 = vector.load %arg5[%c29, %c0_106, %c0_107] : memref<40x18x188xf32, #tpu.memory_space<vmem>>, vector<1x18x188xf32>
    %230 = vector.shape_cast %229 : vector<1x18x188xf32> to vector<18x188xf32>
    %231 = vector.extract_strided_slice %53 {offsets = [29, 0], sizes = [1, 188], strides = [1, 1]} : vector<40x188xf32> to vector<1x188xf32>
    %232 = vector.broadcast %231 : vector<1x188xf32> to vector<18x188xf32>
    %233 = arith.mulf %230, %232 : vector<18x188xf32>
    %234 = arith.addf %228, %233 : vector<18x188xf32>
    %c30 = arith.constant 30 : index
    %c0_108 = arith.constant 0 : index
    %c0_109 = arith.constant 0 : index
    %235 = vector.load %arg5[%c30, %c0_108, %c0_109] : memref<40x18x188xf32, #tpu.memory_space<vmem>>, vector<1x18x188xf32>
    %236 = vector.shape_cast %235 : vector<1x18x188xf32> to vector<18x188xf32>
    %237 = vector.extract_strided_slice %53 {offsets = [30, 0], sizes = [1, 188], strides = [1, 1]} : vector<40x188xf32> to vector<1x188xf32>
    %238 = vector.broadcast %237 : vector<1x188xf32> to vector<18x188xf32>
    %239 = arith.mulf %236, %238 : vector<18x188xf32>
    %240 = arith.addf %234, %239 : vector<18x188xf32>
    %c31 = arith.constant 31 : index
    %c0_110 = arith.constant 0 : index
    %c0_111 = arith.constant 0 : index
    %241 = vector.load %arg5[%c31, %c0_110, %c0_111] : memref<40x18x188xf32, #tpu.memory_space<vmem>>, vector<1x18x188xf32>
    %242 = vector.shape_cast %241 : vector<1x18x188xf32> to vector<18x188xf32>
    %243 = vector.extract_strided_slice %53 {offsets = [31, 0], sizes = [1, 188], strides = [1, 1]} : vector<40x188xf32> to vector<1x188xf32>
    %244 = vector.broadcast %243 : vector<1x188xf32> to vector<18x188xf32>
    %245 = arith.mulf %242, %244 : vector<18x188xf32>
    %246 = arith.addf %240, %245 : vector<18x188xf32>
    %c32 = arith.constant 32 : index
    %c0_112 = arith.constant 0 : index
    %c0_113 = arith.constant 0 : index
    %247 = vector.load %arg5[%c32, %c0_112, %c0_113] : memref<40x18x188xf32, #tpu.memory_space<vmem>>, vector<1x18x188xf32>
    %248 = vector.shape_cast %247 : vector<1x18x188xf32> to vector<18x188xf32>
    %249 = vector.extract_strided_slice %53 {offsets = [32, 0], sizes = [1, 188], strides = [1, 1]} : vector<40x188xf32> to vector<1x188xf32>
    %250 = vector.broadcast %249 : vector<1x188xf32> to vector<18x188xf32>
    %251 = arith.mulf %248, %250 : vector<18x188xf32>
    %252 = arith.addf %246, %251 : vector<18x188xf32>
    %c33 = arith.constant 33 : index
    %c0_114 = arith.constant 0 : index
    %c0_115 = arith.constant 0 : index
    %253 = vector.load %arg5[%c33, %c0_114, %c0_115] : memref<40x18x188xf32, #tpu.memory_space<vmem>>, vector<1x18x188xf32>
    %254 = vector.shape_cast %253 : vector<1x18x188xf32> to vector<18x188xf32>
    %255 = vector.extract_strided_slice %53 {offsets = [33, 0], sizes = [1, 188], strides = [1, 1]} : vector<40x188xf32> to vector<1x188xf32>
    %256 = vector.broadcast %255 : vector<1x188xf32> to vector<18x188xf32>
    %257 = arith.mulf %254, %256 : vector<18x188xf32>
    %258 = arith.addf %252, %257 : vector<18x188xf32>
    %c34 = arith.constant 34 : index
    %c0_116 = arith.constant 0 : index
    %c0_117 = arith.constant 0 : index
    %259 = vector.load %arg5[%c34, %c0_116, %c0_117] : memref<40x18x188xf32, #tpu.memory_space<vmem>>, vector<1x18x188xf32>
    %260 = vector.shape_cast %259 : vector<1x18x188xf32> to vector<18x188xf32>
    %261 = vector.extract_strided_slice %53 {offsets = [34, 0], sizes = [1, 188], strides = [1, 1]} : vector<40x188xf32> to vector<1x188xf32>
    %262 = vector.broadcast %261 : vector<1x188xf32> to vector<18x188xf32>
    %263 = arith.mulf %260, %262 : vector<18x188xf32>
    %264 = arith.addf %258, %263 : vector<18x188xf32>
    %c35 = arith.constant 35 : index
    %c0_118 = arith.constant 0 : index
    %c0_119 = arith.constant 0 : index
    %265 = vector.load %arg5[%c35, %c0_118, %c0_119] : memref<40x18x188xf32, #tpu.memory_space<vmem>>, vector<1x18x188xf32>
    %266 = vector.shape_cast %265 : vector<1x18x188xf32> to vector<18x188xf32>
    %267 = vector.extract_strided_slice %53 {offsets = [35, 0], sizes = [1, 188], strides = [1, 1]} : vector<40x188xf32> to vector<1x188xf32>
    %268 = vector.broadcast %267 : vector<1x188xf32> to vector<18x188xf32>
    %269 = arith.mulf %266, %268 : vector<18x188xf32>
    %270 = arith.addf %264, %269 : vector<18x188xf32>
    %c36 = arith.constant 36 : index
    %c0_120 = arith.constant 0 : index
    %c0_121 = arith.constant 0 : index
    %271 = vector.load %arg5[%c36, %c0_120, %c0_121] : memref<40x18x188xf32, #tpu.memory_space<vmem>>, vector<1x18x188xf32>
    %272 = vector.shape_cast %271 : vector<1x18x188xf32> to vector<18x188xf32>
    %273 = vector.extract_strided_slice %53 {offsets = [36, 0], sizes = [1, 188], strides = [1, 1]} : vector<40x188xf32> to vector<1x188xf32>
    %274 = vector.broadcast %273 : vector<1x188xf32> to vector<18x188xf32>
    %275 = arith.mulf %272, %274 : vector<18x188xf32>
    %276 = arith.addf %270, %275 : vector<18x188xf32>
    %c37 = arith.constant 37 : index
    %c0_122 = arith.constant 0 : index
    %c0_123 = arith.constant 0 : index
    %277 = vector.load %arg5[%c37, %c0_122, %c0_123] : memref<40x18x188xf32, #tpu.memory_space<vmem>>, vector<1x18x188xf32>
    %278 = vector.shape_cast %277 : vector<1x18x188xf32> to vector<18x188xf32>
    %279 = vector.extract_strided_slice %53 {offsets = [37, 0], sizes = [1, 188], strides = [1, 1]} : vector<40x188xf32> to vector<1x188xf32>
    %280 = vector.broadcast %279 : vector<1x188xf32> to vector<18x188xf32>
    %281 = arith.mulf %278, %280 : vector<18x188xf32>
    %282 = arith.addf %276, %281 : vector<18x188xf32>
    %c38 = arith.constant 38 : index
    %c0_124 = arith.constant 0 : index
    %c0_125 = arith.constant 0 : index
    %283 = vector.load %arg5[%c38, %c0_124, %c0_125] : memref<40x18x188xf32, #tpu.memory_space<vmem>>, vector<1x18x188xf32>
    %284 = vector.shape_cast %283 : vector<1x18x188xf32> to vector<18x188xf32>
    %285 = vector.extract_strided_slice %53 {offsets = [38, 0], sizes = [1, 188], strides = [1, 1]} : vector<40x188xf32> to vector<1x188xf32>
    %286 = vector.broadcast %285 : vector<1x188xf32> to vector<18x188xf32>
    %287 = arith.mulf %284, %286 : vector<18x188xf32>
    %288 = arith.addf %282, %287 : vector<18x188xf32>
    %c39 = arith.constant 39 : index
    %c0_126 = arith.constant 0 : index
    %c0_127 = arith.constant 0 : index
    %289 = vector.load %arg5[%c39, %c0_126, %c0_127] : memref<40x18x188xf32, #tpu.memory_space<vmem>>, vector<1x18x188xf32>
    %290 = vector.shape_cast %289 : vector<1x18x188xf32> to vector<18x188xf32>
    %291 = vector.extract_strided_slice %53 {offsets = [39, 0], sizes = [1, 188], strides = [1, 1]} : vector<40x188xf32> to vector<1x188xf32>
    %292 = vector.broadcast %291 : vector<1x188xf32> to vector<18x188xf32>
    %293 = arith.mulf %290, %292 : vector<18x188xf32>
    %294 = arith.addf %288, %293 : vector<18x188xf32>
    %cst_128 = arith.constant dense<0.000000e+00> : vector<18xf32>
    %295 = vector.multi_reduction <add>, %294, %cst_128 [1] : vector<18x188xf32> to vector<18xf32>
    %296 = vector.shape_cast %295 : vector<18xf32> to vector<18x1xf32>
    %cst_129 = arith.constant dense<0xFF800000> : vector<1xf32>
    %297 = vector.multi_reduction <maximumf>, %296, %cst_129 [0] : vector<18x1xf32> to vector<1xf32>
    %298 = vector.shape_cast %297 : vector<1xf32> to vector<1x1xf32>
    %299 = vector.broadcast %298 : vector<1x1xf32> to vector<18x1xf32>
    %300 = arith.subf %296, %299 : vector<18x1xf32>
    %301 = math.exp %300 : vector<18x1xf32>
    %cst_130 = arith.constant dense<0.000000e+00> : vector<1xf32>
    %302 = vector.multi_reduction <add>, %301, %cst_130 [0] : vector<18x1xf32> to vector<1xf32>
    %303 = vector.shape_cast %302 : vector<1xf32> to vector<1x1xf32>
    %304 = vector.broadcast %303 : vector<1x1xf32> to vector<18x1xf32>
    %305 = arith.divf %301, %304 : vector<18x1xf32>
    %306 = vector.shape_cast %305 : vector<18x1xf32> to vector<1x18x1xf32>
    %c0_131 = arith.constant 0 : index
    %c0_132 = arith.constant 0 : index
    %c0_133 = arith.constant 0 : index
    %307 = vector.load %arg6[%c0_131, %c0_132, %c0_133] : memref<1x18x1xf32, #tpu.memory_space<vmem>>, vector<1x18x1xf32>
    tpu.vector_store %arg6[%c0_131, %c0_132, %c0_133], %306 {strides = array<i32>} : memref<1x18x1xf32, #tpu.memory_space<vmem>>, vector<1x18x1xf32>,
    return
  }
  func.func @transform_0(%arg0: i32) -> (i32, i32, i32) {
    %c0_i32 = arith.constant 0 : i32
    %c0_i32_0 = arith.constant 0 : i32
    %c0_i32_1 = arith.constant 0 : i32
    return %arg0, %c0_i32, %c0_i32_0 : i32, i32, i32
  }
  func.func @transform_1(%arg0: i32) -> (i32, i32) {
    %c0_i32 = arith.constant 0 : i32
    %c0_i32_0 = arith.constant 0 : i32
    %c0_i32_1 = arith.constant 0 : i32
    return %c0_i32, %c0_i32_0 : i32, i32
  }
  func.func @transform_2(%arg0: i32) -> (i32, i32) {
    %c0_i32 = arith.constant 0 : i32
    %c0_i32_0 = arith.constant 0 : i32
    %c0_i32_1 = arith.constant 0 : i32
    return %c0_i32, %c0_i32_0 : i32, i32
  }
  func.func @transform_3(%arg0: i32) -> (i32, i32) {
    %c0_i32 = arith.constant 0 : i32
    %c0_i32_0 = arith.constant 0 : i32
    %c0_i32_1 = arith.constant 0 : i32
    return %c0_i32, %c0_i32_0 : i32, i32
  }
  func.func @transform_4(%arg0: i32) -> (i32, i32, i32) {
    %c0_i32 = arith.constant 0 : i32
    %c0_i32_0 = arith.constant 0 : i32
    %c0_i32_1 = arith.constant 0 : i32
    %c0_i32_2 = arith.constant 0 : i32
    return %c0_i32, %c0_i32_0, %c0_i32_1 : i32, i32, i32
  }
  func.func @transform_5(%arg0: i32) -> (i32, i32, i32) {
    %c0_i32 = arith.constant 0 : i32
    %c0_i32_0 = arith.constant 0 : i32
    %c0_i32_1 = arith.constant 0 : i32
    return %arg0, %c0_i32, %c0_i32_0 : i32, i32, i32
  }
}

</mosaic_0001>

<bundles_post_ra>
// kernel: tpu_custom_call.1
= control target key start
LH: loop header
LB: loop body
LE: loop exit
PB: predicated region body
PF: predicated region fallthrough
CT: control target
= control target key end

     0   :  { %s4486_s18 = smov 0   ;;  %s6818_s0 = inlined_call_operand.vmem [shape: f32[8,1,256], index: 0, kind: input, shape index: {}]   ;;  %s6819_s1 = inlined_call_operand.vmem [shape: f32[20,9], index: 1, kind: input, shape index: {}]   ;;  %s6820_s2 = inlined_call_operand.vmem [shape: f32[60,1], index: 2, kind: input, shape index: {}]   ;;  %s6821_s3 = inlined_call_operand.vmem [shape: f32[40,180], index: 3, kind: input, shape index: {}]   ;;  %s6822_s4 = inlined_call_operand.vmem [shape: f32[40,18,188], index: 4, kind: input, shape index: {}]   ;;  %s6823_s5 = inlined_call_operand.vmem [shape: f32[8,18,1], index: 5, kind: output, shape index: {}]  }
   0x1 LB: > { %s3782_s19 = sadd.s32 4294967295, %s4444_s18   ;;  %p3786_p0 = scmp.ge.s32.totalorder %s4444_s18, 1  ;;  %s4444_s18 = sphi %s4486_s18, %s15_s18  }
   0x2   : > { %p186_p1 = scmp.lt.s32.totalorder %s4444_s18, 9 }
   0x4   : > { %p187_p2 = pnand %p3786_p0, %p186_p1 }
   0x6   : > { %190 = sbr.rel (%p187_p2) target bundleno = 1384 (0x568), region = 40 }
   0xd   : > { %p213_p3 = scmp.lt.s32.totalorder %s3782_s19, 7  ;;  %v6824_v0 = vlaneseq  ;;  %s4446_s24 = smov 126   ;;  %v4454_v3 = vmov 0.0   ;;  %v309_v4 = vld [vmem:[%s6820_s2] sm:$0xff]  ;;  %v310_v5 = vld [vmem:[%s6820_s2 + $0x8] sm:$0xff]  ;;  %v4455_v6 = vmov 0  }
   0xe   : > { %s4447_s25 = smov 94   ;;  %s4448_s26 = smov 112   ;;  %412 = vmatprep.mubr.f32.mxu0 %v4454_v3  ;;  %4428 = vset.pattern.permute.xlu0 %v4455_v6  ;;  %v311_v7 = vld [vmem:[%s6820_s2 + $0x10] sm:$0xf]  ;;  %vm242_vm1 = vcmask 1031168   ;;  %vm296_vm2 = vcmask 769024  }
   0xf   : > { %s7173_s19 = smov (!%p213_p3, %s3782_s19), 7  ;;  %vm4501_vm0 = vcmp.lt.s32.totalorder %v6824_v0, 222  ;;  %s4449_s27 = smov 127   ;;  %4429 = vset.pattern.permute.xlu1 %v4455_v6  ;;  %vm251_vm3 = vcmask 916480   ;;  %vm233_vm4 = vcmask 1039360   ;;  %v302_v18 = vld [vmem:[%s6819_s1] sm:$0xff] }
  0x10   : > { %s3787_s20 = sshll.u32 %s7173_s19, 1  ;;  %s4450_s28 = smov 110   ;;  %vm327_vm5 = vcmask 72704   ;;  %vm269_vm6 = vcmask 900096   ;;  %vm260_vm7 = vcmask 908288   ;;  %v303_v26 = vld [vmem:[%s6819_s1 + $0x8] sm:$0xff] }
  0x11   : > { %s216_s23 = scalar_lea.vmem %s6818_s0, %s3787_s20  ;;  %s4451_s29 = smov 111   ;;  %v329_v23 = vsel %vm327_vm5, %v302_v18, 0  ;;  %vm337_vm8 = vcmask 1040384   ;;  %vm287_vm9 = vcmask 777216   ;;  %vm278_vm10 = vcmask 785408  }
  0x12   : > { %v222_v1 = vld [vmem:[%s216_s23] sm:$0x3]  ;;  %s4452_s30 = smov 95   ;;  %s4453_s6 = smov 96   ;;  %v4546_v31 = vand.u32 4294901760, %v329_v23  ;;  %v332_v34 = vsel %vm327_vm5, %v303_v26, 0 }
  0x13   : > { %239 = vrot.lane.b32.xlu1 %v222_v1, %s4446_s24  ;;  %293 = vrot.lane.b32.xlu0 %v222_v1, %s4447_s25  ;;  %227 = vst.msk [vmem:[#allocation2] ss:$8 sm:$0x3] %vm4501_vm0, %v222_v1  ;;  %v304_v39 = vld [vmem:[%s6819_s1 + $0x10] sm:$0xf]  ;;  %v4563_v43 = vand.u32 4294901760, %v332_v34 }
  0x14   : > { %v4561_v42 = vsub.f32 %v329_v23, %v4546_v31  ;;  %v335_v46 = vsel %vm327_vm5, %v304_v39, 0  ;;  %vm940_vm11 = vcmask 490496   ;;  %vm945_vm12 = vcmask 486400  }
  0x15   : > { %v4572_v48 = vsub.f32 %v332_v34, %v4563_v43  ;;  %v4574_v49 = vand.u32 4294901760, %v335_v46  ;;  %vm953_vm13 = vcmask 1043456   ;;  %vm1267_vm14 = vcmask 424960  }
  0x16   : > { %v415_v47 = vand.u32 4294901760, %v4561_v42  ;;  %vm986_vm15 = vcmask 490500  }
  0x17   : > { %248 = vrot.lane.b32.xlu1 %v222_v1, %s4448_s26  ;;  %230 = vrot.lane.b32.xlu0 %v222_v1, %s4449_s27  ;;  %v426_v55 = vand.u32 4294901760, %v4572_v48  ;;  %v4583_v56 = vsub.f32 %v335_v46, %v4574_v49 }
  0x18   : > { %v416_v54 = vsub.f32 %v4561_v42, %v415_v47 }
  0x1a   : > { %v417_v2 = vand.u32 4294901760, %v416_v54 }
  0x1b   : > { %266 = vrot.lane.b32.xlu1 %v222_v1, %s4450_s28  ;;  %257 = vrot.lane.b32.xlu0 %v222_v1, %s4451_s29 }
  0x1f   : > { %284 = vrot.lane.b32.xlu1 %v222_v1, %s4452_s30  ;;  %275 = vrot.lane.b32.xlu0 %v222_v1, %s4453_s6 }
  0x23   : > { %314 = vperm.xlu0 %4428, %v309_v4   ;;  %319 = vperm.xlu1 %4429, %v310_v5   ;;  %v427_v4 = vsub.f32 %v4572_v48, %v426_v55  ;;  %v437_v5 = vand.u32 4294901760, %v4583_v56 }
  0x27   : > { %324 = vperm.xlu1 %4429, %v311_v7  }
  0x85   : > { %v240_v8 = vpop.permute.xlu1 %239  ;;  %v294_v9 = vpop.permute.xlu0 %293 }
  0x86   : > { %v241_v10 = vrot.slane %v240_v8, 1  ;;  %v295_v11 = vrot.slane %v294_v9, 1 }
  0x88   : > { %v243_v12 = vsel %vm242_vm1, %v240_v8, %v241_v10  ;;  %v297_v13 = vsel %vm296_vm2, %v294_v9, %v295_v11 }
  0x89   : > { %246 = vst.msk [vmem:[#allocation2 + $0x2] ss:$8 sm:$0x3] %vm4501_vm0, %v243_v12  ;;  %300 = vst.msk [vmem:[#allocation2 + $0x10] ss:$8 sm:$0x3] %vm4501_vm0, %v297_v13  ;;  %v249_v14 = vpop.permute.xlu1 %248  ;;  %v231_v15 = vpop.permute.xlu0 %230  ;;  %v438_v13 = vsub.f32 %v4583_v56, %v437_v5 }
  0x8a   : > { %v250_v16 = vrot.slane %v249_v14, 1  ;;  %v232_v17 = vrot.slane %v231_v15, 1  ;;  %v428_v12 = vand.u32 4294901760, %v427_v4 }
  0x8c   : > { %v252_v19 = vsel %vm251_vm3, %v249_v14, %v250_v16  ;;  %v234_v20 = vsel %vm233_vm4, %v231_v15, %v232_v17 }
  0x8d   : > { %255 = vst.msk [vmem:[#allocation2 + $0x3] ss:$8 sm:$0x3] %vm4501_vm0, %v252_v19  ;;  %237 = vst.msk [vmem:[#allocation2 + $0x1] ss:$8 sm:$0x3] %vm4501_vm0, %v234_v20  ;;  %v267_v21 = vpop.permute.xlu1 %266  ;;  %v258_v22 = vpop.permute.xlu0 %257 }
  0x8e   : > { %v268_v24 = vrot.slane %v267_v21, 1  ;;  %v259_v25 = vrot.slane %v258_v22, 1 }
  0x90   : > { %v270_v27 = vsel %vm269_vm6, %v267_v21, %v268_v24  ;;  %v261_v28 = vsel %vm260_vm7, %v258_v22, %v259_v25  ;;  %v308_v29 = vld [vmem:[#allocation2 + $0x18] sm:$0x1]  ;;  %v307_v30 = vld [vmem:[#allocation2 + $0x10] sm:$0x1]  ;;  %v439_v21 = vand.u32 4294901760, %v438_v13 }
  0x91   : > { %273 = vst.msk [vmem:[#allocation2 + $0x5] ss:$8 sm:$0x3] %vm4501_vm0, %v270_v27  ;;  %264 = vst.msk [vmem:[#allocation2 + $0x4] ss:$8 sm:$0x3] %vm4501_vm0, %v261_v28  ;;  %v285_v32 = vpop.permute.xlu1 %284  ;;  %v276_v33 = vpop.permute.xlu0 %275 }
  0x92   : > { %v286_v35 = vrot.slane %v285_v32, 1  ;;  %v277_v36 = vrot.slane %v276_v33, 1  ;;  %v342_v37 = vsel %vm337_vm8, %v308_v29, 0  ;;  %v339_v38 = vsel %vm337_vm8, %v307_v30, 0 }
  0x93   : > { %v348_v44 = vand.u32 4294901760, %v342_v37  ;;  %v350_v45 = vand.u32 4294901760, %v339_v38 }
  0x94   : > { %v288_v40 = vsel %vm287_vm9, %v285_v32, %v286_v35  ;;  %v279_v41 = vsel %vm278_vm10, %v276_v33, %v277_v36 }
  0x95   : > { %291 = vst.msk [vmem:[#allocation2 + $0x7] ss:$8 sm:$0x3] %vm4501_vm0, %v288_v40  ;;  %282 = vst.msk [vmem:[#allocation2 + $0x6] ss:$8 sm:$0x3] %vm4501_vm0, %v279_v41  ;;  %v459_v50 = vsub.f32 %v342_v37, %v348_v44  ;;  %v4576_v51 = vsub.f32 %v339_v38, %v350_v45 }
  0x96   : > { %vm3684_vm0 = vcmask 1041408  }
  0x97   : > { %v460_v59 = vand.u32 4294901760, %v459_v50  ;;  %v466_v60 = vand.u32 4294901760, %v4576_v51 }
  0x99   : > { %v461_v7 = vsub.f32 %v459_v50, %v460_v59  ;;  %v467_v9 = vsub.f32 %v4576_v51, %v466_v60 }
  0x9b   : > { %v462_v15 = vand.u32 4294901760, %v461_v7  ;;  %v468_v17 = vand.u32 4294901760, %v467_v9 }
  0x9c   : > { %v306_v52 = vld [vmem:[#allocation2 + $0x8] sm:$0xff]  ;;  %v305_v53 = vld [vmem:[#allocation2] sm:$0xff] }
  0x9d   : > { %v344_v57 = vand.u32 4294901760, %v306_v52  ;;  %v346_v58 = vand.u32 4294901760, %v305_v53 }
  0x9f   : > { %v4025_v61 = vpack.c.bf16 %v348_v44, %v344_v57  ;;  %v447_v62 = vsub.f32 %v306_v52, %v344_v57  ;;  %v4027_v63 = vpack.c.bf16 %v350_v45, %v346_v58  ;;  %v453_v1 = vsub.f32 %v305_v53, %v346_v58 }
  0xa1   : > { %4026 = vmatprep.subr.bf16.mxu0 %v4025_v61  ;;  %v448_v6 = vand.u32 4294901760, %v447_v62  ;;  %v454_v8 = vand.u32 4294901760, %v453_v1  ;;  %v4033_v20 = vpack.c.bf16 %v459_v50, %v447_v62  ;;  %v4035_v22 = vpack.c.bf16 %v4576_v51, %v453_v1 }
  0xa2   : > { %4028 = vmatpush1.bf16.msra.mxu0 %v4027_v63  ;;  %v315_v25 = vpop.permute.xlu0 %314  ;;  %v320_v27 = vpop.permute.xlu1 %319 }
  0xa3   : > { %v449_v10 = vsub.f32 %v447_v62, %v448_v6  ;;  %v455_v11 = vsub.f32 %v453_v1, %v454_v8  ;;  %v4041_v23 = vpack.c.bf16 %v460_v59, %v448_v6  ;;  %v4043_v24 = vpack.c.bf16 %v466_v60, %v454_v8 }
  0xa5   : > { %418 = vmatmul.mubr.f32.vlgmr.msra.gmra.mrb[0].mxu0 %v417_v2  ;;  %v450_v14 = vand.u32 4294901760, %v449_v10  ;;  %v456_v16 = vand.u32 4294901760, %v455_v11 }
  0xa6   : > { %423 = vmatprep.mubr.f32.mxu0 %v4454_v3  ;;  %v325_v37 = vpop.permute.xlu1 %324 }
  0xa7   : > { %v4029_v18 = vpack.c.bf16 %v462_v15, %v450_v14  ;;  %v4031_v19 = vpack.c.bf16 %v468_v17, %v456_v16 }
  0xa9   : > { %429 = vmatmul.mubr.f32.gmra.mrb[2].mxu0 %v428_v12  ;;  %4030 = vmatprep.subr.bf16.mxu0 %v4029_v18 }
  0xaa   : > { %4032 = vmatpush1.bf16.msra.mxu0 %v4031_v19  ;;  %434 = vmatprep.mubr.f32.mxu0 %v4454_v3 }
  0xab   : > { %4034 = vmatprep.subr.bf16.mxu0 %v4033_v20 }
  0xad   : > { %440 = vmatmul.mubr.f32.gmra.mrb[4].mxu0 %v439_v21 }
  0xae   : > { %530 = vmatprep.mubr.f32.mxu0 %v4454_v3 }
  0xb1   : > { %532 = vmatmul.mubr.f32.vlgmr.msra.gmra.mrb[0].mxu0 %v4546_v31 }
  0xb2   : > { %4036 = vmatpush1.bf16.msra.mxu0 %v4035_v22  ;;  %537 = vmatprep.mubr.f32.mxu0 %v4454_v3 }
  0xb3   : > { %4038 = vmatprep.subr.bf16.mxu0 %v4025_v61 }
  0xb5   : > { %539 = vmatmul.mubr.f32.gmra.mrb[2].mxu0 %v4563_v43 }
  0xb6   : > { %544 = vmatprep.mubr.f32.mxu0 %v4454_v3 }
  0xb9   : > { %546 = vmatmul.mubr.f32.gmra.mrb[4].mxu0 %v4574_v49 }
  0xba   : > { %624 = vmatprep.mubr.f32.mxu0 %v4454_v3 }
  0xbd   : > { %627 = vmatmul.mubr.f32.vlgmr.msra.gmra.mrb[0].mxu0 %v4561_v42 }
  0xbe   : > { %4040 = vmatpush1.bf16.msra.mxu0 %v4027_v63  ;;  %632 = vmatprep.mubr.f32.mxu0 %v4454_v3 }
  0xbf   : > { %4042 = vmatprep.subr.bf16.mxu0 %v4041_v23  ;;  %v1182_v23 = vld [vmem:[%s6821_s3 + $0x8] sm:$0xff] }
  0xc1   : > { %635 = vmatmul.mubr.f32.gmra.mrb[2].mxu0 %v4572_v48 }
  0xc2   : > { %640 = vmatprep.mubr.f32.mxu0 %v4454_v3 }
  0xc5   : > { %643 = vmatmul.mubr.f32.gmra.mrb[4].mxu0 %v4583_v56 }
  0xc6   : > { %717 = vmatprep.mubr.f32.mxu0 %v4454_v3 }
  0xc9   : > { %721 = vmatmul.mubr.f32.vlgmr.msra.gmra.mrb[0].mxu0 %v415_v47 }
  0xca   : > { %4044 = vmatpush1.bf16.msra.mxu0 %v4043_v24  ;;  %726 = vmatprep.mubr.f32.mxu0 %v4454_v3  ;;  %v1269_v24 = vsel %vm1267_vm14, %v1182_v23, 0 }
  0xcb   : > { %4046 = vmatprep.subr.bf16.mxu0 %v4025_v61 }
  0xcd   : > { %730 = vmatmul.mubr.f32.gmra.mrb[2].mxu0 %v426_v55 }
  0xce   : > { %735 = vmatprep.mubr.f32.mxu0 %v4454_v3 }
  0xd1   : > { %739 = vmatmul.mubr.f32.gmra.mrb[4].mxu0 %v437_v5 }
  0xd2   : > { %821 = vmatprep.mubr.f32.mxu0 %v4454_v3 }
  0xd5   : > { %823 = vmatmul.mubr.f32.vlgmr.msra.gmra.mrb[0].mxu0 %v4546_v31 }
  0xd6   : > { %4048 = vmatpush1.bf16.msra.mxu0 %v4027_v63  ;;  %828 = vmatprep.mubr.f32.mxu0 %v4454_v3 }
  0xd9   : > { %830 = vmatmul.mubr.f32.gmra.mrb[2].mxu0 %v4563_v43 }
  0xda   : > { %835 = vmatprep.mubr.f32.mxu0 %v4454_v3 }
  0xdd   : > { %837 = vmatmul.mubr.f32.gmra.mrb[4].mxu0 %v4574_v49 }
  0xde   : > { %911 = vmatprep.mubr.f32.mxu0 %v4454_v3 }
  0xe1   : > { %913 = vmatmul.mubr.f32.vlgmr.msra.gmra.mrb[0].mxu0 %v4546_v31 }
  0xe2   : > { %918 = vmatprep.mubr.f32.mxu0 %v4454_v3 }
  0xe5   : > { %920 = vmatmul.mubr.f32.gmra.mrb[2].mxu0 %v4563_v43 }
  0xe6   : > { %925 = vmatprep.mubr.f32.mxu0 %v4454_v3 }
  0xe9   : > { %927 = vmatmul.mubr.f32.gmra.mrb[4].mxu0 %v4574_v49 }
 0x1b4   : > { %v914_v26 = vpop.f32.mrb[0].mxu0 }
 0x1b5   : > { %v4313_v28 = vadd.f32 %v914_v26, %v315_v25  ;;  %v916_v29 = vpop.f32.mrb[1].mxu0 }
 0x1b6   : > { %v4314_v30 = vadd.f32 %v916_v29, %v315_v25  ;;  %v4744_v25 = vand.u32 4294901760, %v1269_v24  ;;  %v1237_v29 = vld [vmem:[%s6820_s2 + $0x14] sm:$0xff] }
 0x1b7   : > { %v4622_v32 = vmax.f32 %v4313_v28, 0.0 }
 0x1b8   : > { %v4624_v33 = vmax.f32 %v4314_v30, 0.0  ;;  %v921_v31 = vpop.f32.mrb[2].mxu0  ;;  %6943 = vst [vmem:[#allocation8_spill] sm:$0xff] %v4744_v25  ;;  %v4747_v26 = vsub.f32 %v1269_v24, %v4744_v25 }
 0x1b9   : > { %v4315_v34 = vadd.f32 %v921_v31, %v320_v27  ;;  %v923_v35 = vpop.f32.mrb[3].mxu0  ;;  %992 = vrot.lane.b32.xlu0 %v4622_v32, %s4446_s24  ;;  %v1291_v3 = vand.u32 4294901760, %v4622_v32  ;;  %v4658_v54 = vrot.slane %v4622_v32, 4  ;;  %v1240_v31 = vld [vmem:[%s6820_s2 + $0x2c] sm:$0xff] }
 0x1ba   : > { %941 = vst.msk [vmem:[#allocation3 + $0x8] sm:$0xff] %vm940_vm11, %v4624_v33  ;;  %v4316_v36 = vadd.f32 %v923_v35, %v320_v27  ;;  %994 = vrot.lane.b32.xlu1 %v4624_v33, %s4446_s24  ;;  %v955_v57 = vrot.slane %v4624_v33, 4  ;;  %6944 = vst [vmem:[#allocation9_spill] sm:$0xff] %v4747_v26  ;;  %v6827_v27 = vand.u32 4294901760, %v4747_v26  ;;  %1973 = vmatprep.mubr.f32.mxu1 %v4747_v26 }
 0x1bb   : > { %v4633_v38 = vmax.f32 %v4315_v34, 0.0  ;;  %v1487_v39 = vsub.f32 %v4622_v32, %v1291_v3  ;;  %v1241_v34 = vld [vmem:[%s6820_s2 + $0x34] sm:$0xff] }
 0x1bc   : > { %v4636_v40 = vmax.f32 %v4316_v36, 0.0  ;;  %v928_v41 = vpop.f32.mrb[4].mxu0  ;;  %v1402_v28 = vsub.f32 %v4747_v26, %v6827_v27 }
 0x1bd   : > { %v4317_v42 = vadd.f32 %v928_v41, %v325_v37  ;;  %v930_v43 = vpop.f32.mrb[5].mxu0  ;;  %1046 = vrot.lane.b32.xlu0 %v4622_v32, %s4451_s29  ;;  %v1295_v44 = vand.u32 4294901760, %v4633_v38  ;;  %v1488_v45 = vand.u32 4294901760, %v1487_v39  ;;  %v956_v15 = vrot.slane %v4633_v38, 4 }
 0x1be   : > { %943 = vst.msk [vmem:[#allocation3 + $0x18] sm:$0xff] %vm940_vm11, %v4636_v40  ;;  %v4318_v46 = vadd.f32 %v930_v43, %v325_v37  ;;  %1048 = vrot.lane.b32.xlu1 %v4624_v33, %s4451_s29  ;;  %v958_v16 = vrot.slane %v4636_v40, 4  ;;  %v1403_v30 = vand.u32 4294901760, %v1402_v28 }
 0x1bf   : > { %v4645_v47 = vmax.f32 %v4317_v42, 0.0  ;;  %v1499_v48 = vsub.f32 %v4633_v38, %v1295_v44  ;;  %v1489_v52 = vsub.f32 %v1487_v39, %v1488_v45  ;;  %v4672_v5 = vpack.c.bf16 %v1295_v44, %v1291_v3 }
 0x1c0   : > { %v4648_v49 = vmax.f32 %v4318_v46, 0.0  ;;  %v957_v17 = vsel %vm953_vm13, %v4658_v54, %v956_v15  ;;  %v959_v18 = vsel %vm953_vm13, %v955_v57, %v958_v16  ;;  %1404 = vmatprep.mubr.f32.mxu0 %v1403_v30 }
 0x1c1   : > { %944 = vst [vmem:[#allocation3 + $0x20] sm:$0xf] %v4645_v47  ;;  %1100 = vrot.lane.b32.xlu0 %v4622_v32, %s4453_s6  ;;  %v1192_v50 = vld [vmem:[#allocation3 + $0x8] sm:$0xff]  ;;  %v1500_v51 = vand.u32 4294901760, %v1499_v48  ;;  %v1490_v60 = vand.u32 4294901760, %v1489_v52  ;;  %6941 = vst [vmem:[#allocation6_spill] sm:$0xff] %v4672_v5  ;;  %v4139_v9 = vpack.c.bf16 %v1499_v48, %v1487_v39 }
 0x1c2   : > { %1102 = vrot.lane.b32.xlu1 %v4624_v33, %s4453_s6  ;;  %v1289_v53 = vand.u32 4294901760, %v1192_v50  ;;  %946 = vst.msk [vmem:[#allocation3 + $0x28] sm:$0xf] %vm945_vm12, %v4648_v49  ;;  %v960_v19 = vrot.slane %v4645_v47, 4  ;;  %v962_v20 = vrot.slane %v4648_v49, 4 }
 0x1c3   : > { %v1501_v55 = vsub.f32 %v1499_v48, %v1500_v51  ;;  %v4660_v56 = vpack.c.bf16 %v1500_v51, %v1488_v45 }
 0x1c4   : > { %v1481_v58 = vsub.f32 %v1192_v50, %v1289_v53  ;;  %v961_v21 = vsel %vm953_vm13, %v956_v15, %v960_v19  ;;  %v963_v22 = vsel %vm953_vm13, %v958_v16, %v962_v20 }
 0x1c5   : > { %6939 = vst [vmem:[#allocation4_spill] sm:$0xff] %v4660_v56  ;;  %964 = vrot.lane.b32.xlu0 %v4658_v54, %s4449_s27  ;;  %v1194_v59 = vld [vmem:[#allocation3 + $0x18] sm:$0xff]  ;;  %v1502_v61 = vand.u32 4294901760, %v1501_v55 }
 0x1c6   : > { %966 = vrot.lane.b32.xlu1 %v955_v57, %s4449_s27  ;;  %v1293_v62 = vand.u32 4294901760, %v1194_v59  ;;  %v1482_v63 = vand.u32 4294901760, %v1481_v58 }
 0x1c7   : > { %v4666_v1 = vpack.c.bf16 %v1502_v61, %v1490_v60 }
 0x1c8   : > { %v4668_v2 = vpack.c.bf16 %v1293_v62, %v1289_v53  ;;  %v1493_v4 = vsub.f32 %v1194_v59, %v1293_v62  ;;  %v1483_v7 = vsub.f32 %v1481_v58, %v1482_v63 }
 0x1c9   : > { %1019 = vrot.lane.b32.xlu0 %v4658_v54, %s4448_s26 }
 0x1ca   : > { %6940 = vst [vmem:[#allocation5_spill] sm:$0xff] %v4668_v2  ;;  %1021 = vrot.lane.b32.xlu1 %v955_v57, %s4448_s26  ;;  %4050 = vmatprep.subr.bf16.mxu0 %v4668_v2  ;;  %v4137_v6 = vpack.c.bf16 %v1493_v4, %v1481_v58  ;;  %v1494_v8 = vand.u32 4294901760, %v1493_v4  ;;  %v1484_v12 = vand.u32 4294901760, %v1483_v7 }
 0x1cb   : > { %4052 = vmatpush1.bf16.msra.mxu0 %v4672_v5 }
 0x1cc   : > { %4138 = vmatprep.subr.bf16.mxu1 %v4137_v6  ;;  %v1495_v10 = vsub.f32 %v1493_v4, %v1494_v8  ;;  %v4677_v11 = vpack.c.bf16 %v1494_v8, %v1482_v63 }
 0x1cd   : > { %1073 = vrot.lane.b32.xlu0 %v4658_v54, %s4450_s28  ;;  %4140 = vmatpush1.bf16.msra.mxu1 %v4139_v9 }
 0x1ce   : > { %6942 = vst [vmem:[#allocation7_spill] sm:$0xff] %v4677_v11  ;;  %1075 = vrot.lane.b32.xlu1 %v955_v57, %s4450_s28  ;;  %v1496_v13 = vand.u32 4294901760, %v1495_v10 }
 0x1d0   : > { %v4682_v14 = vpack.c.bf16 %v1496_v13, %v1484_v12 }
 0x1d1   : > { %996 = vrot.lane.b32.xlu0 %v4633_v38, %s4446_s24 }
 0x1d2   : > { %998 = vrot.lane.b32.xlu1 %v4636_v40, %s4446_s24 }
 0x1d5   : > { %1050 = vrot.lane.b32.xlu0 %v4633_v38, %s4451_s29 }
 0x1d6   : > { %1052 = vrot.lane.b32.xlu1 %v4636_v40, %s4451_s29 }
 0x1d9   : > { %1104 = vrot.lane.b32.xlu0 %v4633_v38, %s4453_s6 }
 0x1da   : > { %1106 = vrot.lane.b32.xlu1 %v4636_v40, %s4453_s6 }
 0x1dd   : > { %968 = vrot.lane.b32.xlu0 %v957_v17, %s4449_s27 }
 0x1de   : > { %970 = vrot.lane.b32.xlu1 %v959_v18, %s4449_s27 }
 0x1e1   : > { %1023 = vrot.lane.b32.xlu0 %v957_v17, %s4448_s26 }
 0x1e2   : > { %1025 = vrot.lane.b32.xlu1 %v959_v18, %s4448_s26 }
 0x1e5   : > { %1077 = vrot.lane.b32.xlu0 %v957_v17, %s4450_s28 }
 0x1e6   : > { %1079 = vrot.lane.b32.xlu1 %v959_v18, %s4450_s28 }
 0x1e9   : > { %1000 = vrot.lane.b32.xlu0 %v4645_v47, %s4446_s24 }
 0x1ea   : > { %1002 = vrot.lane.b32.xlu1 %v4648_v49, %s4446_s24 }
 0x1ed   : > { %1054 = vrot.lane.b32.xlu0 %v4645_v47, %s4451_s29 }
 0x1ee   : > { %1056 = vrot.lane.b32.xlu1 %v4648_v49, %s4451_s29 }
 0x1f1   : > { %972 = vrot.lane.b32.xlu0 %v961_v21, %s4449_s27 }
 0x1f2   : > { %974 = vrot.lane.b32.xlu1 %v963_v22, %s4449_s27 }
 0x1f5   : > { %1108 = vrot.lane.b32.xlu0 %v4645_v47, %s4453_s6 }
 0x1f6   : > { %1110 = vrot.lane.b32.xlu1 %v4648_v49, %s4453_s6 }
 0x1f9   : > { %1027 = vrot.lane.b32.xlu0 %v961_v21, %s4448_s26 }
 0x1fa   : > { %1029 = vrot.lane.b32.xlu1 %v963_v22, %s4448_s26  ;;  %s4409_s26 = smul.u32 24, %s7173_s19 }
 0x1fc   : > { %s221_s29 = scalar_lea.vmem %s6823_s5, %s4409_s26 }
 0x1fd   : > { %1081 = vrot.lane.b32.xlu0 %v961_v21, %s4450_s28 }
 0x1fe   : > { %1129 = vrot.lane.b32.xlu1 %v955_v57, %s4452_s30 }
 0x201   : > { %1127 = vrot.lane.b32.xlu0 %v4658_v54, %s4452_s30 }
 0x202   : > { %1133 = vrot.lane.b32.xlu1 %v959_v18, %s4452_s30 }
 0x205   : > { %1131 = vrot.lane.b32.xlu0 %v957_v17, %s4452_s30 }
 0x206   : > { %1083 = vrot.lane.b32.xlu1 %v963_v22, %s4450_s28 }
 0x209   : > { %1135 = vrot.lane.b32.xlu0 %v961_v21, %s4452_s30  ;;  %v1181_v21 = vld [vmem:[%s6821_s3] sm:$0xff] }
 0x20a   : > { %1156 = vrot.lane.b32.xlu1 %v4624_v33, %s4447_s25  ;;  %v1239_v33 = vld [vmem:[%s6820_s2 + $0x24] sm:$0xff] }
 0x20d   : > { %1154 = vrot.lane.b32.xlu0 %v4622_v32, %s4447_s25  ;;  %v1238_v32 = vld [vmem:[%s6820_s2 + $0x1c] sm:$0xff] }
 0x20e   : > { %1137 = vrot.lane.b32.xlu1 %v963_v22, %s4452_s30 }
 0x211   : > { %1158 = vrot.lane.b32.xlu0 %v4633_v38, %s4447_s25 }
 0x212   : > { %1160 = vrot.lane.b32.xlu1 %v4636_v40, %s4447_s25 }
 0x215   : > { %1162 = vrot.lane.b32.xlu0 %v4645_v47, %s4447_s25 }
 0x216   : > { %1164 = vrot.lane.b32.xlu1 %v4648_v49, %s4447_s25 }
 0x219   : > { %1244 = vperm.xlu0 %4428, %v1237_v29  }
 0x21a   : > { %1249 = vperm.xlu1 %4429, %v1238_v32  }
 0x21d   : > { %1254 = vperm.xlu0 %4428, %v1239_v33  }
 0x21e   : > { %1259 = vperm.xlu1 %4429, %v1240_v31   ;;  %v4832_v31 = vand.u32 4294901760, %v1181_v21 }
 0x220   : > { %6949 = vst [vmem:[#allocation14_spill] sm:$0xff] %v4832_v31 }
 0x221   : > { %1264 = vperm.xlu0 %4428, %v1241_v34  }
 0x22b   : > { %v993_v35 = vpop.permute.xlu0 %992 }
 0x22c   : > { %v995_v3 = vpop.permute.xlu1 %994 }
 0x22d   : > { %v4778_v36 = vsel %vm242_vm1, %v993_v35, %v995_v3  ;;  %1014 = vst.msk [vmem:[#allocation3 + $0x58] sm:$0xff] %vm940_vm11, %v995_v3 }
 0x22f   : > { %v1047_v37 = vpop.permute.xlu0 %1046 }
 0x230   : > { %v1049_v38 = vpop.permute.xlu1 %1048 }
 0x231   : > { %v4782_v39 = vsel %vm260_vm7, %v1047_v37, %v1049_v38  ;;  %1068 = vst.msk [vmem:[#allocation3 + $0xa8] sm:$0xff] %vm940_vm11, %v1049_v38  ;;  %v1184_v37 = vld [vmem:[%s6821_s3 + $0x18] sm:$0xff] }
 0x233   : > { %v1101_v40 = vpop.permute.xlu0 %1100 }
 0x234   : > { %v1103_v41 = vpop.permute.xlu1 %1102 }
 0x235   : > { %v4786_v42 = vsel %vm278_vm10, %v1101_v40, %v1103_v41  ;;  %1122 = vst.msk [vmem:[#allocation3 + $0xf8] sm:$0xff] %vm940_vm11, %v1103_v41  ;;  %v4846_v41 = vsub.f32 %v1181_v21, %v4832_v31 }
 0x237   : > { %v965_v43 = vpop.permute.xlu0 %964 }
 0x238   : > { %v967_v44 = vpop.permute.xlu1 %966  ;;  %v1212_v0 = vld [vmem:[#allocation3 + $0xa8] sm:$0xff] }
 0x239   : > { %v976_v45 = vsel %vm233_vm4, %v965_v43, %v967_v44  ;;  %987 = vst.msk [vmem:[#allocation3 + $0x28] sm:$0xf0] %vm986_vm15, %v967_v44  ;;  %v1272_v44 = vsel %vm1267_vm14, %v1184_v37, 0  ;;  %v4894_v37 = vld [vmem:[%s6821_s3 + $0x20] sm:$0xff] }
 0x23a   : > { %985 = vst [vmem:[#allocation3 + $0x20] sm:$0xf0] %v976_v45 }
 0x23b   : > { %v1020_v46 = vpop.permute.xlu0 %1019 }
 0x23c   : > { %v1022_v47 = vpop.permute.xlu1 %1021 }
 0x23d   : > { %v1031_v48 = vsel %vm251_vm3, %v1020_v46, %v1022_v47  ;;  %1041 = vst.msk [vmem:[#allocation3 + $0x78] sm:$0xf0] %vm986_vm15, %v1022_v47  ;;  %v1183_v46 = vld [vmem:[%s6821_s3 + $0x10] sm:$0xff] }
 0x23e   : > { %1040 = vst [vmem:[#allocation3 + $0x70] sm:$0xf0] %v1031_v48  ;;  %v6825_v48 = vand.u32 4294901760, %v4846_v41 }
 0x23f   : > { %v1074_v49 = vpop.permute.xlu0 %1073 }
 0x240   : > { %v1076_v50 = vpop.permute.xlu1 %1075  ;;  %v1196_v8 = vld [vmem:[#allocation3 + $0x28] sm:$0xff] }
 0x241   : > { %v1085_v51 = vsel %vm269_vm6, %v1074_v49, %v1076_v50  ;;  %1095 = vst.msk [vmem:[#allocation3 + $0xc8] sm:$0xf0] %vm986_vm15, %v1076_v50  ;;  %v1195_v10 = vld [vmem:[#allocation3 + $0x20] sm:$0xff]  ;;  %v1297_v15 = vand.u32 4294901760, %v1196_v8  ;;  %v4855_v49 = vand.u32 4294901760, %v1272_v44 }
 0x242   : > { %1094 = vst [vmem:[#allocation3 + $0xc0] sm:$0xf0] %v1085_v51  ;;  %v1299_v18 = vand.u32 4294901760, %v1195_v10  ;;  %v1311_v51 = vand.u32 4294901760, %v4778_v36 }
 0x243   : > { %v997_v52 = vpop.permute.xlu0 %996  ;;  %v4824_v28 = vsub.f32 %v1196_v8, %v1297_v15  ;;  %6950 = vst [vmem:[#allocation15_spill] sm:$0xff] %v4855_v49 }
 0x244   : > { %v999_v53 = vpop.permute.xlu1 %998  ;;  %v4830_v33 = vsub.f32 %v1195_v10, %v1299_v18  ;;  %v4877_v10 = vsub.f32 %v4778_v36, %v1311_v51 }
 0x245   : > { %v4796_v54 = vsel %vm242_vm1, %v997_v52, %v999_v53  ;;  %1016 = vst.msk [vmem:[#allocation3 + $0x68] sm:$0xff] %vm940_vm11, %v999_v53  ;;  %v4860_v52 = vand.u32 4294901760, %v1183_v46  ;;  %v1186_v53 = vld [vmem:[%s6821_s3 + $0x28] sm:$0xff] }
 0x246   : > { %6952 = vst [vmem:[#allocation17_spill] sm:$0xff] %v4877_v10 }
 0x247   : > { %v1051_v55 = vpop.permute.xlu0 %1050  ;;  %6951 = vst [vmem:[#allocation16_spill] sm:$0xff] %v4860_v52 }
 0x248   : > { %v1053_v57 = vpop.permute.xlu1 %1052 }
 0x249   : > { %v4800_v58 = vsel %vm260_vm7, %v1051_v55, %v1053_v57  ;;  %1070 = vst.msk [vmem:[#allocation3 + $0xb8] sm:$0xff] %vm940_vm11, %v1053_v57 }
 0x24b   : > { %v1105_v59 = vpop.permute.xlu0 %1104 }
 0x24c   : > { %v1107_v60 = vpop.permute.xlu1 %1106  ;;  %v1204_v8 = vld [vmem:[#allocation3 + $0x68] sm:$0xff] }
 0x24d   : > { %v4804_v61 = vsel %vm278_vm10, %v1105_v59, %v1107_v60  ;;  %1124 = vst.msk [vmem:[#allocation3 + $0x108] sm:$0xff] %vm940_vm11, %v1107_v60  ;;  %v1202_v59 = vld [vmem:[#allocation3 + $0x58] sm:$0xff] }
 0x24f   : > { %v969_v62 = vpop.permute.xlu0 %968 }
 0x250   : > { %v971_v63 = vpop.permute.xlu1 %970 }
 0x251   : > { %v977_v4 = vsel %vm233_vm4, %v969_v62, %v971_v63  ;;  %989 = vst.msk [vmem:[#allocation3 + $0x38] sm:$0xff] %vm940_vm11, %v971_v63  ;;  %v4868_v62 = vsub.f32 %v4846_v41, %v6825_v48  ;;  %v4871_v63 = vsub.f32 %v1272_v44, %v4855_v49 }
 0x252   : > { %v1303_v12 = vand.u32 4294901760, %v977_v4 }
 0x253   : > { %v1024_v6 = vpop.permute.xlu0 %1023 }
 0x254   : > { %v1026_v7 = vpop.permute.xlu1 %1025  ;;  %v4820_v22 = vsub.f32 %v977_v4, %v1303_v12  ;;  %v4828_v32 = vpack.c.bf16 %v1303_v12, %v1299_v18  ;;  %v4880_v12 = vsub.f32 %v1183_v46, %v4860_v52 }
 0x255   : > { %v4810_v9 = vsel %vm251_vm3, %v1024_v6, %v1026_v7  ;;  %1043 = vst.msk [vmem:[#allocation3 + $0x88] sm:$0xff] %vm940_vm11, %v1026_v7  ;;  %v1275_v6 = vsel %vm1267_vm14, %v1186_v53, 0 }
 0x256   : > { %6945 = vst [vmem:[#allocation10_spill] sm:$0xff] %v4820_v22  ;;  %6948 = vst [vmem:[#allocation13_spill] sm:$0xff] %v4828_v32  ;;  %v4143_v3 = vpack.c.bf16 %v4820_v22, %v4830_v33  ;;  %v1323_v52 = vand.u32 4294901760, %v4810_v9 }
 0x257   : > { %v1078_v13 = vpop.permute.xlu0 %1077 }
 0x258   : > { %v1080_v16 = vpop.permute.xlu1 %1079  ;;  %v1198_v17 = vld [vmem:[#allocation3 + $0x38] sm:$0xff] }
 0x259   : > { %v4814_v19 = vsel %vm269_vm6, %v1078_v13, %v1080_v16  ;;  %1097 = vst.msk [vmem:[#allocation3 + $0xd8] sm:$0xff] %vm940_vm11, %v1080_v16  ;;  %v1301_v20 = vand.u32 4294901760, %v1198_v17 }
 0x25b   : > { %v1001_v23 = vpop.permute.xlu0 %1000  ;;  %v4822_v24 = vpack.c.bf16 %v1301_v20, %v1297_v15  ;;  %v4826_v29 = vsub.f32 %v1198_v17, %v1301_v20  ;;  %v1309_v15 = vand.u32 4294901760, %v1202_v59 }
 0x25c   : > { %v1003_v30 = vpop.permute.xlu1 %1002 }
 0x25d   : > { %6946 = vst [vmem:[#allocation11_spill] sm:$0xff] %v4822_v24  ;;  %6947 = vst [vmem:[#allocation12_spill] sm:$0xff] %v4826_v29  ;;  %v1006_v34 = vsel %vm242_vm1, %v1001_v23, %v1003_v30  ;;  %4054 = vmatprep.subr.bf16.mxu0 %v4822_v24  ;;  %v4141_v35 = vpack.c.bf16 %v4826_v29, %v4824_v28  ;;  %v6826_v23 = vand.u32 4294901760, %v4871_v63  ;;  %vm3686_vm1 = vcmask 484352  }
 0x25e   : > { %1018 = vst.msk [vmem:[#allocation3 + $0x78] sm:$0xf] %vm945_vm12, %v1003_v30  ;;  %1017 = vst [vmem:[#allocation3 + $0x70] sm:$0xf] %v1006_v34  ;;  %4056 = vmatpush1.bf16.msra.mxu0 %v4828_v32  ;;  %v4884_v30 = vand.u32 4294901760, %v1275_v6  ;;  %v4906_v53 = vsub.f32 %v1202_v59, %v1309_v15 }
 0x25f   : > { %v1055_v38 = vpop.permute.xlu0 %1054  ;;  %4142 = vmatprep.subr.bf16.mxu1 %v4141_v35  ;;  %v1313_v35 = vand.u32 4294901760, %v1204_v8  ;;  %v4918_v48 = vsub.f32 %v4871_v63, %v6826_v23 }
 0x260   : > { %v1057_v40 = vpop.permute.xlu1 %1056  ;;  %4144 = vmatpush1.bf16.msra.mxu1 %v4143_v3  ;;  %6953 = vst [vmem:[#allocation18_spill] sm:$0xff] %v4884_v30  ;;  %v6832_v3 = vand.u32 4294901760, %v4782_v39  ;;  %6956 = vst [vmem:[#allocation21_spill] sm:$0xff] %v4906_v53 }
 0x261   : > { %v1060_v43 = vsel %vm260_vm7, %v1055_v38, %v1057_v40  ;;  %1072 = vst.msk [vmem:[#allocation3 + $0xc8] sm:$0xf] %vm945_vm12, %v1057_v40 }
 0x262   : > { %1071 = vst [vmem:[#allocation3 + $0xc0] sm:$0xf] %v1060_v43  ;;  %v4947_v21 = vsub.f32 %v4782_v39, %v6832_v3  ;;  %v6963_v3 = vand.u32 4294901760, %v4877_v10 }
 0x263   : > { %v973_v45 = vpop.permute.xlu0 %972 }
 0x264   : > { %v975_v47 = vpop.permute.xlu1 %974  ;;  %6961 = vst [vmem:[#allocation26_spill] sm:$0xff] %v4947_v21 }
 0x265   : > { %v978_v50 = vsel %vm233_vm4, %v973_v45, %v975_v47  ;;  %991 = vst.msk [vmem:[#allocation3 + $0x48] sm:$0xff] %vm940_vm11, %v975_v47  ;;  %v1206_v60 = vld [vmem:[#allocation3 + $0x78] sm:$0xff]  ;;  %v1205_v17 = vld [vmem:[#allocation3 + $0x70] sm:$0xff] }
 0x266   : > { %v1307_v7 = vand.u32 4294901760, %v978_v50  ;;  %v1317_v16 = vand.u32 4294901760, %v1206_v60  ;;  %v1319_v40 = vand.u32 4294901760, %v1205_v17 }
 0x267   : > { %v1109_v55 = vpop.permute.xlu0 %1108 }
 0x268   : > { %v1111_v57 = vpop.permute.xlu1 %1110  ;;  %v4896_v38 = vsub.f32 %v978_v50, %v1307_v7  ;;  %v4912_v50 = vpack.c.bf16 %v1311_v51, %v1307_v7  ;;  %v4925_v59 = vpack.c.bf16 %v1317_v16, %v1313_v35  ;;  %v4927_v51 = vsub.f32 %v1204_v8, %v1313_v35  ;;  %v1216_v56 = vld [vmem:[#allocation3 + $0xc8] sm:$0xff] }
 0x269   : > { %v1114_v4 = vsel %vm278_vm10, %v1109_v55, %v1111_v57  ;;  %1126 = vst.msk [vmem:[#allocation3 + $0x118] sm:$0xf] %vm945_vm12, %v1111_v57  ;;  %v4908_v55 = vsub.f32 %v1206_v60, %v1317_v16  ;;  %v4910_v57 = vld [vmem:[#allocation3 + $0xb8] sm:$0xff]  ;;  %v4932_v7 = vsub.f32 %v1275_v6, %v4884_v30  ;;  %v1329_v35 = vand.u32 4294901760, %v1212_v0  ;;  %v1215_v26 = vld [vmem:[#allocation3 + $0xc0] sm:$0xff] }
 0x26a   : > { %1125 = vst [vmem:[#allocation3 + $0x110] sm:$0xf] %v1114_v4  ;;  %6957 = vst [vmem:[#allocation22_spill] sm:$0xff] %v4912_v50  ;;  %v1333_v16 = vand.u32 4294901760, %v4910_v57  ;;  %v1337_v31 = vand.u32 4294901760, %v1216_v56 }
 0x26b   : > { %v1028_v13 = vpop.permute.xlu0 %1027  ;;  %6959 = vst [vmem:[#allocation24_spill] sm:$0xff] %v4925_v59  ;;  %6960 = vst [vmem:[#allocation25_spill] sm:$0xff] %v4932_v7  ;;  %v4149_v8 = vpack.c.bf16 %v4908_v55, %v4927_v51 }
 0x26c   : > { %v1030_v18 = vpop.permute.xlu1 %1029  ;;  %v1200_v20 = vld [vmem:[#allocation3 + $0x48] sm:$0xff] }
 0x26d   : > { %v4887_v34 = vsel %vm251_vm3, %v1028_v13, %v1030_v18  ;;  %1045 = vst.msk [vmem:[#allocation3 + $0x98] sm:$0xff] %vm940_vm11, %v1030_v18  ;;  %v1305_v36 = vand.u32 4294901760, %v1200_v20  ;;  %v1315_v13 = vand.u32 4294901760, %v4796_v54  ;;  %v1208_v18 = vld [vmem:[#allocation3 + $0x88] sm:$0xff]  ;;  %vm3725_vm3 = vcmask 1024  }
 0x26e   : > { %v1327_v23 = vand.u32 4294901760, %v4887_v34  ;;  %v1321_v6 = vand.u32 4294901760, %v1208_v18 }
 0x26f   : > { %v4900_v45 = vpop.permute.xlu0 %1081  ;;  %v4902_v46 = vpack.c.bf16 %v1309_v15, %v1305_v36  ;;  %v4904_v47 = vsub.f32 %v1200_v20, %v1305_v36  ;;  %v4921_v20 = vand.u32 4294901760, %v4894_v37  ;;  %v4147_v15 = vpack.c.bf16 %v4877_v10, %v4896_v38 }
 0x270   : > { %v1130_v4 = vpop.permute.xlu1 %1129  ;;  %v4937_v36 = vsub.f32 %v1205_v17, %v1319_v40  ;;  %v4950_v43 = vpack.c.bf16 %v1319_v40, %v1315_v13  ;;  %v4953_v30 = vsub.f32 %v4796_v54, %v1315_v13  ;;  %v6964_v40 = vand.u32 4294901760, %v4880_v12 }
 0x271   : > { %6954 = vst [vmem:[#allocation19_spill] sm:$0xff] %v4902_v46  ;;  %6955 = vst [vmem:[#allocation20_spill] sm:$0xff] %v4904_v47  ;;  %4058 = vmatprep.subr.bf16.mxu0 %v4902_v46  ;;  %v4145_v60 = vpack.c.bf16 %v4906_v53, %v4904_v47 }
 0x272   : > { %6958 = vst [vmem:[#allocation23_spill] sm:$0xff] %v4921_v20  ;;  %1149 = vst.msk [vmem:[#allocation3 + $0x118] sm:$0xf0] %vm986_vm15, %v1130_v4  ;;  %4060 = vmatpush1.bf16.msra.mxu0 %v4912_v50  ;;  %v4151_v13 = vpack.c.bf16 %v4937_v36, %v4953_v30 }
 0x273   : > { %v1128_v27 = vpop.permute.xlu0 %1127  ;;  %4062 = vmatprep.subr.bf16.mxu0 %v4925_v59  ;;  %4146 = vmatprep.subr.bf16.mxu1 %v4145_v60  ;;  %6962 = vst [vmem:[#allocation27_spill] sm:$0xff] %v4950_v43  ;;  %v4992_v59 = vsub.f32 %v4810_v9, %v1323_v52 }
 0x274   : > { %v1139_v17 = vsel %vm287_vm9, %v1128_v27, %v1130_v4  ;;  %v1134_v44 = vpop.permute.xlu1 %1133  ;;  %4148 = vmatpush1.bf16.msra.mxu1 %v4147_v15  ;;  %v1210_v60 = vld [vmem:[#allocation3 + $0x98] sm:$0xff]  ;;  %v4960_v27 = vsub.f32 %v4877_v10, %v6963_v3  ;;  %v4965_v4 = vsub.f32 %v4880_v12, %v6964_v40  ;;  %v4972_v15 = vsub.f32 %v4910_v57, %v1333_v16 }
 0x275   : > { %1148 = vst [vmem:[#allocation3 + $0x110] sm:$0xf0] %v1139_v17  ;;  %1151 = vst.msk [vmem:[#allocation3 + $0x128] sm:$0xff] %vm940_vm11, %v1134_v44  ;;  %4150 = vmatprep.subr.bf16.mxu1 %v4149_v8  ;;  %v1325_v11 = vand.u32 4294901760, %v1210_v60  ;;  %v4975_v8 = vsub.f32 %v4887_v34, %v1327_v23  ;;  %v1335_v3 = vand.u32 4294901760, %v4800_v58  ;;  %v1218_v17 = vld [vmem:[#allocation3 + $0xd8] sm:$0xff]  ;;  %v4980_v40 = vsub.f32 %v1208_v18, %v1321_v6 }
 0x276   : > { %4064 = vmatpush1.bf16.msra.mxu0 %v4950_v43  ;;  %6965 = vst [vmem:[#allocation28_spill] sm:$0xff] %v4972_v15  ;;  %v4987_v43 = vpack.c.bf16 %v1327_v23, %v1323_v52  ;;  %v4989_v34 = vsub.f32 %v1212_v0, %v1329_v35  ;;  %v1341_v23 = vand.u32 4294901760, %v1218_v17  ;;  %v1339_v52 = vand.u32 4294901760, %v1215_v26 }
 0x277   : > { %6966 = vst [vmem:[#allocation29_spill] sm:$0xff] %v4975_v8  ;;  %v1132_v10 = vpop.permute.xlu0 %1131  ;;  %v4978_v49 = vpack.c.bf16 %v1325_v11, %v1321_v6  ;;  %v4982_v54 = vsub.f32 %v1210_v60, %v1325_v11  ;;  %v5000_v11 = vpack.c.bf16 %v1333_v16, %v1329_v35  ;;  %v4155_v0 = vpack.c.bf16 %v4975_v8, %v4992_v59 }
 0x278   : > { %v4985_v25 = vsel %vm287_vm9, %v1132_v10, %v1134_v44  ;;  %v1084_v57 = vpop.permute.xlu1 %1083  ;;  %4152 = vmatpush1.bf16.msra.mxu1 %v4151_v13  ;;  %6968 = vst [vmem:[#allocation31_spill] sm:$0xff] %v4987_v43  ;;  %v5008_v9 = vsub.f32 %v4800_v58, %v1335_v3  ;;  %v5012_v44 = vsub.f32 %v4894_v37, %v4921_v20  ;;  %v1351_v58 = vand.u32 4294901760, %v4786_v42 }
 0x279   : > { %6967 = vst [vmem:[#allocation30_spill] sm:$0xff] %v4978_v49  ;;  %v4996_v18 = vsel %vm269_vm6, %v4900_v45, %v1084_v57  ;;  %1099 = vst.msk [vmem:[#allocation3 + $0xe8] sm:$0xff] %vm940_vm11, %v1084_v57  ;;  %4066 = vmatprep.subr.bf16.mxu0 %v4978_v49  ;;  %v4153_v10 = vpack.c.bf16 %v4982_v54, %v4980_v40  ;;  %v1188_v45 = vld [vmem:[%s6821_s3 + $0x38] sm:$0xff]  ;;  %v4157_v6 = vpack.c.bf16 %v4972_v15, %v4989_v34 }
 0x27a   : > { %6969 = vst [vmem:[#allocation32_spill] sm:$0xff] %v5000_v11  ;;  %4068 = vmatpush1.bf16.msra.mxu0 %v4987_v43  ;;  %v5020_v35 = vsub.f32 %v1216_v56, %v1337_v31  ;;  %v6971_v37 = vand.u32 4294901760, %v4782_v39  ;;  %v1343_v20 = vand.u32 4294901760, %v4814_v19  ;;  %v1222_v43 = vld [vmem:[#allocation3 + $0xf8] sm:$0xff]  ;;  %v5032_v56 = vpack.c.bf16 %v1341_v23, %v1337_v31  ;;  %v1224_v31 = vld [vmem:[#allocation3 + $0x108] sm:$0xff] }
 0x27b   : > { %v1136_v16 = vpop.permute.xlu0 %1135  ;;  %4070 = vmatprep.subr.bf16.mxu0 %v5000_v11  ;;  %4154 = vmatprep.subr.bf16.mxu1 %v4153_v10  ;;  %v1226_v11 = vld [vmem:[#allocation3 + $0x118] sm:$0xff]  ;;  %v5034_v60 = vsub.f32 %v1218_v17, %v1341_v23  ;;  %v5045_v10 = vsub.f32 %v1215_v26, %v1339_v52  ;;  %v1349_v49 = vand.u32 4294901760, %v1222_v43 }
 0x27c   : > { %6970 = vst [vmem:[#allocation33_spill] sm:$0xff] %v5020_v35  ;;  %v1157_v13 = vpop.permute.xlu1 %1156  ;;  %4156 = vmatpush1.bf16.msra.mxu1 %v4155_v0  ;;  %v5026_v57 = vpack.c.bf16 %v1335_v3, %v6971_v37  ;;  %6973 = vst [vmem:[#allocation35_spill] sm:$0xff] %v5032_v56  ;;  %v6975_v0 = vand.u32 4294901760, %v4932_v7  ;;  %v1278_v3 = vsel %vm1267_vm14, %v1188_v45, 0  ;;  %v4159_v37 = vpack.c.bf16 %v5008_v9, %v4947_v21  ;;  %v1225_v50 = vld [vmem:[#allocation3 + $0x110] sm:$0xff] }
 0x27d   : > { %1176 = vst.msk [vmem:[#allocation3 + $0x148] sm:$0xff] %vm940_vm11, %v1157_v13  ;;  %4158 = vmatprep.subr.bf16.mxu1 %v4157_v6  ;;  %6974 = vst [vmem:[#allocation36_spill] sm:$0xff] %v5034_v60  ;;  %v1347_v6 = vand.u32 4294901760, %v4996_v18  ;;  %v1357_v45 = vand.u32 4294901760, %v1226_v11  ;;  %v5058_v21 = vpack.c.bf16 %v1343_v20, %v1339_v52  ;;  %v5061_v17 = vsub.f32 %v4814_v19, %v1343_v20 }
 0x27e   : > { %6972 = vst [vmem:[#allocation34_spill] sm:$0xff] %v5026_v57  ;;  %v5039_v39 = vsub.f32 %v4932_v7, %v6975_v0  ;;  %4072 = vmatpush1.bf16.msra.mxu0 %v5026_v57  ;;  %6976 = vst [vmem:[#allocation37_spill] sm:$0xff] %v5045_v10  ;;  %v4161_v0 = vpack.c.bf16 %v5034_v60, %v5020_v35  ;;  %v5053_v57 = vsub.f32 %v4786_v42, %v1351_v58 }
 0x27f   : > { %v1155_v23 = vpop.permute.xlu0 %1154  ;;  %4074 = vmatprep.subr.bf16.mxu0 %v5032_v56  ;;  %6978 = vst [vmem:[#allocation39_spill] sm:$0xff] %v5058_v21  ;;  %6979 = vst [vmem:[#allocation40_spill] sm:$0xff] %v5061_v17  ;;  %v5063_v46 = vand.u32 4294901760, %v1278_v3  ;;  %v1353_v35 = vand.u32 4294901760, %v1224_v31  ;;  %v4163_v52 = vpack.c.bf16 %v5061_v17, %v5045_v10  ;;  %v5074_v19 = vsub.f32 %v4996_v18, %v1347_v6 }
 0x280   : > { %6977 = vst [vmem:[#allocation38_spill] sm:$0xff] %v5053_v57  ;;  %v5056_v26 = vsel %vm296_vm2, %v1155_v23, %v1157_v13  ;;  %v1138_v7 = vpop.permute.xlu1 %1137  ;;  %4160 = vmatpush1.bf16.msra.mxu1 %v4159_v37  ;;  %v1220_v56 = vld [vmem:[#allocation3 + $0xe8] sm:$0xff]  ;;  %v1359_v20 = vand.u32 4294901760, %v1225_v50  ;;  %v5083_v32 = vsub.f32 %v1226_v11, %v1357_v45  ;;  %v5088_v18 = vpack.c.bf16 %v1351_v58, %v1347_v6 }
 0x281   : > { %6980 = vst [vmem:[#allocation41_spill] sm:$0xff] %v5063_v46  ;;  %v5066_v60 = vsel %vm287_vm9, %v1136_v16, %v1138_v7  ;;  %1153 = vst.msk [vmem:[#allocation3 + $0x138] sm:$0xff] %vm940_vm11, %v1138_v7  ;;  %4162 = vmatprep.subr.bf16.mxu1 %v4161_v0  ;;  %v1345_v42 = vand.u32 4294901760, %v1220_v56  ;;  %v5081_v0 = vsub.f32 %v1222_v43, %v1349_v49  ;;  %v1190_v13 = vld [vmem:[%s6821_s3 + $0x48] sm:$0xff]  ;;  %v1355_v17 = vand.u32 4294901760, %v4804_v61  ;;  %v1187_v43 = vld [vmem:[%s6821_s3 + $0x30] sm:$0xff] }
 0x282   : > { %4076 = vmatpush1.bf16.msra.mxu0 %v5058_v21  ;;  %6981 = vst [vmem:[#allocation42_spill] sm:$0xff] %v5074_v19  ;;  %6985 = vst [vmem:[#allocation46_spill] sm:$0xff] %v5083_v32  ;;  %v1228_v37 = vld [vmem:[#allocation3 + $0x128] sm:$0xff]  ;;  %v6987_v10 = vand.u32 4294901760, %v5012_v44  ;;  %v5107_v58 = vpack.c.bf16 %v1357_v45, %v1353_v35  ;;  %v5109_v6 = vsub.f32 %v1224_v31, %v1353_v35  ;;  %v6991_v45 = vand.u32 4294901760, %v4906_v53 }
 0x283   : > { %v1159_v16 = vpop.permute.xlu0 %1158  ;;  %v5077_v23 = vpack.c.bf16 %v1349_v49, %v1345_v42  ;;  %v5079_v7 = vsub.f32 %v1220_v56, %v1345_v42  ;;  %6984 = vst [vmem:[#allocation45_spill] sm:$0xff] %v5081_v0  ;;  %6986 = vst [vmem:[#allocation47_spill] sm:$0xff] %v5088_v18  ;;  %v5097_v49 = vsub.f32 %v1278_v3, %v5063_v46  ;;  %v1361_v31 = vand.u32 4294901760, %v1228_v37 }
 0x284   : > { %v1161_v21 = vpop.permute.xlu1 %1160  ;;  %4164 = vmatpush1.bf16.msra.mxu1 %v4163_v52  ;;  %v5094_v56 = vsub.f32 %v5012_v44, %v6987_v10  ;;  %6988 = vst [vmem:[#allocation48_spill] sm:$0xff] %v5107_v58  ;;  %6989 = vst [vmem:[#allocation49_spill] sm:$0xff] %v5109_v6  ;;  %v4167_v3 = vpack.c.bf16 %v5053_v57, %v5074_v19  ;;  %v5116_v42 = vsub.f32 %v1225_v50, %v1359_v20  ;;  %v1232_v57 = vld [vmem:[#allocation3 + $0x148] sm:$0xff] }
 0x285   : > { %6982 = vst [vmem:[#allocation43_spill] sm:$0xff] %v5077_v23  ;;  %6983 = vst [vmem:[#allocation44_spill] sm:$0xff] %v5079_v7  ;;  %v5103_v11 = vsel %vm296_vm2, %v1159_v16, %v1161_v21  ;;  %4078 = vmatprep.subr.bf16.mxu0 %v5077_v23  ;;  %v4165_v10 = vpack.c.bf16 %v5081_v0, %v5079_v7  ;;  %v1367_v52 = vand.u32 4294901760, %v5066_v60  ;;  %v5130_v50 = vand.u32 4294901760, %v1187_v43 }
 0x286   : > { %1178 = vst.msk [vmem:[#allocation3 + $0x158] sm:$0xff] %vm940_vm11, %v1161_v21  ;;  %4080 = vmatpush1.bf16.msra.mxu0 %v5088_v18  ;;  %6990 = vst [vmem:[#allocation50_spill] sm:$0xff] %v5116_v42  ;;  %v5120_v21 = vsel %vm1267_vm14, %v1190_v13, 0  ;;  %v4169_v35 = vpack.c.bf16 %v5083_v32, %v5109_v6  ;;  %v5128_v46 = vsub.f32 %v4906_v53, %v6991_v45  ;;  %v1369_v53 = vand.u32 4294901760, %v1232_v57 }
 0x287   : > { %v1163_v16 = vpop.permute.xlu0 %1162  ;;  %4082 = vmatprep.subr.bf16.mxu0 %v5107_v58  ;;  %4166 = vmatprep.subr.bf16.mxu1 %v4165_v10  ;;  %6992 = vst [vmem:[#allocation51_spill] sm:$0xff] %v5130_v50  ;;  %v5132_v23 = vpack.c.bf16 %v1359_v20, %v1355_v17  ;;  %v5135_v13 = vsub.f32 %v4804_v61, %v1355_v17  ;;  %v1363_v10 = vand.u32 4294901760, %v4985_v25  ;;  %v5143_v20 = vand.u32 4294901760, %v5120_v21 }
 0x288   : > { %v1165_v18 = vpop.permute.xlu1 %1164  ;;  %4168 = vmatpush1.bf16.msra.mxu1 %v4167_v3  ;;  %v1230_v58 = vld [vmem:[#allocation3 + $0x138] sm:$0xff]  ;;  %v5149_v17 = vsub.f32 %v5066_v60, %v1367_v52  ;;  %v1375_v3 = vand.u32 4294901760, %v5103_v11  ;;  %v1371_v60 = vand.u32 4294901760, %v5056_v26 }
 0x289   : > { %6993 = vst [vmem:[#allocation52_spill] sm:$0xff] %v5132_v23  ;;  %6994 = vst [vmem:[#allocation53_spill] sm:$0xff] %v5135_v13  ;;  %v1168_v32 = vsel %vm296_vm2, %v1163_v16, %v1165_v18  ;;  %4170 = vmatprep.subr.bf16.mxu1 %v4169_v35  ;;  %v1365_v45 = vand.u32 4294901760, %v1230_v58  ;;  %v4171_v61 = vpack.c.bf16 %v5116_v42, %v5135_v13  ;;  %vm3722_vm2 = vcmask 7168  }
 0x28a   : > { %1180 = vst.msk [vmem:[#allocation3 + $0x168] sm:$0xf] %vm945_vm12, %v1165_v18  ;;  %6995 = vst [vmem:[#allocation54_spill] sm:$0xff] %v5143_v20  ;;  %4084 = vmatpush1.bf16.msra.mxu0 %v5132_v23  ;;  %v6906_v18 = vand.u32 4294901760, %v4826_v29  ;;  %v5155_v35 = vsub.f32 %v1228_v37, %v1361_v31  ;;  %v5162_v23 = vsub.f32 %v4985_v25, %v1363_v10  ;;  %v1189_v25 = vld [vmem:[%s6821_s3 + $0x40] sm:$0xff] }
 0x28b   : > { %1179 = vst [vmem:[#allocation3 + $0x160] sm:$0xf] %v1168_v32  ;;  %6996 = vst [vmem:[#allocation55_spill] sm:$0xff] %v5149_v17  ;;  %v5153_v16 = vpack.c.bf16 %v1365_v45, %v1361_v31  ;;  %v5157_v6 = vsub.f32 %v1230_v58, %v1365_v45  ;;  %v5159_v32 = vpack.c.bf16 %v1367_v52, %v1363_v10 }
 0x28c   : > { %4172 = vmatpush1.bf16.msra.mxu1 %v4171_v61  ;;  %7000 = vst [vmem:[#allocation59_spill] sm:$0xff] %v5162_v23  ;;  %v4175_v52 = vpack.c.bf16 %v5149_v17, %v5162_v23  ;;  %v5178_v10 = vsub.f32 %v5103_v11, %v1375_v3  ;;  %v1519_v61 = vsub.f32 %v4826_v29, %v6906_v18 }
 0x28d   : > { %6997 = vst [vmem:[#allocation56_spill] sm:$0xff] %v5153_v16  ;;  %6998 = vst [vmem:[#allocation57_spill] sm:$0xff] %v5157_v6  ;;  %v1234_v13 = vld [vmem:[#allocation3 + $0x158] sm:$0xff]  ;;  %4086 = vmatprep.subr.bf16.mxu0 %v5153_v16  ;;  %v4173_v37 = vpack.c.bf16 %v5157_v6, %v5155_v35  ;;  %v5184_v42 = vsub.f32 %v1187_v43, %v5130_v50  ;;  %v5188_v58 = vsub.f32 %v1232_v57, %v1369_v53 }
 0x28e   : > { %6999 = vst [vmem:[#allocation58_spill] sm:$0xff] %v5159_v32  ;;  %v1373_v31 = vand.u32 4294901760, %v1234_v13  ;;  %4088 = vmatpush1.bf16.msra.mxu0 %v5159_v32  ;;  %v5193_v23 = vpack.c.bf16 %v1375_v3, %v1371_v60  ;;  %v5196_v17 = vsub.f32 %v5056_v26, %v1371_v60  ;;  %v5199_v43 = vand.u32 4294901760, %v1189_v25 }
 0x28f   : > { %4174 = vmatprep.subr.bf16.mxu1 %v4173_v37  ;;  %v7002_v37 = vand.u32 4294901760, %v4824_v28  ;;  %v1520_v50 = vand.u32 4294901760, %v1519_v61  ;;  %v5234_v61 = vsub.f32 %v5120_v21, %v5143_v20  ;;  %v6916_v21 = vand.u32 4294901760, %v4937_v36 }
 0x290   : > { %v5186_v45 = vpack.c.bf16 %v1373_v31, %v1369_v53  ;;  %v5190_v16 = vsub.f32 %v1234_v13, %v1373_v31  ;;  %4176 = vmatpush1.bf16.msra.mxu1 %v4175_v52  ;;  %7001 = vst [vmem:[#allocation60_spill] sm:$0xff] %v5199_v43  ;;  %v7003_v31 = vand.u32 4294901760, %v4820_v22  ;;  %v4179_v52 = vpack.c.bf16 %v5178_v10, %v5196_v17 }
 0x291   : > { %v1236_v11 = vld [vmem:[#allocation3 + $0x168] sm:$0xf]  ;;  %v1507_v3 = vsub.f32 %v4824_v28, %v7002_v37  ;;  %v7004_v37 = vand.u32 4294901760, %v4904_v47 }
 0x292   : > { %4090 = vmatprep.subr.bf16.mxu0 %v5186_v45  ;;  %v4177_v53 = vpack.c.bf16 %v5190_v16, %v5188_v58  ;;  %v1287_v57 = vsel %vm953_vm13, %v1236_v11, 0  ;;  %v1235_v13 = vld [vmem:[#allocation3 + $0x160] sm:$0xf]  ;;  %v1525_v26 = vsub.f32 %v4820_v22, %v7003_v31 }
 0x293   : > { %4092 = vmatpush1.bf16.msra.mxu0 %v5193_v23  ;;  %v5212_v60 = vand.u32 4294901760, %v1287_v57  ;;  %v1284_v18 = vsel %vm953_vm13, %v1235_v13, 0  ;;  %v1531_v29 = vsub.f32 %v4904_v47, %v7004_v37  ;;  %v7005_v13 = vand.u32 4294901760, %v4830_v33 }
 0x294   : > { %4178 = vmatprep.subr.bf16.mxu1 %v4177_v53  ;;  %v5218_v32 = vand.u32 4294901760, %v1284_v18  ;;  %v1508_v31 = vand.u32 4294901760, %v1507_v3  ;;  %v7007_v3 = vand.u32 4294901760, %v4868_v62 }
 0x295   : > { %1378 = vmatprep.subr.mxu0 %v5212_v60  ;;  %4180 = vmatpush1.bf16.msra.mxu1 %v4179_v52  ;;  %v5226_v22 = vsub.f32 %v1287_v57, %v5212_v60  ;;  %v1513_v11 = vsub.f32 %v4830_v33, %v7005_v13  ;;  %v5241_v52 = vsub.f32 %v1189_v25, %v5199_v43  ;;  %v1526_v57 = vand.u32 4294901760, %v1525_v26 }
 0x296   : > { %v5237_v37 = vsub.f32 %v1284_v18, %v5218_v32  ;;  %v7006_v13 = vand.u32 4294901760, %v4896_v38  ;;  %v4097_v25 = vpack.c.bf16 %v1520_v50, %v1508_v31  ;;  %v1532_v47 = vand.u32 4294901760, %v1531_v29 }
 0x297   : > { %1380 = vmatpush1.msra.mxu0 %v5218_v32  ;;  %1949 = vmatprep.subr.mxu1 %v5226_v22  ;;  %v7008_v43 = vand.u32 4294901760, %v4908_v55  ;;  %v7010_v29 = vand.u32 4294901760, %v4927_v51  ;;  %v7011_v31 = vand.u32 4294901760, %v5184_v42  ;;  %v6918_v50 = vand.u32 4294901760, %v4975_v8 }
 0x298   : > { %v1537_v53 = vsub.f32 %v4896_v38, %v7006_v13  ;;  %4094 = vmatprep.subr.bf16.mxu0 %v4682_v14  ;;  %1410 = vmatmul.mubr.f32.vlgmr.msra.gmra.mrb[6].mxu0 %v7007_v3  ;;  %v1514_v13 = vand.u32 4294901760, %v1513_v11  ;;  %v7009_v14 = vand.u32 4294901760, %v5097_v49  ;;  %v7014_v3 = vand.u32 4294901760, %v4982_v54 }
 0x299   : > { %v1567_v20 = vsub.f32 %v4908_v55, %v7008_v43  ;;  %4096 = vmatpush1.bf16.msra.mxu0 %v4666_v1  ;;  %1952 = vmatpush1.msra.mxu1 %v5237_v37  ;;  %v1555_v43 = vsub.f32 %v4927_v51, %v7010_v29  ;;  %v1456_v11 = vsub.f32 %v5184_v42, %v7011_v31  ;;  %v7012_v29 = vand.u32 4294901760, %v4918_v48 }
 0x29a   : > { %v1450_v62 = vsub.f32 %v5097_v49, %v7009_v14  ;;  %4098 = vmatprep.subr.bf16.mxu0 %v4097_v25  ;;  %4182 = vmatprep.subr.bf16.mxu1 %v4668_v2  ;;  %v4099_v14 = vpack.c.bf16 %v1526_v57, %v1514_v13  ;;  %v1538_v18 = vand.u32 4294901760, %v1537_v53  ;;  %v1573_v25 = vsub.f32 %v4937_v36, %v6916_v21 }
 0x29b   : > { %1976 = vmatmul.mubr.f32.vlgmr.msra.gmra.mrb[0].mxu1 %v4846_v41  ;;  %1420 = vmatprep.mubr.f32.mxu0 %v7012_v29  ;;  %v7013_v1 = vand.u32 4294901760, %v5128_v46  ;;  %v1568_v26 = vand.u32 4294901760, %v1567_v20  ;;  %v1591_v57 = vsub.f32 %v4982_v54, %v7014_v3  ;;  %v7015_v13 = vand.u32 4294901760, %v4965_v4 }
 0x29c   : > { %4184 = vmatpush1.bf16.msra.mxu1 %v4672_v5  ;;  %v7016_v48 = vand.u32 4294901760, %v4953_v30  ;;  %v7017_v20 = vand.u32 4294901760, %v5234_v61  ;;  %v1556_v3 = vand.u32 4294901760, %v1555_v43  ;;  %v7018_v21 = vand.u32 4294901760, %v4980_v40  ;;  %1983 = vmatprep.mubr.f32.mxu1 %v4871_v63 }
 0x29d   : > { %v4101_v31 = vpack.c.bf16 %v7013_v1, %v1532_v47  ;;  %1426 = vmatmul.mubr.f32.gmra.mrb[8].mxu0 %v7015_v13  ;;  %4186 = vmatprep.subr.bf16.mxu1 %v4822_v24  ;;  %v1451_v47 = vand.u32 4294901760, %v1450_v62  ;;  %v7019_v13 = vand.u32 4294901760, %v5241_v52  ;;  %v7020_v46 = vand.u32 4294901760, %v4960_v27 }
 0x29e   : > { %4100 = vmatpush1.bf16.msra.mxu0 %v4099_v14  ;;  %v1561_v29 = vsub.f32 %v4953_v30, %v7016_v48  ;;  %v1466_v1 = vsub.f32 %v5234_v61, %v7017_v20  ;;  %v1579_v4 = vsub.f32 %v4980_v40, %v7018_v21  ;;  %v1457_v14 = vand.u32 4294901760, %v1456_v11  ;;  %v7022_v21 = vld [vmem:[#allocation13_spill] sm:$0xff] }
 0x29f   : > { %4102 = vmatprep.subr.bf16.mxu0 %v4101_v31  ;;  %v1472_v48 = vsub.f32 %v5241_v52, %v7019_v13  ;;  %v4103_v62 = vpack.c.bf16 %v7020_v46, %v1538_v18  ;;  %v1574_v53 = vand.u32 4294901760, %v1573_v25  ;;  %v1597_v31 = vsub.f32 %v4975_v8, %v6918_v50  ;;  %1986 = vmatmul.mubr.f32.gmra.mrb[2].mxu1 %v4880_v12  ;;  %v7024_v18 = vld [vmem:[#allocation33_spill] sm:$0xff]  ;;  %v7026_v50 = vld [vmem:[#allocation19_spill] sm:$0xff]  ;;  %v7030_v25 = vld [vmem:[#allocation36_spill] sm:$0xff] }
 0x2a0   : > { %v7021_v20 = vand.u32 4294901760, %v5039_v39  ;;  %4188 = vmatpush1.bf16.msra.mxu1 %v7022_v21  ;;  %v4105_v11 = vpack.c.bf16 %v1568_v26, %v1556_v3  ;;  %v1592_v24 = vand.u32 4294901760, %v1591_v57  ;;  %v7023_v13 = vand.u32 4294901760, %v4972_v15  ;;  %v7029_v3 = vld [vmem:[#allocation26_spill] sm:$0xff] }
 0x2a1   : > { %v7025_v46 = vand.u32 4294901760, %v5094_v56  ;;  %4190 = vmatprep.subr.bf16.mxu1 %v7026_v50  ;;  %v1562_v39 = vand.u32 4294901760, %v1561_v29  ;;  %v7028_v26 = vand.u32 4294901760, %v4989_v34  ;;  %v6923_v21 = vand.u32 4294901760, %v7029_v3  ;;  %v7031_v56 = vld [vmem:[#allocation25_spill] sm:$0xff] }
 0x2a2   : > { %1436 = vmatprep.mubr.f32.mxu0 %v7021_v20  ;;  %v1615_v27 = vsub.f32 %v4972_v15, %v7023_v13  ;;  %4104 = vmatpush1.bf16.msra.mxu0 %v4103_v62  ;;  %v7027_v20 = vand.u32 4294901760, %v4992_v59  ;;  %v1580_v13 = vand.u32 4294901760, %v1579_v4  ;;  %v1473_v50 = vand.u32 4294901760, %v1472_v48  ;;  %v7033_v15 = vld [vmem:[#allocation37_spill] sm:$0xff]  ;;  %v7036_v48 = vld [vmem:[#allocation24_spill] sm:$0xff] }
 0x2a3   : > { %1442 = vmatmul.mubr.f32.gmra.mrb[10].mxu0 %v7025_v46  ;;  %v1603_v57 = vsub.f32 %v4989_v34, %v7028_v26  ;;  %4106 = vmatprep.subr.bf16.mxu0 %v4105_v11  ;;  %v1467_v46 = vand.u32 4294901760, %v1466_v1  ;;  %v4107_v62 = vpack.c.bf16 %v1574_v53, %v1562_v39  ;;  %v1598_v29 = vand.u32 4294901760, %v1597_v31  ;;  %v7034_v26 = vld [vmem:[#allocation22_spill] sm:$0xff]  ;;  %v7037_v31 = vld [vmem:[#allocation40_spill] sm:$0xff] }
 0x2a4   : > { %v1585_v43 = vsub.f32 %v4992_v59, %v7027_v20  ;;  %1993 = vmatprep.mubr.f32.mxu1 %v7031_v56  ;;  %v7032_v2 = vand.u32 4294901760, %v5008_v9  ;;  %v6924_v8 = vand.u32 4294901760, %v7033_v15  ;;  %1452 = vmatprep.mubr.f32.mxu0 %v1451_v47  ;;  %v4109_v4 = vpack.c.bf16 %v1592_v24, %v1580_v13  ;;  %v7041_v39 = vld [vmem:[#allocation46_spill] sm:$0xff] }
 0x2a5   : > { %1996 = vmatmul.mubr.f32.gmra.mrb[4].mxu1 %v5012_v44  ;;  %v1616_v11 = vand.u32 4294901760, %v1615_v27  ;;  %v7035_v5 = vand.u32 4294901760, %v7024_v18  ;;  %v1609_v47 = vsub.f32 %v7029_v3, %v6923_v21  ;;  %v1604_v24 = vand.u32 4294901760, %v1603_v57  ;;  %v7039_v57 = vld [vmem:[#allocation27_spill] sm:$0xff] }
 0x2a6   : > { %v1621_v20 = vsub.f32 %v5008_v9, %v7032_v2  ;;  %4192 = vmatpush1.bf16.msra.mxu1 %v7034_v26  ;;  %4108 = vmatpush1.bf16.msra.mxu0 %v4107_v62  ;;  %v1586_v2 = vand.u32 4294901760, %v1585_v43  ;;  %v7038_v27 = vand.u32 4294901760, %v7030_v25  ;;  %v1633_v43 = vsub.f32 %v7033_v15, %v6924_v8  ;;  %v7044_v62 = vld [vmem:[#allocation38_spill] sm:$0xff]  ;;  %v7049_v26 = vld [vmem:[#allocation8_spill] sm:$0xff] }
 0x2a7   : > { %v1627_v1 = vsub.f32 %v7024_v18, %v7035_v5  ;;  %1458 = vmatmul.mubr.f32.gmra.mrb[12].mxu0 %v1457_v14  ;;  %4194 = vmatprep.subr.bf16.mxu1 %v7036_v48  ;;  %v7043_v8 = vand.u32 4294901760, %v7037_v31 }
 0x2a8   : > { %4110 = vmatprep.subr.bf16.mxu0 %v4109_v4  ;;  %v1639_v13 = vsub.f32 %v7030_v25, %v7038_v27  ;;  %2003 = vmatprep.mubr.f32.mxu1 %v5097_v49  ;;  %v4111_v14 = vpack.c.bf16 %v1598_v29, %v1586_v2  ;;  %v1622_v53 = vand.u32 4294901760, %v1621_v20  ;;  %v4113_v4 = vpack.c.bf16 %v1616_v11, %v1604_v24  ;;  %v7042_v20 = vld [vmem:[#allocation30_spill] sm:$0xff] }
 0x2a9   : > { %1468 = vmatprep.mubr.f32.mxu0 %v1467_v46  ;;  %2006 = vmatmul.mubr.f32.gmra.mrb[6].mxu1 %v5184_v42  ;;  %v1628_v21 = vand.u32 4294901760, %v1627_v1  ;;  %v7040_v27 = vand.u32 4294901760, %v5079_v7  ;;  %v1610_v2 = vand.u32 4294901760, %v1609_v47  ;;  %v1645_v46 = vsub.f32 %v7037_v31, %v7043_v8 }
 0x2aa   : > { %4196 = vmatpush1.bf16.msra.mxu1 %v7039_v57  ;;  %4112 = vmatpush1.bf16.msra.mxu0 %v4111_v14  ;;  %v1640_v11 = vand.u32 4294901760, %v1639_v13  ;;  %v7045_v1 = vand.u32 4294901760, %v5081_v0  ;;  %v1634_v29 = vand.u32 4294901760, %v1633_v43  ;;  %v7047_v47 = vand.u32 4294901760, %v5074_v19  ;;  %v7050_v13 = vld [vmem:[#allocation31_spill] sm:$0xff]  ;;  %v7052_v43 = vld [vmem:[#allocation9_spill] sm:$0xff] }
 0x2ab   : > { %v1651_v5 = vsub.f32 %v5079_v7, %v7040_v27  ;;  %1474 = vmatmul.mubr.f32.gmra.mrb[14].mxu0 %v1473_v50  ;;  %4198 = vmatprep.subr.bf16.mxu1 %v7042_v20  ;;  %v7046_v27 = vld [vmem:[#allocation49_spill] sm:$0xff]  ;;  %v4115_v50 = vpack.c.bf16 %v1622_v53, %v1610_v2  ;;  %v7048_v20 = vld [vmem:[#allocation50_spill] sm:$0xff]  ;;  %v7051_v57 = vand.u32 4294901760, %v7041_v39  ;;  %v7053_v2 = vand.u32 4294901760, %v7052_v43 }
 0x2ac   : > { %4114 = vmatprep.subr.bf16.mxu0 %v4113_v4  ;;  %v1663_v24 = vsub.f32 %v5081_v0, %v7045_v1  ;;  %2013 = vmatprep.mubr.f32.mxu1 %v5234_v61  ;;  %v1657_v14 = vsub.f32 %v5074_v19, %v7047_v47  ;;  %v4117_v4 = vpack.c.bf16 %v1640_v11, %v1628_v21  ;;  %v7054_v47 = vld [vmem:[#allocation32_spill] sm:$0xff]  ;;  %v1646_v8 = vand.u32 4294901760, %v1645_v46  ;;  %v7060_v7 = vld [vmem:[#allocation34_spill] sm:$0xff] }
 0x2ad   : > { %1775 = vmatprep.mubr.f32.mxu0 %v7049_v26  ;;  %2016 = vmatmul.mubr.f32.gmra.mrb[8].mxu1 %v5241_v52  ;;  %v1652_v1 = vand.u32 4294901760, %v1651_v5  ;;  %v1687_v48 = vsub.f32 %v7041_v39, %v7051_v57  ;;  %v7055_v19 = vand.u32 4294901760, %v7044_v62  ;;  %v7057_v11 = vand.u32 4294901760, %v7046_v27 }
 0x2ae   : > { %4200 = vmatpush1.bf16.msra.mxu1 %v7050_v13  ;;  %2135 = vmatprep.mubr.f32.mxu1 %v7053_v2  ;;  %v7056_v13 = vld [vmem:[#allocation53_spill] sm:$0xff]  ;;  %v1664_v5 = vand.u32 4294901760, %v1663_v24  ;;  %v4119_v43 = vpack.c.bf16 %v1646_v8, %v1634_v29  ;;  %v1658_v2 = vand.u32 4294901760, %v1657_v14  ;;  %v7061_v24 = vand.u32 4294901760, %v5157_v6 }
 0x2af   : > { %4202 = vmatprep.subr.bf16.mxu1 %v7054_v47  ;;  %4116 = vmatpush1.bf16.msra.mxu0 %v4115_v50  ;;  %v1669_v0 = vsub.f32 %v7044_v62, %v7055_v19  ;;  %v1675_v57 = vsub.f32 %v7046_v27, %v7057_v11  ;;  %v7058_v47 = vand.u32 4294901760, %v7048_v20  ;;  %v7059_v50 = vld [vmem:[#allocation55_spill] sm:$0xff]  ;;  %v1688_v21 = vand.u32 4294901760, %v1687_v48 }
 0x2b0   : > { %4118 = vmatprep.subr.bf16.mxu0 %v4117_v4  ;;  %v4121_v19 = vpack.c.bf16 %v1664_v5, %v1652_v1  ;;  %v1711_v4 = vsub.f32 %v5157_v6, %v7061_v24  ;;  %v7062_v27 = vld [vmem:[#allocation35_spill] sm:$0xff]  ;;  %v7063_v14 = vand.u32 4294901760, %v7056_v13  ;;  %v7065_v48 = vand.u32 4294901760, %v5155_v35 }
 0x2b1   : > { %v1693_v46 = vsub.f32 %v7048_v20, %v7058_v47  ;;  %v1670_v29 = vand.u32 4294901760, %v1669_v0  ;;  %v7064_v47 = vld [vmem:[#allocation59_spill] sm:$0xff]  ;;  %v1676_v53 = vand.u32 4294901760, %v1675_v57  ;;  %v6932_v5 = vand.u32 4294901760, %v5188_v58 }
 0x2b2   : > { %4204 = vmatpush1.bf16.msra.mxu1 %v7060_v7  ;;  %v1681_v8 = vsub.f32 %v7056_v13, %v7063_v14  ;;  %v1699_v1 = vsub.f32 %v5155_v35, %v7065_v48  ;;  %v7067_v7 = vld [vmem:[#allocation39_spill] sm:$0xff]  ;;  %v1712_v39 = vand.u32 4294901760, %v1711_v4  ;;  %v7068_v57 = vand.u32 4294901760, %v5190_v16 }
 0x2b3   : > { %4206 = vmatprep.subr.bf16.mxu1 %v7062_v27  ;;  %4120 = vmatpush1.bf16.msra.mxu0 %v4119_v43  ;;  %v4123_v24 = vpack.c.bf16 %v1670_v29, %v1658_v2  ;;  %v1694_v11 = vand.u32 4294901760, %v1693_v46  ;;  %v7066_v27 = vand.u32 4294901760, %v7059_v50  ;;  %v6931_v43 = vand.u32 4294901760, %v5178_v10  ;;  %v7069_v6 = vld [vmem:[#allocation43_spill] sm:$0xff] }
 0x2b4   : > { %4122 = vmatprep.subr.bf16.mxu0 %v4121_v19  ;;  %v4125_v14 = vpack.c.bf16 %v1688_v21, %v1676_v53  ;;  %v1735_v19 = vsub.f32 %v5190_v16, %v7068_v57  ;;  %v1682_v48 = vand.u32 4294901760, %v1681_v8  ;;  %v7070_v2 = vand.u32 4294901760, %v7064_v47 }
 0x2b5   : > { %v1717_v0 = vsub.f32 %v7059_v50, %v7066_v27  ;;  %v1728_v27 = vand.u32 4294901760, %v5196_v17  ;;  %v1700_v29 = vand.u32 4294901760, %v1699_v1  ;;  %v1723_v53 = vsub.f32 %v5188_v58, %v6932_v5  ;;  %v7073_v5 = vld [vmem:[#allocation52_spill] sm:$0xff] }
 0x2b6   : > { %4208 = vmatpush1.bf16.msra.mxu1 %v7067_v7  ;;  %v1705_v46 = vsub.f32 %v7064_v47, %v7070_v2  ;;  %v4127_v21 = vpack.c.bf16 %v1694_v11, %v1682_v48  ;;  %v1741_v57 = vsub.f32 %v5178_v10, %v6931_v43  ;;  %v6934_v2 = vand.u32 4294901760, %v5226_v22  ;;  %v7072_v7 = vld [vmem:[#allocation48_spill] sm:$0xff] }
 0x2b7   : > { %4210 = vmatprep.subr.bf16.mxu1 %v7069_v6  ;;  %4124 = vmatpush1.bf16.msra.mxu0 %v4123_v24  ;;  %v1718_v4 = vand.u32 4294901760, %v1717_v0  ;;  %v7071_v24 = vld [vmem:[#allocation47_spill] sm:$0xff]  ;;  %v4129_v8 = vpack.c.bf16 %v1712_v39, %v1700_v29  ;;  %v1736_v6 = vand.u32 4294901760, %v1735_v19  ;;  %v1724_v11 = vand.u32 4294901760, %v1723_v53  ;;  %v7074_v29 = vld [vmem:[#allocation56_spill] sm:$0xff] }
 0x2b8   : > { %4126 = vmatprep.subr.bf16.mxu0 %v4125_v14  ;;  %v1706_v1 = vand.u32 4294901760, %v1705_v46  ;;  %v1729_v14 = vsub.f32 %v5196_v17, %v1728_v27  ;;  %v6933_v0 = vand.u32 4294901760, %v5237_v37  ;;  %v1742_v43 = vand.u32 4294901760, %v1741_v57  ;;  %v7076_v57 = vld [vmem:[#allocation14_spill] sm:$0xff]  ;;  %v7153_v17 = vld [vmem:[#allocation13_spill] sm:$0xff] }
 0x2b9   : > { %v4133_v39 = vpack.c.bf16 %v1736_v6, %v1724_v11  ;;  %v1747_v19 = vsub.f32 %v5226_v22, %v6934_v2  ;;  %v7080_v11 = vand.u32 4294901760, %v4824_v28  ;;  %v7092_v2 = vld [vmem:[#allocation21_spill] sm:$0xff] }
 0x2ba   : > { %4212 = vmatpush1.bf16.msra.mxu1 %v7071_v24  ;;  %v4131_v48 = vpack.c.bf16 %v1718_v4, %v1706_v1  ;;  %v1730_v46 = vand.u32 4294901760, %v1729_v14  ;;  %v1753_v53 = vsub.f32 %v5237_v37, %v6933_v0  ;;  %v7078_v1 = vld [vmem:[#allocation7_spill] sm:$0xff]  ;;  %v7079_v14 = vand.u32 4294901760, %v4846_v41 }
 0x2bb   : > { %4214 = vmatprep.subr.bf16.mxu1 %v7072_v7  ;;  %4128 = vmatpush1.bf16.msra.mxu0 %v4127_v21  ;;  %v1748_v4 = vand.u32 4294901760, %v1747_v19  ;;  %v7089_v41 = vand.u32 4294901760, %v4871_v63 }
 0x2bc   : > { %4130 = vmatprep.subr.bf16.mxu0 %v4129_v8  ;;  %v4135_v21 = vpack.c.bf16 %v1742_v43, %v1730_v46  ;;  %v7075_v8 = vld [vmem:[#allocation58_spill] sm:$0xff]  ;;  %v1754_v6 = vand.u32 4294901760, %v1753_v53  ;;  %v7077_v43 = vld [vmem:[#allocation15_spill] sm:$0xff]  ;;  %v7083_v46 = vld [vmem:[#allocation4_spill] sm:$0xff] }
 0x2bd   : > { %v7085_v53 = vld [vmem:[#allocation18_spill] sm:$0xff] }
 0x2be   : > { %4216 = vmatpush1.bf16.msra.mxu1 %v7073_v5 }
 0x2bf   : > { %4218 = vmatprep.subr.bf16.mxu1 %v7074_v29  ;;  %4132 = vmatpush1.bf16.msra.mxu0 %v4131_v48  ;;  %v7081_v48 = vld [vmem:[#allocation12_spill] sm:$0xff] }
 0x2c0   : > { %4134 = vmatprep.subr.bf16.mxu0 %v4133_v39  ;;  %v7082_v39 = vand.u32 4294901760, %v7081_v48  ;;  %v7093_v48 = vand.u32 4294901760, %v7092_v2  ;;  %v7101_v2 = vand.u32 4294901760, %v4927_v51  ;;  %v7110_v51 = vand.u32 4294901760, %v4982_v54 }
 0x2c2   : > { %4220 = vmatpush1.bf16.msra.mxu1 %v7075_v8  ;;  %v4229_v19 = vpack.c.bf16 %v7082_v39, %v7080_v11  ;;  %v7094_v39 = vand.u32 4294901760, %v4880_v12 }
 0x2c3   : > { %4222 = vmatprep.subr.bf16.mxu1 %v5186_v45  ;;  %4136 = vmatpush1.bf16.msra.mxu0 %v4135_v21  ;;  %v7084_v21 = vld [vmem:[#allocation16_spill] sm:$0xff] }
 0x2c4   : > { %1749 = vmatprep.subr.mxu0 %v1748_v4  ;;  %v7086_v4 = vand.u32 4294901760, %v4830_v33  ;;  %v7097_v33 = vand.u32 4294901760, %v4896_v38  ;;  %v7106_v38 = vand.u32 4294901760, %v4953_v30  ;;  %v7113_v30 = vand.u32 4294901760, %v5234_v61 }
 0x2c5   : > { %v7121_v61 = vand.u32 4294901760, %v7029_v3 }
 0x2c6   : > { %4224 = vmatpush1.bf16.msra.mxu1 %v5193_v23 }
 0x2c7   : > { %2111 = vmatprep.subr.mxu1 %v5212_v60  ;;  %1755 = vmatpush1.msra.mxu0 %v1754_v6  ;;  %v7087_v6 = vld [vmem:[#allocation10_spill] sm:$0xff] }
 0x2c8   : > { %1777 = vmatmul.mubr.f32.vlgmr.msra.gmra.mrb[6].mxu0 %v7076_v57  ;;  %v7088_v0 = vand.u32 4294901760, %v7087_v6  ;;  %v7100_v6 = vand.u32 4294901760, %v7031_v56 }
 0x2c9   : > { %1783 = vmatprep.mubr.f32.mxu0 %v7077_v43 }
 0x2ca   : > { %2113 = vmatpush1.msra.mxu1 %v5218_v32 }
 0x2cb   : > { %4226 = vmatprep.subr.bf16.mxu1 %v7078_v1  ;;  %2139 = vmatmul.mubr.f32.vlgmr.msra.gmra.mrb[0].mxu1 %v7079_v14  ;;  %v4231_v1 = vpack.c.bf16 %v7088_v0, %v7086_v4  ;;  %v7090_v14 = vld [vmem:[#allocation20_spill] sm:$0xff]  ;;  %v7098_v0 = vld [vmem:[#allocation17_spill] sm:$0xff] }
 0x2cc   : > { %4228 = vmatpush1.bf16.msra.mxu1 %v7083_v46  ;;  %1785 = vmatmul.mubr.f32.gmra.mrb[8].mxu0 %v7084_v21  ;;  %v7091_v28 = vand.u32 4294901760, %v7090_v14  ;;  %v7096_v46 = vld [vmem:[#allocation41_spill] sm:$0xff]  ;;  %v7099_v4 = vand.u32 4294901760, %v7098_v0  ;;  %v7104_v14 = vld [vmem:[#allocation51_spill] sm:$0xff] }
 0x2cd   : > { %4230 = vmatprep.subr.bf16.mxu1 %v4229_v19  ;;  %1791 = vmatprep.mubr.f32.mxu0 %v7085_v53  ;;  %v7095_v19 = vld [vmem:[#allocation23_spill] sm:$0xff]  ;;  %v7115_v0 = vld [vmem:[#allocation29_spill] sm:$0xff] }
 0x2ce   : > { %2147 = vmatprep.mubr.f32.mxu1 %v7089_v41  ;;  %v4233_v11 = vpack.c.bf16 %v7093_v48, %v7091_v28  ;;  %v4235_v63 = vpack.c.bf16 %v7099_v4, %v7097_v33  ;;  %v7102_v41 = vand.u32 4294901760, %v4908_v55  ;;  %v7105_v28 = vld [vmem:[#allocation54_spill] sm:$0xff]  ;;  %v7107_v48 = vand.u32 4294901760, %v4937_v36  ;;  %v7112_v33 = vld [vmem:[#allocation60_spill] sm:$0xff] }
 0x2cf   : > { %2151 = vmatmul.mubr.f32.gmra.mrb[2].mxu1 %v7094_v39  ;;  %v7109_v55 = vand.u32 4294901760, %v4980_v40  ;;  %v7111_v39 = vand.u32 4294901760, %v5184_v42  ;;  %v7114_v36 = vand.u32 4294901760, %v4992_v59  ;;  %v7117_v40 = vand.u32 4294901760, %v4989_v34 }
 0x2d0   : > { %4232 = vmatpush1.bf16.msra.mxu1 %v4231_v1  ;;  %1793 = vmatmul.mubr.f32.gmra.mrb[10].mxu0 %v7095_v19  ;;  %v4237_v12 = vpack.c.bf16 %v7102_v41, %v7101_v2  ;;  %v7103_v1 = vand.u32 4294901760, %v5012_v44  ;;  %v4239_v56 = vpack.c.bf16 %v7107_v48, %v7106_v38  ;;  %v7120_v42 = vand.u32 4294901760, %v5241_v52  ;;  %v7127_v48 = vld [vmem:[#allocation44_spill] sm:$0xff] }
 0x2d1   : > { %4234 = vmatprep.subr.bf16.mxu1 %v4233_v11  ;;  %1799 = vmatprep.mubr.f32.mxu0 %v7096_v46  ;;  %v7108_v11 = vand.u32 4294901760, %v5097_v49  ;;  %v4241_v44 = vpack.c.bf16 %v7110_v51, %v7109_v55  ;;  %v7116_v49 = vand.u32 4294901760, %v7115_v0  ;;  %v7122_v2 = vand.u32 4294901760, %v5008_v9  ;;  %v7131_v9 = vld [vmem:[#allocation42_spill] sm:$0xff] }
 0x2d2   : > { %2159 = vmatprep.mubr.f32.mxu1 %v7100_v6  ;;  %v7123_v41 = vand.u32 4294901760, %v7024_v18  ;;  %v7126_v52 = vand.u32 4294901760, %v7037_v31  ;;  %v7132_v51 = vand.u32 4294901760, %v7131_v9  ;;  %v7133_v18 = vand.u32 4294901760, %v7044_v62 }
 0x2d3   : > { %2163 = vmatmul.mubr.f32.gmra.mrb[4].mxu1 %v7103_v1  ;;  %v4243_v4 = vpack.c.bf16 %v7116_v49, %v7114_v36  ;;  %v4247_v59 = vpack.c.bf16 %v7122_v2, %v7121_v61  ;;  %v7125_v1 = vand.u32 4294901760, %v7033_v15  ;;  %v7138_v31 = vand.u32 4294901760, %v7056_v13 }
 0x2d4   : > { %4236 = vmatpush1.bf16.msra.mxu1 %v4235_v63  ;;  %1801 = vmatmul.mubr.f32.gmra.mrb[12].mxu0 %v7104_v14  ;;  %v7118_v63 = vld [vmem:[#allocation28_spill] sm:$0xff]  ;;  %v7139_v0 = vand.u32 4294901760, %v7048_v20  ;;  %v7143_v62 = vand.u32 4294901760, %v7064_v47  ;;  %v7145_v61 = vand.u32 4294901760, %v5188_v58  ;;  %v7146_v2 = vand.u32 4294901760, %v5190_v16  ;;  %v7151_v16 = vld [vmem:[#allocation6_spill] sm:$0xff] }
 0x2d5   : > { %4238 = vmatprep.subr.bf16.mxu1 %v4237_v12  ;;  %1807 = vmatprep.mubr.f32.mxu0 %v7105_v28  ;;  %v7119_v54 = vand.u32 4294901760, %v7118_v63  ;;  %v7124_v12 = vand.u32 4294901760, %v7030_v25  ;;  %v4251_v38 = vpack.c.bf16 %v7126_v52, %v7125_v1  ;;  %v4255_v25 = vpack.c.bf16 %v7133_v18, %v7132_v51  ;;  %v7152_v58 = vld [vmem:[#allocation11_spill] sm:$0xff]  ;;  %v7161_v1 = vld [vmem:[#allocation34_spill] sm:$0xff] }
 0x2d6   : > { %2171 = vmatprep.mubr.f32.mxu1 %v7108_v11  ;;  %v7129_v11 = vld [vmem:[#allocation45_spill] sm:$0xff]  ;;  %v4259_v49 = vpack.c.bf16 %v7139_v0, %v7138_v31  ;;  %v4265_v13 = vpack.c.bf16 %v7146_v2, %v7145_v61  ;;  %v7149_v47 = vand.u32 4294901760, %v5237_v37  ;;  %v7156_v37 = vld [vmem:[#allocation24_spill] sm:$0xff]  ;;  %v7162_v52 = vld [vmem:[#allocation35_spill] sm:$0xff] }
 0x2d7   : > { %2175 = vmatmul.mubr.f32.gmra.mrb[6].mxu1 %v7111_v39  ;;  %v4245_v6 = vpack.c.bf16 %v7119_v54, %v7117_v40  ;;  %v4249_v34 = vpack.c.bf16 %v7124_v12, %v7123_v41  ;;  %v7130_v55 = vand.u32 4294901760, %v7129_v11  ;;  %v7141_v40 = vld [vmem:[#allocation57_spill] sm:$0xff]  ;;  %v7158_v41 = vld [vmem:[#allocation30_spill] sm:$0xff]  ;;  %v7159_v12 = vld [vmem:[#allocation31_spill] sm:$0xff] }
 0x2d8   : > { %4240 = vmatpush1.bf16.msra.mxu1 %v4239_v56  ;;  %1809 = vmatmul.mubr.f32.gmra.mrb[14].mxu0 %v7112_v33  ;;  %v7128_v56 = vand.u32 4294901760, %v7127_v48  ;;  %v7142_v63 = vand.u32 4294901760, %v7141_v40  ;;  %v7164_v48 = vld [vmem:[#allocation43_spill] sm:$0xff]  ;;  %v2599_v31 = vld [vmem:[%s6822_s4 + $0x10] sm:$0xff]  ;;  %v2601_v40 = vld [vmem:[%s6822_s4 + $0x20] sm:$0x3] }
 0x2d9   : > { %4242 = vmatprep.subr.bf16.mxu1 %v4241_v44  ;;  %2183 = vmatprep.mubr.f32.mxu1 %v7113_v30  ;;  %v7134_v44 = vld [vmem:[#allocation49_spill] sm:$0xff]  ;;  %v7136_v30 = vld [vmem:[#allocation46_spill] sm:$0xff]  ;;  %v3793_v61 = vld [vmem:[%s6822_s4 + $0x50] sm:$0x3] }
 0x2da   : > { %v4253_v3 = vpack.c.bf16 %v7130_v55, %v7128_v56  ;;  %v7135_v39 = vand.u32 4294901760, %v7134_v44  ;;  %v7137_v36 = vand.u32 4294901760, %v7136_v30 }
 0x2db   : > { %2187 = vmatmul.mubr.f32.gmra.mrb[8].mxu1 %v7120_v42 }
 0x2dc   : > { %4244 = vmatpush1.bf16.msra.mxu1 %v4243_v4  ;;  %2396 = vmatprep.mubr.f32.mxu1 %v7049_v26  ;;  %v4257_v15 = vpack.c.bf16 %v7137_v36, %v7135_v39  ;;  %v7140_v4 = vand.u32 4294901760, %v5155_v35  ;;  %v7147_v35 = vand.u32 4294901760, %v5178_v10  ;;  %v7155_v10 = vld [vmem:[#allocation22_spill] sm:$0xff] }
 0x2dd   : > { %4246 = vmatprep.subr.bf16.mxu1 %v4245_v6  ;;  %v7144_v6 = vand.u32 4294901760, %v7059_v50  ;;  %v7150_v50 = vld [vmem:[#allocation5_spill] sm:$0xff] }
 0x2de   : > { %v4261_v54 = vpack.c.bf16 %v7142_v63, %v7140_v4  ;;  %v4267_v20 = vpack.c.bf16 %v7147_v35, %v1728_v27  ;;  %v7157_v27 = vld [vmem:[#allocation27_spill] sm:$0xff]  ;;  %v3789_v63 = vld [vmem:[%s6822_s4 + $0x30] sm:$0xff] }
 0x2df   : > { %v4263_v42 = vpack.c.bf16 %v7144_v6, %v7143_v62  ;;  %v3797_v35 = vld [vmem:[%s6822_s4 + $0x70] sm:$0xff] }
 0x2e0   : > { %4248 = vmatpush1.bf16.msra.mxu1 %v4247_v59  ;;  %v7148_v59 = vand.u32 4294901760, %v5226_v22  ;;  %v7154_v22 = vld [vmem:[#allocation19_spill] sm:$0xff] }
 0x2e1   : > { %4250 = vmatprep.subr.bf16.mxu1 %v4249_v34  ;;  %v7160_v34 = vld [vmem:[#allocation32_spill] sm:$0xff] }
 0x2e4   : > { %4252 = vmatpush1.bf16.msra.mxu1 %v4251_v38  ;;  %v7163_v38 = vld [vmem:[#allocation39_spill] sm:$0xff] }
 0x2e5   : > { %4254 = vmatprep.subr.bf16.mxu1 %v4253_v3 }
 0x2e8   : > { %4256 = vmatpush1.bf16.msra.mxu1 %v4255_v25  ;;  %v1250_v25 = vpop.permute.xlu1 %1249 }
 0x2e9   : > { %4258 = vmatprep.subr.bf16.mxu1 %v4257_v15  ;;  %v2597_v15 = vld [vmem:[%s6822_s4] sm:$0xff] }
 0x2ec   : > { %4260 = vmatpush1.bf16.msra.mxu1 %v4259_v49 }
 0x2ed   : > { %4262 = vmatprep.subr.bf16.mxu1 %v4261_v54  ;;  %v3791_v54 = vld [vmem:[%s6822_s4 + $0x40] sm:$0xff] }
 0x2f0   : > { %4264 = vmatpush1.bf16.msra.mxu1 %v4263_v42 }
 0x2f1   : > { %4266 = vmatprep.subr.bf16.mxu1 %v4265_v13  ;;  %v3795_v13 = vld [vmem:[%s6822_s4 + $0x60] sm:$0xff] }
 0x2f4   : > { %4268 = vmatpush1.bf16.msra.mxu1 %v4267_v20 }
 0x2f5   : > { %2372 = vmatprep.subr.mxu1 %v7148_v59 }
 0x2f8   : > { %2376 = vmatpush1.msra.mxu1 %v7149_v47 }
 0x2f9   : > { %4270 = vmatprep.subr.bf16.mxu1 %v7150_v50  ;;  %2398 = vmatmul.mubr.f32.vlgmr.msra.gmra.mrb[0].mxu1 %v7076_v57  ;;  %v3799_v50 = vld [vmem:[%s6822_s4 + $0x80] sm:$0x3] }
 0x2fa   : > { %4272 = vmatpush1.bf16.msra.mxu1 %v7151_v16  ;;  %2404 = vmatprep.mubr.f32.mxu1 %v7077_v43  ;;  %v3801_v16 = vld [vmem:[%s6822_s4 + $0x90] sm:$0xff] }
 0x2fb   : > { %4274 = vmatprep.subr.bf16.mxu1 %v7152_v58  ;;  %v3803_v58 = vld [vmem:[%s6822_s4 + $0xa0] sm:$0xff] }
 0x2fd   : > { %2406 = vmatmul.mubr.f32.gmra.mrb[2].mxu1 %v7084_v21 }
 0x2fe   : > { %4276 = vmatpush1.bf16.msra.mxu1 %v7153_v17  ;;  %2412 = vmatprep.mubr.f32.mxu1 %v7085_v53 }
 0x2ff   : > { %4278 = vmatprep.subr.bf16.mxu1 %v7154_v22 }
 0x301   : > { %2414 = vmatmul.mubr.f32.gmra.mrb[4].mxu1 %v7095_v19 }
 0x302   : > { %4280 = vmatpush1.bf16.msra.mxu1 %v7155_v10  ;;  %2420 = vmatprep.mubr.f32.mxu1 %v7096_v46 }
 0x303   : > { %4282 = vmatprep.subr.bf16.mxu1 %v7156_v37 }
 0x305   : > { %2422 = vmatmul.mubr.f32.gmra.mrb[6].mxu1 %v7104_v14 }
 0x306   : > { %4284 = vmatpush1.bf16.msra.mxu1 %v7157_v27  ;;  %2428 = vmatprep.mubr.f32.mxu1 %v7105_v28 }
 0x307   : > { %4286 = vmatprep.subr.bf16.mxu1 %v7158_v41 }
 0x309   : > { %2430 = vmatmul.mubr.f32.gmra.mrb[8].mxu1 %v7112_v33 }
 0x30a   : > { %4288 = vmatpush1.bf16.msra.mxu1 %v7159_v12  ;;  %2547 = vmatprep.mubr.f32.mxu1 %v7049_v26 }
 0x30b   : > { %4290 = vmatprep.subr.bf16.mxu1 %v7160_v34 }
 0x30e   : > { %4292 = vmatpush1.bf16.msra.mxu1 %v7161_v1  ;;  %v3805_v1 = vld [vmem:[%s6822_s4 + $0xb0] sm:$0x3] }
 0x30f   : > { %4294 = vmatprep.subr.bf16.mxu1 %v7162_v52  ;;  %v3807_v52 = vld [vmem:[%s6822_s4 + $0xc0] sm:$0xff] }
 0x312   : > { %4296 = vmatpush1.bf16.msra.mxu1 %v7163_v38 }
 0x313   : > { %4298 = vmatprep.subr.bf16.mxu1 %v7164_v48 }
 0x316   : > { %4300 = vmatpush1.bf16.msra.mxu1 %v7071_v24 }
 0x317   : > { %4302 = vmatprep.subr.bf16.mxu1 %v7072_v7 }
 0x31a   : > { %4304 = vmatpush1.bf16.msra.mxu1 %v7073_v5 }
 0x31b   : > { %4306 = vmatprep.subr.bf16.mxu1 %v7074_v29 }
 0x31e   : > { %4308 = vmatpush1.bf16.msra.mxu1 %v7075_v8 }
 0x31f   : > { %4310 = vmatprep.subr.bf16.mxu1 %v5186_v45 }
 0x322   : > { %4312 = vmatpush1.bf16.msra.mxu1 %v5193_v23 }
 0x323   : > { %2525 = vmatprep.subr.mxu1 %v5212_v60 }
 0x326   : > { %2527 = vmatpush1.msra.mxu1 %v5218_v32 }
 0x327   : > { %2549 = vmatmul.mubr.f32.vlgmr.msra.gmra.mrb[0].mxu1 %v7076_v57  ;;  %v7165_v57 = vlaneseq }
 0x328   : > { %2555 = vmatprep.mubr.f32.mxu1 %v7077_v43 }
 0x329   : > { %v2604_v43 = vshrl.u32 %v7165_v57, 7 }
 0x32b   : > { %2557 = vmatmul.mubr.f32.gmra.mrb[2].mxu1 %v7084_v21  ;;  %v1245_v21 = vpop.permute.xlu0 %1244  ;;  %v5621_v56 = vsub.s32 3, %v2604_v43  ;;  %v5623_v11 = vsub.s32 4, %v2604_v43  ;;  %v5625_v9 = vsub.s32 5, %v2604_v43  ;;  %v5627_v51 = vsub.s32 6, %v2604_v43 }
 0x32c   : > { %2563 = vmatprep.mubr.f32.mxu1 %v7085_v53  ;;  %v5629_v18 = vsub.s32 7, %v2604_v43 }
 0x32f   : > { %2565 = vmatmul.mubr.f32.gmra.mrb[4].mxu1 %v7095_v19  ;;  %v5615_v19 = vsub.s32 0, %v2604_v43  ;;  %v1255_v39 = vpop.permute.xlu0 %1254 }
 0x330   : > { %2571 = vmatprep.mubr.f32.mxu1 %v7096_v46  ;;  %v5617_v46 = vsub.s32 1, %v2604_v43 }
 0x333   : > { %2573 = vmatmul.mubr.f32.gmra.mrb[6].mxu1 %v7104_v14 }
 0x334   : > { %2579 = vmatprep.mubr.f32.mxu1 %v7105_v28 }
 0x337   : > { %2581 = vmatmul.mubr.f32.gmra.mrb[8].mxu1 %v7112_v33  ;;  %v5619_v33 = vsub.s32 2, %v2604_v43 }
 0x39b   : > { %v1778_v23 = vpop.f32.mrb[6].mxu0 }
 0x39c   : > { %v1780_v7 = vpop.f32.mrb[7].mxu0  ;;  %v4319_v53 = vadd.f32 %v1778_v23, %v1245_v21 }
 0x39d   : > { %v4321_v14 = vadd.f32 %v1780_v7, %v1245_v21 }
 0x39f   : > { %v1786_v32 = vpop.f32.mrb[8].mxu0 }
 0x3a0   : > { %v1788_v45 = vpop.f32.mrb[9].mxu0  ;;  %v5631_v30 = vadd.f32 %v1786_v32, %v1250_v25  ;;  %v3809_v32 = vld [vmem:[%s6822_s4 + $0xd0] sm:$0xff] }
 0x3a1   : > { %v5639_v0 = vadd.f32 %v1788_v45, %v1250_v25  ;;  %v3811_v45 = vld [vmem:[%s6822_s4 + $0xe0] sm:$0x3] }
 0x3a3   : > { %v1794_v60 = vpop.f32.mrb[10].mxu0 }
 0x3a4   : > { %v1796_v26 = vpop.f32.mrb[11].mxu0  ;;  %v5641_v49 = vadd.f32 %v1794_v60, %v1255_v39  ;;  %v3813_v60 = vld [vmem:[%s6822_s4 + $0xf0] sm:$0xff] }
 0x3a5   : > { %v5643_v4 = vadd.f32 %v1796_v26, %v1255_v39 }
 0x3a7   : > { %v5606_v5 = vpop.f32.mrb[12].mxu0 }
 0x3a8   : > { %v5608_v24 = vpop.f32.mrb[13].mxu0 }
 0x3ab   : > { %v5610_v29 = vpop.f32.mrb[14].mxu0 }
 0x3ac   : > { %v5612_v8 = vpop.f32.mrb[15].mxu0 }
 0x3fa   : > { %v2550_v28 = vpop.f32.mrb[0].mxu1 }
 0x3fb   : > { %v4320_v55 = vadd.f32 %v4319_v53, %v2550_v28  ;;  %v2552_v3 = vpop.f32.mrb[1].mxu1  ;;  %v3817_v28 = vld [vmem:[%s6822_s4 + $0x110] sm:$0x3] }
 0x3fc   : > { %v4322_v44 = vadd.f32 %v4321_v14, %v2552_v3  ;;  %v3815_v14 = vld [vmem:[%s6822_s4 + $0x100] sm:$0xff] }
 0x3fd   : > { %v2587_v36 = vmax.f32 %v4320_v55, 0.0 }
 0x3fe   : > { %v5654_v62 = vmax.f32 %v4322_v44, 0.0  ;;  %v5656_v6 = vpop.f32.mrb[2].mxu1 }
 0x3ff   : > { %v2606_v42 = vrot.slane %v2587_v36, %v5615_v19  ;;  %v2633_v2 = vrot.slane %v2587_v36, %v5617_v46  ;;  %v2660_v20 = vrot.slane %v2587_v36, %v5619_v33  ;;  %v2687_v59 = vrot.slane %v2587_v36, %v5621_v56  ;;  %v5671_v47 = vpop.f32.mrb[3].mxu1 }
 0x400   : > { %v2714_v17 = vrot.slane %v2587_v36, %v5623_v11  ;;  %v2741_v22 = vrot.slane %v2587_v36, %v5625_v9  ;;  %v2768_v10 = vrot.slane %v2587_v36, %v5627_v51  ;;  %v2795_v37 = vrot.slane %v2587_v36, %v5629_v18  ;;  %v3819_v36 = vld [vmem:[%s6822_s4 + $0x120] sm:$0xff] }
 0x401   : > { %v2611_v27 = vmul.f32 %v2606_v42, %v2597_v15  ;;  %v2613_v41 = vmul.f32 %v2606_v42, %v2599_v31  ;;  %v2615_v12 = vmul.f32 %v2606_v42, %v2601_v40  ;;  %v2638_v34 = vmul.f32 %v3789_v63, %v2633_v2  ;;  %v3821_v15 = vld [vmem:[%s6822_s4 + $0x130] sm:$0xff]  ;;  %v3823_v31 = vld [vmem:[%s6822_s4 + $0x140] sm:$0x3] }
 0x402   : > { %v2640_v38 = vmul.f32 %v3791_v54, %v2633_v2  ;;  %v2642_v48 = vmul.f32 %v3793_v61, %v2633_v2  ;;  %v2665_v23 = vmul.f32 %v3795_v13, %v2660_v20  ;;  %v2667_v7 = vmul.f32 %v3797_v35, %v2660_v20  ;;  %v5701_v26 = vpop.f32.mrb[4].mxu1  ;;  %v3825_v61 = vld [vmem:[%s6822_s4 + $0x150] sm:$0xff]  ;;  %v3827_v2 = vld [vmem:[%s6822_s4 + $0x160] sm:$0xff] }
 0x403   : > { %v2644_v57 = vadd.f32 %v2638_v34, %v2611_v27  ;;  %v2669_v43 = vmul.f32 %v3799_v50, %v2660_v20  ;;  %v2692_v21 = vmul.f32 %v3801_v16, %v2687_v59  ;;  %v2694_v53 = vmul.f32 %v3803_v58, %v2687_v59  ;;  %v5709_v55 = vpop.f32.mrb[5].mxu1  ;;  %v3829_v50 = vld [vmem:[%s6822_s4 + $0x170] sm:$0x3] }
 0x404   : > { %v2646_v3 = vadd.f32 %v2640_v38, %v2613_v41  ;;  %v2648_v25 = vadd.f32 %v2642_v48, %v2615_v12  ;;  %v2696_v44 = vmul.f32 %v3805_v1, %v2687_v59  ;;  %v2719_v39 = vmul.f32 %v3807_v52, %v2714_v17  ;;  %v2600_v48 = vld [vmem:[%s6822_s4 + $0x18] sm:$0xff] }
 0x405   : > { %v2671_v40 = vadd.f32 %v2665_v23, %v2644_v57  ;;  %v2721_v63 = vmul.f32 %v3809_v32, %v2714_v17  ;;  %v2723_v54 = vmul.f32 %v3811_v45, %v2714_v17  ;;  %v2746_v42 = vmul.f32 %v3813_v60, %v2741_v22  ;;  %v2602_v23 = vld [vmem:[%s6822_s4 + $0x28] sm:$0x3]  ;;  %v3790_v45 = vld [vmem:[%s6822_s4 + $0x38] sm:$0xff] }
 0x406   : > { %v2673_v13 = vadd.f32 %v2667_v7, %v2646_v3  ;;  %v2675_v35 = vadd.f32 %v2669_v43, %v2648_v25  ;;  %v2748_v20 = vmul.f32 %v3815_v14, %v2741_v22  ;;  %v2750_v59 = vmul.f32 %v3817_v28, %v2741_v22  ;;  %v5729_v16 = vpop.f32.mrb[6].mxu1  ;;  %v2598_v22 = vld [vmem:[%s6822_s4 + $0x8] sm:$0xff]  ;;  %v3798_v14 = vld [vmem:[%s6822_s4 + $0x78] sm:$0xff] }
 0x407   : > { %v2698_v58 = vadd.f32 %v2692_v21, %v2671_v40  ;;  %v2773_v17 = vmul.f32 %v3819_v36, %v2768_v10  ;;  %v2775_v27 = vmul.f32 %v3821_v15, %v2768_v10  ;;  %v2777_v41 = vmul.f32 %v3823_v31, %v2768_v10  ;;  %v5731_v12 = vpop.f32.mrb[7].mxu1  ;;  %v3792_v60 = vld [vmem:[%s6822_s4 + $0x48] sm:$0xff] }
 0x408   : > { %v2700_v34 = vadd.f32 %v2694_v53, %v2673_v13  ;;  %v2702_v1 = vadd.f32 %v2696_v44, %v2675_v35  ;;  %v2800_v52 = vmul.f32 %v3825_v61, %v2795_v37  ;;  %v2802_v38 = vmul.f32 %v3827_v2, %v2795_v37  ;;  %v3796_v53 = vld [vmem:[%s6822_s4 + $0x68] sm:$0xff]  ;;  %v3802_v13 = vld [vmem:[%s6822_s4 + $0x98] sm:$0xff] }
 0x409   : > { %v2725_v7 = vadd.f32 %v2719_v39, %v2698_v58  ;;  %v2804_v10 = vmul.f32 %v3829_v50, %v2795_v37  ;;  %v2610_v32 = vrot.slane %v5654_v62, %v5615_v19  ;;  %v2637_v57 = vrot.slane %v5654_v62, %v5617_v46  ;;  %v3794_v37 = vld [vmem:[%s6822_s4 + $0x58] sm:$0x3]  ;;  %v3800_v2 = vld [vmem:[%s6822_s4 + $0x88] sm:$0x3] }
 0x40a   : > { %v2727_v43 = vadd.f32 %v2721_v63, %v2700_v34  ;;  %v2729_v21 = vadd.f32 %v2723_v54, %v2702_v1  ;;  %v2664_v28 = vrot.slane %v5654_v62, %v5619_v33  ;;  %v2691_v3 = vrot.slane %v5654_v62, %v5621_v56  ;;  %v5765_v25 = vpop.f32.mrb[8].mxu1 }
 0x40b   : > { %v2752_v44 = vadd.f32 %v2746_v42, %v2725_v7  ;;  %v2612_v39 = vmul.f32 %v2610_v32, %v2598_v22  ;;  %v2614_v36 = vmul.f32 %v2610_v32, %v2600_v48  ;;  %v2616_v15 = vmul.f32 %v2610_v32, %v2602_v23  ;;  %v5767_v31 = vpop.f32.mrb[9].mxu1 }
 0x40c   : > { %v2754_v40 = vadd.f32 %v2748_v20, %v2727_v43  ;;  %v2756_v63 = vadd.f32 %v2750_v59, %v2729_v21  ;;  %v2639_v54 = vmul.f32 %v3790_v45, %v2637_v57  ;;  %v2641_v61 = vmul.f32 %v3792_v60, %v2637_v57  ;;  %v3804_v20 = vld [vmem:[%s6822_s4 + $0xa8] sm:$0xff]  ;;  %v3806_v59 = vld [vmem:[%s6822_s4 + $0xb8] sm:$0x3] }
 0x40d   : > { %v2779_v35 = vadd.f32 %v2773_v17, %v2752_v44  ;;  %v2643_v50 = vmul.f32 %v3794_v37, %v2637_v57  ;;  %v2666_v42 = vmul.f32 %v3796_v53, %v2664_v28  ;;  %v2668_v58 = vmul.f32 %v3798_v14, %v2664_v28  ;;  %v3808_v57 = vld [vmem:[%s6822_s4 + $0xc8] sm:$0xff]  ;;  %v3810_v43 = vld [vmem:[%s6822_s4 + $0xd8] sm:$0xff] }
 0x40e   : > { %v2781_v34 = vadd.f32 %v2775_v27, %v2754_v40  ;;  %v2783_v1 = vadd.f32 %v2777_v41, %v2756_v63  ;;  %v2645_v22 = vadd.f32 %v2639_v54, %v2612_v39  ;;  %v2647_v48 = vadd.f32 %v2641_v61, %v2614_v36  ;;  %v3814_v53 = vld [vmem:[%s6822_s4 + $0xf8] sm:$0xff]  ;;  %v3816_v14 = vld [vmem:[%s6822_s4 + $0x108] sm:$0xff]  ;;  %v5816_v40 = vpop.permute.xlu1 %1259 }
 0x40f   : > { %v5781_v23 = vadd.f32 %v2800_v52, %v2779_v35  ;;  %v2649_v7 = vadd.f32 %v2643_v50, %v2616_v15  ;;  %v2670_v32 = vmul.f32 %v3800_v2, %v2664_v28  ;;  %v2693_v17 = vmul.f32 %v3802_v13, %v2691_v3  ;;  %v3820_v39 = vld [vmem:[%s6822_s4 + $0x128] sm:$0xff]  ;;  %v3822_v13 = vld [vmem:[%s6822_s4 + $0x138] sm:$0xff] }
 0x410   : > { %v5783_v45 = vadd.f32 %v2802_v38, %v2781_v34  ;;  %v5785_v60 = vadd.f32 %v2804_v10, %v2783_v1  ;;  %v2672_v27 = vadd.f32 %v2666_v42, %v2645_v22  ;;  %v2674_v41 = vadd.f32 %v2668_v58, %v2647_v48  ;;  %v3812_v38 = vld [vmem:[%s6822_s4 + $0xe8] sm:$0x3]  ;;  %v3826_v50 = vld [vmem:[%s6822_s4 + $0x158] sm:$0xff] }
 0x411   : > { %v2676_v21 = vadd.f32 %v2670_v32, %v2649_v7  ;;  %v2695_v52 = vmul.f32 %v3804_v20, %v2691_v3  ;;  %v2697_v37 = vmul.f32 %v3806_v59, %v2691_v3  ;;  %v2718_v10 = vrot.slane %v5654_v62, %v5623_v11  ;;  %v3818_v3 = vld [vmem:[%s6822_s4 + $0x118] sm:$0x3]  ;;  %v3824_v35 = vld [vmem:[%s6822_s4 + $0x148] sm:$0x3] }
 0x412   : > { %v2699_v28 = vadd.f32 %v2693_v17, %v2672_v27  ;;  %v2745_v44 = vrot.slane %v5654_v62, %v5625_v9  ;;  %v2772_v36 = vrot.slane %v5654_v62, %v5627_v51  ;;  %v2799_v15 = vrot.slane %v5654_v62, %v5629_v18  ;;  %v3828_v1 = vld [vmem:[%s6822_s4 + $0x168] sm:$0xff] }
 0x413   : > { %v2701_v63 = vadd.f32 %v2695_v52, %v2674_v41  ;;  %v2703_v54 = vadd.f32 %v2697_v37, %v2676_v21  ;;  %v2720_v61 = vmul.f32 %v3808_v57, %v2718_v10  ;;  %v2722_v2 = vmul.f32 %v3810_v43, %v2718_v10 }
 0x414   : > { %v4331_v62 = vadd.f32 %v5606_v5, %v5816_v40  ;;  %v2724_v42 = vmul.f32 %v3812_v38, %v2718_v10  ;;  %v2747_v58 = vmul.f32 %v3814_v53, %v2745_v44  ;;  %v2749_v34 = vmul.f32 %v3816_v14, %v2745_v44  ;;  %v3830_v5 = vld [vmem:[%s6822_s4 + $0x178] sm:$0x3] }
 0x415   : > { %v2726_v22 = vadd.f32 %v2720_v61, %v2699_v28  ;;  %v2728_v48 = vadd.f32 %v2722_v2, %v2701_v63  ;;  %v2751_v20 = vmul.f32 %v3818_v3, %v2745_v44  ;;  %v2774_v59 = vmul.f32 %v3820_v39, %v2772_v36  ;;  %v3831_v3 = vld [vmem:[%s6822_s4 + $0x180] sm:$0xff]  ;;  %v3845_v61 = vld [vmem:[%s6822_s4 + $0x1f0] sm:$0xff] }
 0x416   : > { %v2730_v7 = vadd.f32 %v2724_v42, %v2703_v54  ;;  %v2776_v32 = vmul.f32 %v3822_v13, %v2772_v36  ;;  %v2778_v17 = vmul.f32 %v3824_v35, %v2772_v36  ;;  %v2801_v27 = vmul.f32 %v3826_v50, %v2799_v15  ;;  %v3843_v54 = vld [vmem:[%s6822_s4 + $0x1e0] sm:$0xff]  ;;  %v3849_v50 = vld [vmem:[%s6822_s4 + $0x210] sm:$0xff] }
 0x417   : > { %v2753_v41 = vadd.f32 %v2747_v58, %v2726_v22  ;;  %v2755_v57 = vadd.f32 %v2749_v34, %v2728_v48  ;;  %v2803_v43 = vmul.f32 %v3828_v1, %v2799_v15  ;;  %v4324_v21 = vadd.f32 %v5631_v30, %v5656_v6  ;;  %v3833_v30 = vld [vmem:[%s6822_s4 + $0x190] sm:$0xff]  ;;  %v3847_v13 = vld [vmem:[%s6822_s4 + $0x200] sm:$0x3] }
 0x418   : > { %v2757_v52 = vadd.f32 %v2751_v20, %v2730_v7  ;;  %v4326_v37 = vadd.f32 %v5639_v0, %v5671_v47  ;;  %v4328_v38 = vadd.f32 %v5641_v49, %v5701_v26  ;;  %v5843_v10 = vadd.f32 %v5643_v4, %v5709_v55  ;;  %v3835_v4 = vld [vmem:[%s6822_s4 + $0x1a0] sm:$0x3]  ;;  %v3837_v47 = vld [vmem:[%s6822_s4 + $0x1b0] sm:$0xff] }
 0x419   : > { %v2780_v53 = vadd.f32 %v2774_v59, %v2753_v41  ;;  %v2782_v14 = vadd.f32 %v2776_v32, %v2755_v57  ;;  %v2589_v28 = vmax.f32 %v4324_v21, 0.0  ;;  %v5852_v0 = vadd.f32 %v4331_v62, %v5729_v16  ;;  %v3839_v26 = vld [vmem:[%s6822_s4 + $0x1c0] sm:$0xff]  ;;  %v3853_v20 = vld [vmem:[%s6822_s4 + $0x230] sm:$0x3] }
 0x41a   : > { %v2784_v6 = vadd.f32 %v2778_v17, %v2757_v52  ;;  %v2805_v49 = vmul.f32 %v3830_v5, %v2799_v15  ;;  %v5863_v55 = vmax.f32 %v4326_v37, 0.0  ;;  %v5865_v44 = vmax.f32 %v4328_v38, 0.0  ;;  %v3841_v15 = vld [vmem:[%s6822_s4 + $0x1d0] sm:$0x3]  ;;  %v3851_v48 = vld [vmem:[%s6822_s4 + $0x220] sm:$0xff] }
 0x41b   : > { %v5867_v16 = vadd.f32 %v2801_v27, %v2780_v53  ;;  %v5869_v39 = vadd.f32 %v2803_v43, %v2782_v14  ;;  %v2822_v36 = vrot.slane %v2589_v28, %v5615_v19  ;;  %v2849_v63 = vrot.slane %v2589_v28, %v5617_v46  ;;  %v3855_v59 = vld [vmem:[%s6822_s4 + $0x240] sm:$0xff]  ;;  %v3857_v41 = vld [vmem:[%s6822_s4 + $0x250] sm:$0xff] }
 0x41c   : > { %v5882_v2 = vadd.f32 %v2805_v49, %v2784_v6  ;;  %v2876_v35 = vrot.slane %v2589_v28, %v5619_v33  ;;  %v2903_v62 = vrot.slane %v2589_v28, %v5621_v56  ;;  %v2930_v42 = vrot.slane %v2589_v28, %v5623_v11  ;;  %v3859_v52 = vld [vmem:[%s6822_s4 + $0x260] sm:$0x3] }
 0x41d   : > { %v2827_v58 = vmul.f32 %v3831_v3, %v2822_v36  ;;  %v2829_v34 = vmul.f32 %v3833_v30, %v2822_v36  ;;  %v2831_v1 = vmul.f32 %v3835_v4, %v2822_v36  ;;  %v2854_v22 = vmul.f32 %v3837_v47, %v2849_v63  ;;  %v3861_v3 = vld [vmem:[%s6822_s4 + $0x270] sm:$0xff]  ;;  %v3867_v4 = vld [vmem:[%s6822_s4 + $0x2a0] sm:$0xff] }
 0x41e   : > { %v2856_v7 = vmul.f32 %v3839_v26, %v2849_v63  ;;  %v2858_v32 = vmul.f32 %v3841_v15, %v2849_v63  ;;  %v2881_v17 = vmul.f32 %v3843_v54, %v2876_v35  ;;  %v2883_v27 = vmul.f32 %v3845_v61, %v2876_v35  ;;  %v3869_v36 = vld [vmem:[%s6822_s4 + $0x2b0] sm:$0xff]  ;;  %v3871_v15 = vld [vmem:[%s6822_s4 + $0x2c0] sm:$0x3] }
 0x41f   : > { %v2833_v57 = vadd.f32 %v2827_v58, %v5781_v23  ;;  %v2835_v5 = vadd.f32 %v2829_v34, %v5783_v45  ;;  %v2837_v43 = vadd.f32 %v2831_v1, %v5785_v60  ;;  %v2885_v21 = vmul.f32 %v3847_v13, %v2876_v35  ;;  %v3863_v45 = vld [vmem:[%s6822_s4 + $0x280] sm:$0xff]  ;;  %v3865_v60 = vld [vmem:[%s6822_s4 + $0x290] sm:$0x3] }
 0x420   : > { %v2908_v37 = vmul.f32 %v3849_v50, %v2903_v62  ;;  %v2910_v38 = vmul.f32 %v3851_v48, %v2903_v62  ;;  %v2912_v53 = vmul.f32 %v3853_v20, %v2903_v62  ;;  %v2935_v14 = vmul.f32 %v3855_v59, %v2930_v42  ;;  %v3873_v50 = vld [vmem:[%s6822_s4 + $0x2d0] sm:$0xff]  ;;  %v3875_v62 = vld [vmem:[%s6822_s4 + $0x2e0] sm:$0xff]  ;;  %v3832_v48 = vld [vmem:[%s6822_s4 + $0x188] sm:$0xff] }
 0x421   : > { %v2860_v30 = vadd.f32 %v2854_v22, %v2833_v57  ;;  %v2862_v6 = vadd.f32 %v2856_v7, %v2835_v5  ;;  %v2864_v23 = vadd.f32 %v2858_v32, %v2837_v43  ;;  %v2937_v49 = vmul.f32 %v3857_v41, %v2930_v42 }
 0x422   : > { %v2939_v47 = vmul.f32 %v3859_v52, %v2930_v42  ;;  %v2957_v26 = vrot.slane %v2589_v28, %v5625_v9  ;;  %v2984_v63 = vrot.slane %v2589_v28, %v5627_v51  ;;  %v3011_v54 = vrot.slane %v2589_v28, %v5629_v18  ;;  %v3877_v42 = vld [vmem:[%s6822_s4 + $0x2f0] sm:$0x3] }
 0x423   : > { %v2887_v61 = vadd.f32 %v2881_v17, %v2860_v30  ;;  %v2889_v13 = vadd.f32 %v2883_v27, %v2862_v6  ;;  %v2891_v35 = vadd.f32 %v2885_v21, %v2864_v23  ;;  %v2826_v58 = vrot.slane %v5863_v55, %v5615_v19  ;;  %v3834_v17 = vld [vmem:[%s6822_s4 + $0x198] sm:$0xff]  ;;  %v3836_v27 = vld [vmem:[%s6822_s4 + $0x1a8] sm:$0x3] }
 0x424   : > { %v2962_v34 = vmul.f32 %v3861_v3, %v2957_v26  ;;  %v2964_v28 = vmul.f32 %v3863_v45, %v2957_v26  ;;  %v2966_v1 = vmul.f32 %v3865_v60, %v2957_v26  ;;  %v2989_v22 = vmul.f32 %v3867_v4, %v2984_v63  ;;  %v3842_v23 = vld [vmem:[%s6822_s4 + $0x1d8] sm:$0x3]  ;;  %v3844_v26 = vld [vmem:[%s6822_s4 + $0x1e8] sm:$0xff] }
 0x425   : > { %v2914_v20 = vadd.f32 %v2908_v37, %v2887_v61  ;;  %v2916_v59 = vadd.f32 %v2910_v38, %v2889_v13  ;;  %v2918_v7 = vadd.f32 %v2912_v53, %v2891_v35  ;;  %v2991_v32 = vmul.f32 %v3869_v36, %v2984_v63  ;;  %v3838_v37 = vld [vmem:[%s6822_s4 + $0x1b8] sm:$0xff]  ;;  %v3840_v38 = vld [vmem:[%s6822_s4 + $0x1c8] sm:$0xff] }
 0x426   : > { %v2993_v41 = vmul.f32 %v3871_v15, %v2984_v63  ;;  %v3016_v57 = vmul.f32 %v3873_v50, %v3011_v54  ;;  %v3018_v5 = vmul.f32 %v3875_v62, %v3011_v54  ;;  %v3020_v43 = vmul.f32 %v3877_v42, %v3011_v54  ;;  %v3846_v36 = vld [vmem:[%s6822_s4 + $0x1f8] sm:$0xff] }
 0x427   : > { %v2941_v21 = vadd.f32 %v2935_v14, %v2914_v20  ;;  %v2943_v52 = vadd.f32 %v2937_v49, %v2916_v59  ;;  %v2945_v3 = vadd.f32 %v2939_v47, %v2918_v7  ;;  %v2828_v30 = vmul.f32 %v3832_v48, %v2826_v58  ;;  %v3852_v20 = vld [vmem:[%s6822_s4 + $0x228] sm:$0xff]  ;;  %v3854_v59 = vld [vmem:[%s6822_s4 + $0x238] sm:$0x3] }
 0x428   : > { %v2830_v53 = vmul.f32 %v3834_v17, %v2826_v58  ;;  %v2832_v6 = vmul.f32 %v3836_v27, %v2826_v58  ;;  %v2853_v14 = vrot.slane %v5863_v55, %v5617_v46  ;;  %v2880_v49 = vrot.slane %v5863_v55, %v5619_v33  ;;  %v3856_v7 = vld [vmem:[%s6822_s4 + $0x248] sm:$0xff] }
 0x429   : > { %v2968_v45 = vadd.f32 %v2962_v34, %v2941_v21  ;;  %v2970_v60 = vadd.f32 %v2964_v28, %v2943_v52  ;;  %v2972_v4 = vadd.f32 %v2966_v1, %v2945_v3  ;;  %v2834_v47 = vadd.f32 %v2828_v30, %v5867_v16  ;;  %v3848_v16 = vld [vmem:[%s6822_s4 + $0x208] sm:$0x3]  ;;  %v3866_v3 = vld [vmem:[%s6822_s4 + $0x298] sm:$0x3] }
 0x42a   : > { %v2836_v15 = vadd.f32 %v2830_v53, %v5869_v39  ;;  %v2838_v63 = vadd.f32 %v2832_v6, %v5882_v2  ;;  %v2855_v54 = vmul.f32 %v3838_v37, %v2853_v14  ;;  %v2857_v61 = vmul.f32 %v3840_v38, %v2853_v14  ;;  %v3850_v39 = vld [vmem:[%s6822_s4 + $0x218] sm:$0xff]  ;;  %v3864_v52 = vld [vmem:[%s6822_s4 + $0x288] sm:$0xff] }
 0x42b   : > { %v2995_v13 = vadd.f32 %v2989_v22, %v2968_v45  ;;  %v2997_v35 = vadd.f32 %v2991_v32, %v2970_v60  ;;  %v2999_v50 = vadd.f32 %v2993_v41, %v2972_v4  ;;  %v2859_v62 = vmul.f32 %v3842_v23, %v2853_v14  ;;  %v3870_v45 = vld [vmem:[%s6822_s4 + $0x2b8] sm:$0xff]  ;;  %v3872_v60 = vld [vmem:[%s6822_s4 + $0x2c8] sm:$0x3] }
 0x42c   : > { %v2861_v42 = vadd.f32 %v2855_v54, %v2834_v47  ;;  %v2863_v58 = vadd.f32 %v2857_v61, %v2836_v15  ;;  %v2882_v34 = vmul.f32 %v3844_v26, %v2880_v49  ;;  %v2884_v28 = vmul.f32 %v3846_v36, %v2880_v49  ;;  %v3874_v36 = vld [vmem:[%s6822_s4 + $0x2d8] sm:$0xff] }
 0x42d   : > { %v5980_v1 = vadd.f32 %v3016_v57, %v2995_v13  ;;  %v5982_v2 = vadd.f32 %v3018_v5, %v2997_v35  ;;  %v5984_v22 = vadd.f32 %v3020_v43, %v2999_v50  ;;  %v2865_v48 = vadd.f32 %v2859_v62, %v2838_v63  ;;  %v3858_v57 = vld [vmem:[%s6822_s4 + $0x258] sm:$0xff]  ;;  %v3860_v5 = vld [vmem:[%s6822_s4 + $0x268] sm:$0x3] }
 0x42e   : > { %v2886_v32 = vmul.f32 %v3848_v16, %v2880_v49  ;;  %v2888_v17 = vadd.f32 %v2882_v34, %v2861_v42  ;;  %v2890_v27 = vadd.f32 %v2884_v28, %v2863_v58  ;;  %v2907_v41 = vrot.slane %v5863_v55, %v5621_v56  ;;  %v3862_v43 = vld [vmem:[%s6822_s4 + $0x278] sm:$0xff]  ;;  %v3868_v49 = vld [vmem:[%s6822_s4 + $0x2a8] sm:$0xff]  ;;  %v3879_v58 = vld [vmem:[%s6822_s4 + $0x300] sm:$0xff] }
 0x42f   : > { %v2934_v21 = vrot.slane %v5863_v55, %v5623_v11  ;;  %v2961_v30 = vrot.slane %v5863_v55, %v5625_v9  ;;  %v2988_v37 = vrot.slane %v5863_v55, %v5627_v51  ;;  %v3015_v38 = vrot.slane %v5863_v55, %v5629_v18  ;;  %v3876_v13 = vld [vmem:[%s6822_s4 + $0x2e8] sm:$0xff]  ;;  %v3878_v35 = vld [vmem:[%s6822_s4 + $0x2f8] sm:$0x3] }
 0x430   : > { %v2892_v53 = vadd.f32 %v2886_v32, %v2865_v48  ;;  %v2909_v6 = vmul.f32 %v3850_v39, %v2907_v41  ;;  %v2911_v23 = vmul.f32 %v3852_v20, %v2907_v41  ;;  %v2913_v14 = vmul.f32 %v3854_v59, %v2907_v41  ;;  %v3881_v20 = vld [vmem:[%s6822_s4 + $0x310] sm:$0xff]  ;;  %v3883_v59 = vld [vmem:[%s6822_s4 + $0x320] sm:$0x3] }
 0x431   : > { %v2936_v4 = vmul.f32 %v3856_v7, %v2934_v21  ;;  %v2938_v47 = vmul.f32 %v3858_v57, %v2934_v21  ;;  %v2940_v26 = vmul.f32 %v3860_v5, %v2934_v21  ;;  %v2963_v55 = vmul.f32 %v3862_v43, %v2961_v30  ;;  %v3885_v7 = vld [vmem:[%s6822_s4 + $0x330] sm:$0xff]  ;;  %v3887_v41 = vld [vmem:[%s6822_s4 + $0x340] sm:$0xff] }
 0x432   : > { %v2915_v15 = vadd.f32 %v2909_v6, %v2888_v17  ;;  %v2917_v63 = vadd.f32 %v2911_v23, %v2890_v27  ;;  %v2919_v54 = vadd.f32 %v2913_v14, %v2892_v53  ;;  %v2965_v61 = vmul.f32 %v3864_v52, %v2961_v30  ;;  %v3889_v52 = vld [vmem:[%s6822_s4 + $0x350] sm:$0x3]  ;;  %v3891_v6 = vld [vmem:[%s6822_s4 + $0x360] sm:$0xff] }
 0x433   : > { %v2967_v50 = vmul.f32 %v3866_v3, %v2961_v30  ;;  %v2990_v62 = vmul.f32 %v3868_v49, %v2988_v37  ;;  %v2992_v16 = vmul.f32 %v3870_v45, %v2988_v37  ;;  %v2994_v42 = vmul.f32 %v3872_v60, %v2988_v37  ;;  %v3893_v60 = vld [vmem:[%s6822_s4 + $0x370] sm:$0xff] }
 0x434   : > { %v2942_v34 = vadd.f32 %v2936_v4, %v2915_v15  ;;  %v2944_v28 = vadd.f32 %v2938_v47, %v2917_v63  ;;  %v2946_v39 = vadd.f32 %v2940_v26, %v2919_v54  ;;  %v3017_v48 = vmul.f32 %v3874_v36, %v3015_v38  ;;  %v3895_v36 = vld [vmem:[%s6822_s4 + $0x380] sm:$0x3] }
 0x435   : > { %v3019_v32 = vmul.f32 %v3876_v13, %v3015_v38  ;;  %v3021_v17 = vmul.f32 %v3878_v35, %v3015_v38  ;;  %v3038_v27 = vrot.slane %v5865_v44, %v5615_v19  ;;  %v3065_v57 = vrot.slane %v5865_v44, %v5617_v46 }
 0x436   : > { %v2969_v5 = vadd.f32 %v2963_v55, %v2942_v34  ;;  %v2971_v43 = vadd.f32 %v2965_v61, %v2944_v28  ;;  %v2973_v21 = vadd.f32 %v2967_v50, %v2946_v39  ;;  %v3092_v3 = vrot.slane %v5865_v44, %v5619_v33  ;;  %v3905_v34 = vld [vmem:[%s6822_s4 + $0x3d0] sm:$0xff] }
 0x437   : > { %v3043_v30 = vmul.f32 %v3879_v58, %v3038_v27  ;;  %v3045_v37 = vmul.f32 %v3881_v20, %v3038_v27  ;;  %v3047_v38 = vmul.f32 %v3883_v59, %v3038_v27  ;;  %v3070_v53 = vmul.f32 %v3885_v7, %v3065_v57  ;;  %v3903_v58 = vld [vmem:[%s6822_s4 + $0x3c0] sm:$0xff] }
 0x438   : > { %v2996_v23 = vadd.f32 %v2990_v62, %v2969_v5  ;;  %v2998_v14 = vadd.f32 %v2992_v16, %v2971_v43  ;;  %v3000_v49 = vadd.f32 %v2994_v42, %v2973_v21  ;;  %v3072_v45 = vmul.f32 %v3887_v41, %v3065_v57  ;;  %v3907_v20 = vld [vmem:[%s6822_s4 + $0x3e0] sm:$0x3]  ;;  %v3913_v5 = vld [vmem:[%s6822_s4 + $0x410] sm:$0x3] }
 0x439   : > { %v3049_v4 = vadd.f32 %v3043_v30, %v5980_v1  ;;  %v3051_v47 = vadd.f32 %v3045_v37, %v5982_v2  ;;  %v3053_v26 = vadd.f32 %v3047_v38, %v5984_v22  ;;  %v3074_v55 = vmul.f32 %v3889_v52, %v3065_v57  ;;  %v3897_v1 = vld [vmem:[%s6822_s4 + $0x390] sm:$0xff]  ;;  %v3899_v2 = vld [vmem:[%s6822_s4 + $0x3a0] sm:$0xff] }
 0x43a   : > { %v3023_v15 = vadd.f32 %v3017_v48, %v2996_v23  ;;  %v3025_v63 = vadd.f32 %v3019_v32, %v2998_v14  ;;  %v3027_v54 = vadd.f32 %v3021_v17, %v3000_v49  ;;  %v3097_v61 = vmul.f32 %v3891_v6, %v3092_v3  ;;  %v3901_v22 = vld [vmem:[%s6822_s4 + $0x3b0] sm:$0x3]  ;;  %v3880_v23 = vld [vmem:[%s6822_s4 + $0x308] sm:$0xff]  ;;  %v1265_v49 = vpop.permute.xlu0 %1264 }
 0x43b   : > { %v3076_v13 = vadd.f32 %v3070_v53, %v3049_v4  ;;  %v3078_v35 = vadd.f32 %v3072_v45, %v3051_v47  ;;  %v3080_v50 = vadd.f32 %v3074_v55, %v3053_v26  ;;  %v3099_v62 = vmul.f32 %v3893_v60, %v3092_v3  ;;  %v3884_v14 = vld [vmem:[%s6822_s4 + $0x328] sm:$0x3]  ;;  %v3886_v60 = vld [vmem:[%s6822_s4 + $0x338] sm:$0xff] }
 0x43c   : > { %v3101_v16 = vmul.f32 %v3895_v36, %v3092_v3  ;;  %v3119_v42 = vrot.slane %v5865_v44, %v5621_v56  ;;  %v3146_v28 = vrot.slane %v5865_v44, %v5623_v11  ;;  %v6098_v59 = vrot.slane %v5865_v44, %v5625_v9  ;;  %v3888_v4 = vld [vmem:[%s6822_s4 + $0x348] sm:$0xff] }
 0x43d   : > { %v3103_v39 = vadd.f32 %v3097_v61, %v3076_v13  ;;  %v3105_v48 = vadd.f32 %v3099_v62, %v3078_v35  ;;  %v6104_v43 = vmax.f32 %v5843_v10, 0.0  ;;  %v3882_v10 = vld [vmem:[%s6822_s4 + $0x318] sm:$0xff]  ;;  %v4333_v26 = vadd.f32 %v5608_v24, %v5816_v40  ;;  %v3892_v24 = vld [vmem:[%s6822_s4 + $0x368] sm:$0xff] }
 0x43e   : > { %v3107_v7 = vadd.f32 %v3101_v16, %v3080_v50  ;;  %v3124_v32 = vmul.f32 %v3897_v1, %v3119_v42  ;;  %v3126_v17 = vmul.f32 %v3899_v2, %v3119_v42  ;;  %v3128_v27 = vmul.f32 %v3901_v22, %v3119_v42  ;;  %v3890_v61 = vld [vmem:[%s6822_s4 + $0x358] sm:$0x3] }
 0x43f   : > { %v3151_v41 = vmul.f32 %v3903_v58, %v3146_v28  ;;  %v3153_v57 = vmul.f32 %v3905_v34, %v3146_v28  ;;  %v3155_v30 = vmul.f32 %v3907_v20, %v3146_v28  ;;  %v3182_v6 = vmul.f32 %v3913_v5, %v6098_v59  ;;  %v3908_v5 = vld [vmem:[%s6822_s4 + $0x3e8] sm:$0x3] }
 0x440   : > { %v3130_v21 = vadd.f32 %v3124_v32, %v3103_v39  ;;  %v3132_v52 = vadd.f32 %v3126_v17, %v3105_v48  ;;  %v3134_v3 = vadd.f32 %v3128_v27, %v3107_v7  ;;  %v3042_v45 = vrot.slane %v6104_v43, %v5615_v19  ;;  %v3898_v39 = vld [vmem:[%s6822_s4 + $0x398] sm:$0xff]  ;;  %v3900_v48 = vld [vmem:[%s6822_s4 + $0x3a8] sm:$0xff] }
 0x441   : > { %v3069_v47 = vrot.slane %v6104_v43, %v5617_v46  ;;  %v6133_v55 = vadd.f32 %v5610_v29, %v1265_v49  ;;  %v3096_v13 = vrot.slane %v6104_v43, %v5619_v33  ;;  %v6143_v35 = vadd.f32 %v5612_v8, %v1265_v49  ;;  %v3894_v29 = vld [vmem:[%s6822_s4 + $0x378] sm:$0xff]  ;;  %v3896_v8 = vld [vmem:[%s6822_s4 + $0x388] sm:$0x3] }
 0x442   : > { %v6106_v37 = vadd.f32 %v3151_v41, %v3130_v21  ;;  %v6108_v38 = vadd.f32 %v3153_v57, %v3132_v52  ;;  %v3161_v53 = vadd.f32 %v3155_v30, %v3134_v3  ;;  %v3044_v50 = vmul.f32 %v3880_v23, %v3042_v45  ;;  %v3904_v57 = vld [vmem:[%s6822_s4 + $0x3c8] sm:$0xff] }
 0x443   : > { %v3046_v62 = vmul.f32 %v3882_v10, %v3042_v45  ;;  %v3048_v1 = vmul.f32 %v3884_v14, %v3042_v45  ;;  %v6153_v40 = vrot.slane %v5865_v44, %v5627_v51  ;;  %v3071_v2 = vmul.f32 %v3886_v60, %v3069_v47  ;;  %v3910_v14 = vld [vmem:[%s6822_s4 + $0x3f8] sm:$0xff]  ;;  %v3912_v49 = vld [vmem:[%s6822_s4 + $0x408] sm:$0xff] }
 0x444   : > { %v6135_v36 = vadd.f32 %v3182_v6, %v3161_v53  ;;  %v3073_v22 = vmul.f32 %v3888_v4, %v3069_v47  ;;  %v3123_v16 = vrot.slane %v6104_v43, %v5621_v56  ;;  %v3050_v42 = vadd.f32 %v3044_v50, %v3023_v15  ;;  %v3902_v15 = vld [vmem:[%s6822_s4 + $0x3b8] sm:$0x3] }
 0x445   : > { %v3052_v58 = vadd.f32 %v3046_v62, %v3025_v63  ;;  %v3054_v34 = vadd.f32 %v3048_v1, %v3027_v54  ;;  %v3075_v28 = vmul.f32 %v3890_v61, %v3069_v47  ;;  %v6168_v20 = vrot.slane %v5865_v44, %v5629_v18  ;;  %v3906_v44 = vld [vmem:[%s6822_s4 + $0x3d8] sm:$0xff] }
 0x446   : > { %v3098_v7 = vmul.f32 %v3892_v24, %v3096_v13  ;;  %v3100_v32 = vmul.f32 %v3894_v29, %v3096_v13  ;;  %v3150_v63 = vrot.slane %v6104_v43, %v5623_v11  ;;  %v3077_v54 = vadd.f32 %v3071_v2, %v3050_v42  ;;  %v3914_v45 = vld [vmem:[%s6822_s4 + $0x418] sm:$0x3] }
 0x447   : > { %v3079_v17 = vadd.f32 %v3073_v22, %v3052_v58  ;;  %v3081_v27 = vadd.f32 %v3075_v28, %v3054_v34  ;;  %v3102_v41 = vmul.f32 %v3896_v8, %v3096_v13  ;;  %v3125_v21 = vmul.f32 %v3898_v39, %v3123_v16  ;;  %v3911_v13 = vld [vmem:[%s6822_s4 + $0x400] sm:$0xff]  ;;  %v3918_v24 = vld [vmem:[%s6822_s4 + $0x438] sm:$0xff]  ;;  %v3924_v39 = vld [vmem:[%s6822_s4 + $0x468] sm:$0xff] }
 0x448   : > { %v3127_v52 = vmul.f32 %v3900_v48, %v3123_v16  ;;  %v3177_v3 = vrot.slane %v6104_v43, %v5625_v9  ;;  %v6188_v30 = vrot.slane %v6104_v43, %v5627_v51  ;;  %v3104_v53 = vadd.f32 %v3098_v7, %v3077_v54 }
 0x449   : > { %v3106_v6 = vadd.f32 %v3100_v32, %v3079_v17  ;;  %v3108_v23 = vadd.f32 %v3102_v41, %v3081_v27  ;;  %v3129_v10 = vmul.f32 %v3902_v15, %v3123_v16  ;;  %v3152_v60 = vmul.f32 %v3904_v57, %v3150_v63  ;;  %v3917_v16 = vld [vmem:[%s6822_s4 + $0x430] sm:$0xff]  ;;  %v3915_v41 = vld [vmem:[%s6822_s4 + $0x420] sm:$0xff] }
 0x44a   : > { %v3154_v4 = vmul.f32 %v3906_v44, %v3150_v63  ;;  %v3156_v47 = vmul.f32 %v3908_v5, %v3150_v63  ;;  %v6200_v61 = vmax.f32 %v5852_v0, 0.0  ;;  %v3131_v50 = vadd.f32 %v3125_v21, %v3104_v53  ;;  %v3909_v32 = vld [vmem:[%s6822_s4 + $0x3f0] sm:$0xff] }
 0x44b   : > { %v3133_v62 = vadd.f32 %v3127_v52, %v3106_v6  ;;  %v3135_v1 = vadd.f32 %v3129_v10, %v3108_v23  ;;  %v4334_v29 = vadd.f32 %v4333_v26, %v5731_v12  ;;  %v3179_v2 = vmul.f32 %v3910_v14, %v3177_v3  ;;  %v3935_v14 = vld [vmem:[%s6822_s4 + $0x4c0] sm:$0xff] }
 0x44c   : > { %v3181_v22 = vmul.f32 %v3912_v49, %v3177_v3  ;;  %v3183_v8 = vmul.f32 %v3914_v45, %v3177_v3  ;;  %v6211_v0 = vrot.slane %v6200_v61, %v5615_v19  ;;  %v3158_v42 = vadd.f32 %v3152_v60, %v3131_v50  ;;  %v3929_v3 = vld [vmem:[%s6822_s4 + $0x490] sm:$0xff] }
 0x44d   : > { %v3160_v58 = vadd.f32 %v3154_v4, %v3133_v62  ;;  %v3162_v34 = vadd.f32 %v3156_v47, %v3135_v1  ;;  %v6218_v28 = vrot.slane %v6104_v43, %v5629_v18  ;;  %v3180_v12 = vmul.f32 %v3911_v13, %v6098_v59  ;;  %v3942_v47 = vld [vmem:[%s6822_s4 + $0x4f8] sm:$0xff]  ;;  %v3925_v13 = vld [vmem:[%s6822_s4 + $0x470] sm:$0x3] }
 0x44e   : > { %v3208_v26 = vmul.f32 %v3918_v24, %v6188_v30  ;;  %v6225_v48 = vmax.f32 %v4334_v29, 0.0  ;;  %v4336_v7 = vadd.f32 %v6133_v55, %v5765_v25  ;;  %v6232_v15 = vadd.f32 %v3179_v2, %v3158_v42  ;;  %v3923_v25 = vld [vmem:[%s6822_s4 + $0x460] sm:$0xff]  ;;  %v3930_v55 = vld [vmem:[%s6822_s4 + $0x498] sm:$0xff]  ;;  %v3941_v29 = vld [vmem:[%s6822_s4 + $0x4f0] sm:$0xff] }
 0x44f   : > { %v3187_v43 = vadd.f32 %v3181_v22, %v3160_v58  ;;  %v6234_v63 = vadd.f32 %v3183_v8, %v3162_v34  ;;  %v4338_v54 = vadd.f32 %v6143_v35, %v5767_v31  ;;  %v3207_v17 = vmul.f32 %v3917_v16, %v6153_v40  ;;  %v3948_v2 = vld [vmem:[%s6822_s4 + $0x528] sm:$0xff] }
 0x450   : > { %v6241_v27 = vrot.slane %v6225_v48, %v5615_v19  ;;  %v3235_v31 = vmul.f32 %v3924_v39, %v6218_v28  ;;  %v6255_v35 = vrot.slane %v6225_v48, %v5617_v46  ;;  %v3186_v57 = vadd.f32 %v3180_v12, %v6108_v38  ;;  %v3936_v38 = vld [vmem:[%s6822_s4 + $0x4c8] sm:$0xff] }
 0x451   : > { %7166 = vst [vmem:[#allocation33_spill] sm:$0xff] %v6234_v63  ;;  %v3214_v44 = vadd.f32 %v3208_v26, %v3187_v43  ;;  %v6259_v5 = vmul.f32 %v3909_v32, %v6098_v59  ;;  %v6263_v21 = vrot.slane %v6200_v61, %v5617_v46  ;;  %v6267_v52 = vrot.slane %v6225_v48, %v5619_v33  ;;  %v3919_v59 = vld [vmem:[%s6822_s4 + $0x440] sm:$0x3]  ;;  %v3954_v43 = vld [vmem:[%s6822_s4 + $0x558] sm:$0xff] }
 0x452   : > { %v3213_v53 = vadd.f32 %v3207_v17, %v3186_v57  ;;  %v3234_v6 = vmul.f32 %v3923_v25, %v6168_v20  ;;  %v3262_v10 = vmul.f32 %v3930_v55, %v6241_v27  ;;  %v6284_v49 = vmul.f32 %v3915_v41, %v6153_v40  ;;  %v3916_v17 = vld [vmem:[%s6822_s4 + $0x428] sm:$0xff]  ;;  %v3922_v25 = vld [vmem:[%s6822_s4 + $0x458] sm:$0xff] }
 0x453   : > { %v3241_v23 = vadd.f32 %v3235_v31, %v3214_v44  ;;  %v6288_v45 = vrot.slane %v6200_v61, %v5619_v33  ;;  %v6292_v60 = vrot.slane %v6225_v48, %v5621_v56  ;;  %v6294_v4 = vmax.f32 %v4336_v7, 0.0  ;;  %v3947_v7 = vld [vmem:[%s6822_s4 + $0x520] sm:$0xff]  ;;  %v3953_v31 = vld [vmem:[%s6822_s4 + $0x550] sm:$0xff] }
 0x454   : > { %v3240_v50 = vadd.f32 %v3234_v6, %v3213_v53  ;;  %v3261_v62 = vmul.f32 %v3929_v3, %v6211_v0  ;;  %v3289_v24 = vmul.f32 %v3936_v38, %v6255_v35  ;;  %v6311_v22 = vmul.f32 %v3919_v59, %v6153_v40  ;;  %v3960_v3 = vld [vmem:[%s6822_s4 + $0x588] sm:$0xff] }
 0x455   : > { %v3268_v1 = vadd.f32 %v3262_v10, %v3241_v23  ;;  %v6315_v8 = vrot.slane %v6200_v61, %v5621_v56  ;;  %v6317_v16 = vmax.f32 %v4338_v54, 0.0  ;;  %v3288_v42 = vmul.f32 %v3935_v14, %v6263_v21 }
 0x456   : > { %v3267_v58 = vadd.f32 %v3261_v62, %v3240_v50  ;;  %v3316_v12 = vmul.f32 %v3942_v47, %v6267_v52  ;;  %v6323_v26 = vrot.slane %v6225_v48, %v5623_v11  ;;  %v6326_v39 = vmul.f32 %v3925_v13, %v6168_v20  ;;  %v3959_v13 = vld [vmem:[%s6822_s4 + $0x580] sm:$0xff]  ;;  %v3965_v50 = vld [vmem:[%s6822_s4 + $0x5b0] sm:$0xff]  ;;  %v3966_v62 = vld [vmem:[%s6822_s4 + $0x5b8] sm:$0xff] }
 0x457   : > { %v3295_v34 = vadd.f32 %v3289_v24, %v3268_v1  ;;  %v3315_v40 = vmul.f32 %v3941_v29, %v6288_v45  ;;  %v3343_v32 = vmul.f32 %v3948_v2, %v6292_v60  ;;  %v6338_v54 = vrot.slane %v6200_v61, %v5623_v11 }
 0x458   : > { %7167 = vst [vmem:[#allocation26_spill] sm:$0xff] %v6326_v39  ;;  %v3294_v55 = vadd.f32 %v3288_v42, %v3267_v58  ;;  %v6351_v57 = vrot.slane %v6225_v48, %v5625_v9  ;;  %v6355_v44 = vrot.slane %v6294_v4, %v5615_v19  ;;  %v6362_v38 = vrot.slane %v6200_v61, %v5625_v9 }
 0x459   : > { %v3322_v41 = vadd.f32 %v3316_v12, %v3295_v34  ;;  %v6366_v59 = vrot.slane %v6200_v61, %v5627_v51  ;;  %v6370_v53 = vrot.slane %v6225_v48, %v5627_v51  ;;  %v6374_v6 = vrot.slane %v6317_v16, %v5615_v19  ;;  %v3971_v34 = vld [vmem:[%s6822_s4 + $0x5e0] sm:$0xff] }
 0x45a   : > { %v3321_v23 = vadd.f32 %v3315_v40, %v3294_v55  ;;  %v3342_v10 = vmul.f32 %v3947_v7, %v6315_v8  ;;  %v3370_v47 = vmul.f32 %v3954_v43, %v6323_v26  ;;  %v3206_v19 = vmul.f32 %v3916_v17, %v6188_v30  ;;  %v3978_v55 = vld [vmem:[%s6822_s4 + $0x618] sm:$0xff] }
 0x45b   : > { %v3349_v14 = vadd.f32 %v3343_v32, %v3322_v41  ;;  %v3233_v1 = vmul.f32 %v3922_v25, %v6218_v28  ;;  %v3369_v24 = vmul.f32 %v3953_v31, %v6338_v54  ;;  %v6392_v29 = vrot.slane %v6200_v61, %v5629_v18  ;;  %v3972_v61 = vld [vmem:[%s6822_s4 + $0x5e8] sm:$0xff]  ;;  %v3983_v41 = vld [vmem:[%s6822_s4 + $0x640] sm:$0xff] }
 0x45c   : > { %v3348_v2 = vadd.f32 %v3342_v10, %v3321_v23  ;;  %v3397_v58 = vmul.f32 %v3960_v3, %v6351_v57  ;;  %v6400_v12 = vrot.slane %v6225_v48, %v5629_v18  ;;  %v3396_v40 = vmul.f32 %v3959_v13, %v6362_v38  ;;  %v3977_v48 = vld [vmem:[%s6822_s4 + $0x610] sm:$0xff]  ;;  %v3984_v10 = vld [vmem:[%s6822_s4 + $0x648] sm:$0xff] }
 0x45d   : > { %v3376_v42 = vadd.f32 %v3370_v47, %v3349_v14  ;;  %v3423_v7 = vmul.f32 %v3965_v50, %v6366_v59  ;;  %v3424_v32 = vmul.f32 %v3966_v62, %v6370_v53  ;;  %v6410_v43 = vrot.slane %v6294_v4, %v5617_v46  ;;  %v3989_v14 = vld [vmem:[%s6822_s4 + $0x670] sm:$0xff] }
 0x45e   : > { %v3375_v17 = vadd.f32 %v3369_v24, %v3348_v2  ;;  %v6423_v31 = vrot.slane %v6317_v16, %v5617_v46  ;;  %v6427_v3 = vrot.slane %v6294_v4, %v5619_v33  ;;  %v3450_v23 = vmul.f32 %v3971_v34, %v6392_v29  ;;  %v3990_v2 = vld [vmem:[%s6822_s4 + $0x678] sm:$0xff] }
 0x45f   : > { %7168 = vst [vmem:[#allocation36_spill] sm:$0xff] %v6410_v43  ;;  %v3403_v25 = vadd.f32 %v3397_v58, %v3376_v42  ;;  %v6438_v47 = vrot.slane %v6317_v16, %v5619_v33  ;;  %v6442_v46 = vrot.slane %v6294_v4, %v5621_v56  ;;  %v6446_v13 = vrot.slane %v6317_v16, %v5621_v56  ;;  %v3995_v33 = vld [vmem:[%s6822_s4 + $0x6a0] sm:$0xff]  ;;  %v3996_v42 = vld [vmem:[%s6822_s4 + $0x6a8] sm:$0xff] }
 0x460   : > { %v3402_v50 = vadd.f32 %v3396_v40, %v3375_v17  ;;  %v3451_v24 = vmul.f32 %v3972_v61, %v6400_v12  ;;  %v6460_v56 = vrot.slane %v6294_v4, %v5623_v11  ;;  %v3477_v58 = vmul.f32 %v3977_v48, %v6355_v44  ;;  %v4002_v48 = vld [vmem:[%s6822_s4 + $0x6d8] sm:$0xff] }
 0x461   : > { %v3430_v62 = vadd.f32 %v3424_v32, %v3403_v25  ;;  %v3478_v34 = vmul.f32 %v3978_v55, %v6374_v6  ;;  %v3504_v40 = vmul.f32 %v3983_v41, %v6410_v43  ;;  %v4001_v32 = vld [vmem:[%s6822_s4 + $0x6d0] sm:$0xff]  ;;  %v6470_v61 = vrot.slane %v6317_v16, %v5623_v11 }
 0x462   : > { %v3429_v17 = vadd.f32 %v3423_v7, %v3402_v50  ;;  %v3505_v39 = vmul.f32 %v3984_v10, %v6423_v31  ;;  %v3531_v63 = vmul.f32 %v3989_v14, %v6427_v3  ;;  %v3921_v55 = vld [vmem:[%s6822_s4 + $0x450] sm:$0xff]  ;;  %v3532_v41 = vmul.f32 %v3990_v2, %v6438_v47  ;;  %v3928_v10 = vld [vmem:[%s6822_s4 + $0x488] sm:$0xff]  ;;  %v3927_v2 = vld [vmem:[%s6822_s4 + $0x480] sm:$0xff] }
 0x463   : > { %v3457_v25 = vadd.f32 %v3451_v24, %v3430_v62  ;;  %v3558_v43 = vmul.f32 %v3995_v33, %v6442_v46  ;;  %v3559_v11 = vmul.f32 %v3996_v42, %v6446_v13  ;;  %v3184_v7 = vadd.f32 %v6259_v5, %v6106_v37 }
 0x464   : > { %v3456_v14 = vadd.f32 %v3450_v23, %v3429_v17  ;;  %v3585_v62 = vmul.f32 %v4001_v32, %v6460_v56  ;;  %v3212_v24 = vadd.f32 %v3206_v19, %v6232_v15  ;;  %v3586_v33 = vmul.f32 %v4002_v48, %v6470_v61  ;;  %v3934_v23 = vld [vmem:[%s6822_s4 + $0x4b8] sm:$0xff]  ;;  %v4007_v19 = vld [vmem:[%s6822_s4 + $0x700] sm:$0xff] }
 0x465   : > { %v3484_v50 = vadd.f32 %v3478_v34, %v3457_v25  ;;  %v6496_v42 = vrot.slane %v6294_v4, %v5625_v9  ;;  %v3211_v37 = vadd.f32 %v6284_v49, %v3184_v7  ;;  %v3232_v5 = vmul.f32 %v3921_v55, %v6168_v20  ;;  %v3933_v25 = vld [vmem:[%s6822_s4 + $0x4b0] sm:$0xff]  ;;  %v4008_v7 = vld [vmem:[%s6822_s4 + $0x708] sm:$0xff] }
 0x466   : > { %v3483_v34 = vadd.f32 %v3477_v58, %v3456_v14  ;;  %v3239_v32 = vadd.f32 %v3233_v1, %v3212_v24  ;;  %v3260_v17 = vmul.f32 %v3928_v10, %v6241_v27  ;;  %v6512_v20 = vrot.slane %v6317_v16, %v5625_v9  ;;  %v3940_v1 = vld [vmem:[%s6822_s4 + $0x4e8] sm:$0xff]  ;;  %v3939_v14 = vld [vmem:[%s6822_s4 + $0x4e0] sm:$0xff] }
 0x467   : > { %v3511_v15 = vadd.f32 %v3505_v39, %v3484_v50  ;;  %v6516_v49 = vrot.slane %v6294_v4, %v5627_v51  ;;  %v3238_v39 = vadd.f32 %v3232_v5, %v3211_v37  ;;  %v3259_v58 = vmul.f32 %v3927_v2, %v6211_v0 }
 0x468   : > { %v3510_v48 = vadd.f32 %v3504_v40, %v3483_v34  ;;  %v3266_v10 = vadd.f32 %v3260_v17, %v3239_v32  ;;  %v3287_v9 = vmul.f32 %v3934_v23, %v6255_v35  ;;  %v3612_v50 = vmul.f32 %v4007_v19, %v6496_v42  ;;  %v4014_v23 = vld [vmem:[%s6822_s4 + $0x738] sm:$0xff] }
 0x469   : > { %v3538_v55 = vadd.f32 %v3532_v41, %v3511_v15  ;;  %v6532_v24 = vrot.slane %v6317_v16, %v5627_v51  ;;  %v3265_v2 = vadd.f32 %v3259_v58, %v3238_v39  ;;  %v3286_v40 = vmul.f32 %v3933_v25, %v6263_v21  ;;  %v3946_v41 = vld [vmem:[%s6822_s4 + $0x518] sm:$0xff]  ;;  %v3945_v51 = vld [vmem:[%s6822_s4 + $0x510] sm:$0xff] }
 0x46a   : > { %v3537_v37 = vadd.f32 %v3531_v63, %v3510_v48  ;;  %v3293_v34 = vadd.f32 %v3287_v9, %v3266_v10  ;;  %v3314_v15 = vmul.f32 %v3940_v1, %v6267_v52  ;;  %v3613_v19 = vmul.f32 %v4008_v7, %v6512_v20  ;;  %v4013_v58 = vld [vmem:[%s6822_s4 + $0x730] sm:$0xff]  ;;  %v4020_v1 = vld [vmem:[%s6822_s4 + $0x768] sm:$0xff]  ;;  %v3958_v9 = vld [vmem:[%s6822_s4 + $0x578] sm:$0xff] }
 0x46b   : > { %v3565_v5 = vadd.f32 %v3559_v11, %v3538_v55  ;;  %v6548_v32 = vrot.slane %v6317_v16, %v5629_v18  ;;  %v3292_v17 = vadd.f32 %v3286_v40, %v3265_v2  ;;  %v3313_v63 = vmul.f32 %v3939_v14, %v6288_v45  ;;  %v3952_v11 = vld [vmem:[%s6822_s4 + $0x548] sm:$0xff]  ;;  %v3951_v55 = vld [vmem:[%s6822_s4 + $0x540] sm:$0xff] }
 0x46c   : > { %v3564_v25 = vadd.f32 %v3558_v43, %v3537_v37  ;;  %v3320_v48 = vadd.f32 %v3314_v15, %v3293_v34  ;;  %v3341_v16 = vmul.f32 %v3946_v41, %v6292_v60  ;;  %v3640_v7 = vmul.f32 %v4014_v23, %v6532_v24  ;;  %v3920_v14 = vld [vmem:[%s6822_s4 + $0x448] sm:$0x3]  ;;  %v4019_v41 = vld [vmem:[%s6822_s4 + $0x760] sm:$0xff] }
 0x46d   : > { %v3592_v39 = vadd.f32 %v3586_v33, %v3565_v5  ;;  %v6567_v43 = vrot.slane %v6294_v4, %v5629_v18  ;;  %v3319_v33 = vadd.f32 %v3313_v63, %v3292_v17  ;;  %v3340_v10 = vmul.f32 %v3945_v51, %v6315_v8  ;;  %v3957_v4 = vld [vmem:[%s6822_s4 + $0x570] sm:$0xff]  ;;  %v3926_v51 = vld [vmem:[%s6822_s4 + $0x478] sm:$0x3] }
 0x46e   : > { %v3591_v2 = vadd.f32 %v3585_v62, %v3564_v25  ;;  %v3347_v37 = vadd.f32 %v3341_v16, %v3320_v48  ;;  %v3368_v18 = vmul.f32 %v3952_v11, %v6323_v26  ;;  %v3639_v5 = vmul.f32 %v4013_v58, %v6516_v49  ;;  %v3964_v62 = vld [vmem:[%s6822_s4 + $0x5a8] sm:$0xff]  ;;  %v3963_v25 = vld [vmem:[%s6822_s4 + $0x5a0] sm:$0xff] }
 0x46f   : > { %v3619_v40 = vadd.f32 %v3613_v19, %v3592_v39  ;;  %v3667_v23 = vmul.f32 %v4020_v1, %v6548_v32  ;;  %v3346_v34 = vadd.f32 %v3340_v10, %v3319_v33  ;;  %v3367_v15 = vmul.f32 %v3951_v55, %v6338_v54  ;;  %v3969_v39 = vld [vmem:[%s6822_s4 + $0x5d0] sm:$0xff] }
 0x470   : > { %v3618_v19 = vadd.f32 %v3612_v50, %v3591_v2  ;;  %v3374_v63 = vadd.f32 %v3368_v18, %v3347_v37  ;;  %v3395_v11 = vmul.f32 %v3958_v9, %v6351_v57  ;;  %v3210_v58 = vmul.f32 %v3920_v14, %v6188_v30  ;;  %v3970_v50 = vld [vmem:[%s6822_s4 + $0x5d8] sm:$0xff]  ;;  %v3975_v9 = vld [vmem:[%s6822_s4 + $0x600] sm:$0xff] }
 0x471   : > { %v3646_v17 = vadd.f32 %v3640_v7, %v3619_v40  ;;  %v3666_v1 = vmul.f32 %v4019_v41, %v6567_v43  ;;  %v3373_v48 = vadd.f32 %v3367_v15, %v3346_v34  ;;  %v3394_v16 = vmul.f32 %v3957_v4, %v6362_v38  ;;  %v3976_v41 = vld [vmem:[%s6822_s4 + $0x608] sm:$0xff]  ;;  %v3931_v37 = vld [vmem:[%s6822_s4 + $0x4a0] sm:$0x3] }
 0x472   : > { %v3645_v55 = vadd.f32 %v3639_v5, %v3618_v19  ;;  %v3401_v33 = vadd.f32 %v3395_v11, %v3374_v63  ;;  %v3422_v10 = vmul.f32 %v3964_v62, %v6370_v53  ;;  %v3237_v30 = vmul.f32 %v3926_v51, %v6218_v28  ;;  %v3932_v28 = vld [vmem:[%s6822_s4 + $0x4a8] sm:$0x3]  ;;  %v3981_v62 = vld [vmem:[%s6822_s4 + $0x630] sm:$0xff]  ;;  %v3982_v51 = vld [vmem:[%s6822_s4 + $0x638] sm:$0xff] }
 0x473   : > { %v3673_v7 = vadd.f32 %v3667_v23, %v3646_v17  ;;  %v3400_v14 = vadd.f32 %v3394_v16, %v3373_v48  ;;  %v3421_v2 = vmul.f32 %v3963_v25, %v6366_v59  ;;  %v3448_v40 = vmul.f32 %v3969_v39, %v6392_v29  ;;  %v7169_v17 = vld [vmem:[#allocation33_spill] sm:$0xff]  ;;  %v3937_v11 = vld [vmem:[%s6822_s4 + $0x4d0] sm:$0x3] }
 0x474   : > { %v3672_v18 = vadd.f32 %v3666_v1, %v3645_v55  ;;  %v3428_v5 = vadd.f32 %v3422_v10, %v3401_v33  ;;  %v3449_v23 = vmul.f32 %v3970_v50, %v6400_v12  ;;  %v3475_v15 = vmul.f32 %v3975_v9, %v6355_v44  ;;  %v3938_v16 = vld [vmem:[%s6822_s4 + $0x4d8] sm:$0x3]  ;;  %v7171_v9 = vld [vmem:[#allocation36_spill] sm:$0xff] }
 0x475   : > { %v3680_v4 = vsel %vm940_vm11, %v3673_v7, 0.0  ;;  %v3427_v34 = vadd.f32 %v3421_v2, %v3400_v14  ;;  %v3215_v19 = vadd.f32 %v6311_v22, %v6135_v36  ;;  %v3216_v63 = vadd.f32 %v3210_v58, %v7169_v17  ;;  %v3987_v36 = vld [vmem:[%s6822_s4 + $0x660] sm:$0xff]  ;;  %v3988_v22 = vld [vmem:[%s6822_s4 + $0x668] sm:$0xff] }
 0x476   : > { %v3681_v25 = vadd.f32 %v3680_v4, %v3672_v18  ;;  %v3455_v39 = vadd.f32 %v3449_v23, %v3428_v5  ;;  %v3476_v1 = vmul.f32 %v3976_v41, %v6374_v6  ;;  %v3263_v48 = vmul.f32 %v3931_v37, %v6211_v0  ;;  %v7170_v58 = vld [vmem:[#allocation26_spill] sm:$0xff]  ;;  %v3944_v41 = vld [vmem:[%s6822_s4 + $0x508] sm:$0x3] }
 0x477   : > { %v3454_v50 = vadd.f32 %v3448_v40, %v3427_v34  ;;  %v3242_v55 = vadd.f32 %v7170_v58, %v3215_v19  ;;  %v3243_v7 = vadd.f32 %v3237_v30, %v3216_v63  ;;  %v3264_v33 = vmul.f32 %v3932_v28, %v6241_v27  ;;  %v3943_v0 = vld [vmem:[%s6822_s4 + $0x500] sm:$0x3]  ;;  %v3993_v27 = vld [vmem:[%s6822_s4 + $0x690] sm:$0xff]  ;;  %v3994_v30 = vld [vmem:[%s6822_s4 + $0x698] sm:$0xff] }
 0x478   : > { %3682 = vadd.xlane.f32.xlu0 %v3681_v25  ;;  %v3482_v10 = vadd.f32 %v3476_v1, %v3455_v39  ;;  %v3502_v14 = vmul.f32 %v3981_v62, %v7171_v9  ;;  %v3503_v2 = vmul.f32 %v3982_v51, %v6423_v31  ;;  %v3290_v40 = vmul.f32 %v3937_v11, %v6263_v21  ;;  %v3949_v21 = vld [vmem:[%s6822_s4 + $0x530] sm:$0x3]  ;;  %v3950_v62 = vld [vmem:[%s6822_s4 + $0x538] sm:$0x3]  ;;  %v4000_v19 = vld [vmem:[%s6822_s4 + $0x6c8] sm:$0xff] }
 0x479   : > { %v3481_v37 = vadd.f32 %v3475_v15, %v3454_v50  ;;  %v3269_v18 = vadd.f32 %v3263_v48, %v3242_v55  ;;  %v3270_v4 = vadd.f32 %v3264_v33, %v3243_v7  ;;  %v3291_v5 = vmul.f32 %v3938_v16, %v6255_v35  ;;  %v3999_v35 = vld [vmem:[%s6822_s4 + $0x6c0] sm:$0xff]  ;;  %v3956_v16 = vld [vmem:[%s6822_s4 + $0x568] sm:$0x3] }
 0x47a   : > { %v3509_v23 = vadd.f32 %v3503_v2, %v3482_v10  ;;  %v3529_v28 = vmul.f32 %v3987_v36, %v6427_v3  ;;  %v3530_v34 = vmul.f32 %v3988_v22, %v6438_v47  ;;  %v3317_v15 = vmul.f32 %v3943_v0, %v6288_v45  ;;  %v3955_v45 = vld [vmem:[%s6822_s4 + $0x560] sm:$0x3]  ;;  %v4006_v36 = vld [vmem:[%s6822_s4 + $0x6f8] sm:$0xff] }
 0x47b   : > { %v3508_v51 = vadd.f32 %v3502_v14, %v3481_v37  ;;  %v3296_v17 = vadd.f32 %v3290_v40, %v3269_v18  ;;  %v3297_v63 = vadd.f32 %v3291_v5, %v3270_v4  ;;  %v3318_v11 = vmul.f32 %v3944_v41, %v6267_v52  ;;  %v4005_v52 = vld [vmem:[%s6822_s4 + $0x6f0] sm:$0xff]  ;;  %v3962_v14 = vld [vmem:[%s6822_s4 + $0x598] sm:$0x3]  ;;  %v4012_v40 = vld [vmem:[%s6822_s4 + $0x728] sm:$0xff] }
 0x47c   : > { %v3536_v25 = vadd.f32 %v3530_v34, %v3509_v23  ;;  %v3556_v39 = vmul.f32 %v3993_v27, %v6442_v46  ;;  %v3557_v1 = vmul.f32 %v3994_v30, %v6446_v13  ;;  %v3344_v48 = vmul.f32 %v3949_v21, %v6315_v8  ;;  %v3961_v8 = vld [vmem:[%s6822_s4 + $0x590] sm:$0x3]  ;;  %v3968_v21 = vld [vmem:[%s6822_s4 + $0x5c8] sm:$0x3] }
 0x47d   : > { %v3535_v50 = vadd.f32 %v3529_v28, %v3508_v51  ;;  %v3323_v22 = vadd.f32 %v3317_v15, %v3296_v17  ;;  %v3324_v58 = vadd.f32 %v3318_v11, %v3297_v63  ;;  %v3345_v55 = vmul.f32 %v3950_v62, %v6292_v60  ;;  %v4011_v60 = vld [vmem:[%s6822_s4 + $0x720] sm:$0xff]  ;;  %v4018_v28 = vld [vmem:[%s6822_s4 + $0x758] sm:$0xff] }
 0x47e   : > { %v3563_v7 = vadd.f32 %v3557_v1, %v3536_v25  ;;  %v3583_v33 = vmul.f32 %v3999_v35, %v6460_v56  ;;  %v3584_v0 = vmul.f32 %v4000_v19, %v6470_v61  ;;  %v3371_v10 = vmul.f32 %v3955_v45, %v6338_v54  ;;  %v3967_v54 = vld [vmem:[%s6822_s4 + $0x5c0] sm:$0x3]  ;;  %v3974_v63 = vld [vmem:[%s6822_s4 + $0x5f8] sm:$0x3] }
 0x47f   : > { %v3562_v2 = vadd.f32 %v3556_v39, %v3535_v50  ;;  %v3350_v41 = vadd.f32 %v3344_v48, %v3323_v22  ;;  %v3351_v37 = vadd.f32 %v3345_v55, %v3324_v58  ;;  %v3372_v27 = vmul.f32 %v3956_v16, %v6323_v26  ;;  %v4017_v26 = vld [vmem:[%s6822_s4 + $0x750] sm:$0xff]  ;;  %v3979_v39 = vld [vmem:[%s6822_s4 + $0x620] sm:$0x3]  ;;  %v3980_v50 = vld [vmem:[%s6822_s4 + $0x628] sm:$0x3] }
 0x480   : > { %v3590_v30 = vadd.f32 %v3584_v0, %v3563_v7  ;;  %v3610_v18 = vmul.f32 %v4005_v52, %v6496_v42  ;;  %v3611_v4 = vmul.f32 %v4006_v36, %v6512_v20  ;;  %v3398_v5 = vmul.f32 %v3961_v8, %v6362_v38  ;;  %v3973_v38 = vld [vmem:[%s6822_s4 + $0x5f0] sm:$0x3] }
 0x481   : > { %v3589_v23 = vadd.f32 %v3583_v33, %v3562_v2  ;;  %v3377_v34 = vadd.f32 %v3371_v10, %v3350_v41  ;;  %v3378_v15 = vadd.f32 %v3372_v27, %v3351_v37  ;;  %v3399_v62 = vmul.f32 %v3962_v14, %v6351_v57  ;;  %v3985_v58 = vld [vmem:[%s6822_s4 + $0x650] sm:$0x3]  ;;  %v3991_v2 = vld [vmem:[%s6822_s4 + $0x680] sm:$0x3] }
 0x482   : > { %v3617_v51 = vadd.f32 %v3611_v4, %v3590_v30  ;;  %v3637_v35 = vmul.f32 %v4011_v60, %v6516_v49  ;;  %v3638_v19 = vmul.f32 %v4012_v40, %v6532_v24  ;;  %v3425_v17 = vmul.f32 %v3967_v54, %v6366_v59  ;;  %v4003_v4 = vld [vmem:[%s6822_s4 + $0x6e0] sm:$0x3] }
 0x483   : > { %v3616_v11 = vadd.f32 %v3610_v18, %v3589_v23  ;;  %v3404_v45 = vadd.f32 %v3398_v5, %v3377_v34  ;;  %v3405_v25 = vadd.f32 %v3399_v62, %v3378_v15  ;;  %v3426_v57 = vmul.f32 %v3968_v21, %v6370_v53 }
 0x484   : > { %v3644_v1 = vadd.f32 %v3638_v19, %v3617_v51  ;;  %v3664_v48 = vmul.f32 %v4017_v26, %v6567_v43  ;;  %v3665_v16 = vmul.f32 %v4018_v28, %v6548_v32  ;;  %v3452_v59 = vmul.f32 %v3973_v38, %v6392_v29  ;;  %v3986_v29 = vld [vmem:[%s6822_s4 + $0x658] sm:$0x3] }
 0x485   : > { %v3643_v52 = vadd.f32 %v3637_v35, %v3616_v11  ;;  %v3431_v36 = vadd.f32 %v3425_v17, %v3404_v45  ;;  %v3432_v22 = vadd.f32 %v3426_v57, %v3405_v25  ;;  %v3453_v53 = vmul.f32 %v3974_v63, %v6400_v12 }
 0x486   : > { %v3671_v55 = vadd.f32 %v3665_v16, %v3644_v1  ;;  %v3479_v8 = vmul.f32 %v3979_v39, %v6355_v44  ;;  %v3480_v10 = vmul.f32 %v3980_v50, %v6374_v6  ;;  %v3506_v12 = vmul.f32 %v3985_v58, %v7171_v9  ;;  %v3992_v44 = vld [vmem:[%s6822_s4 + $0x688] sm:$0x3]  ;;  %v3997_v6 = vld [vmem:[%s6822_s4 + $0x6b0] sm:$0x3]  ;;  %v3998_v9 = vld [vmem:[%s6822_s4 + $0x6b8] sm:$0x3] }
 0x487   : > { %v3670_v7 = vadd.f32 %v3664_v48, %v3643_v52  ;;  %v3458_v33 = vadd.f32 %v3452_v59, %v3431_v36  ;;  %v3459_v0 = vadd.f32 %v3453_v53, %v3432_v22  ;;  %v3507_v37 = vmul.f32 %v3986_v29, %v6423_v31  ;;  %v4004_v31 = vld [vmem:[%s6822_s4 + $0x6e8] sm:$0x3] }
 0x488   : > { %v3676_v14 = vsel %vm940_vm11, %v3671_v55, 0.0  ;;  %v3533_v30 = vmul.f32 %v3991_v2, %v6427_v3  ;;  %v3534_v18 = vmul.f32 %v3992_v44, %v6438_v47  ;;  %v3560_v23 = vmul.f32 %v3997_v6, %v6442_v46  ;;  %v4009_v3 = vld [vmem:[%s6822_s4 + $0x710] sm:$0x3]  ;;  %v4010_v47 = vld [vmem:[%s6822_s4 + $0x718] sm:$0x3] }
 0x489   : > { %v3677_v60 = vadd.f32 %v3676_v14, %v3670_v7  ;;  %v3485_v40 = vadd.f32 %v3479_v8, %v3458_v33  ;;  %v3486_v41 = vadd.f32 %v3480_v10, %v3459_v0  ;;  %v3561_v26 = vmul.f32 %v3998_v9, %v6446_v13  ;;  %v4015_v46 = vld [vmem:[%s6822_s4 + $0x740] sm:$0x3]  ;;  %v4016_v13 = vld [vmem:[%s6822_s4 + $0x748] sm:$0x3] }
 0x48a   : > { %v3587_v15 = vmul.f32 %v4003_v4, %v6460_v56  ;;  %v3588_v62 = vmul.f32 %v4004_v31, %v6470_v61  ;;  %v3614_v35 = vmul.f32 %v4009_v3, %v6496_v42  ;;  %v3615_v19 = vmul.f32 %v4010_v47, %v6512_v20  ;;  %v4021_v56 = vld [vmem:[%s6822_s4 + $0x770] sm:$0x3]  ;;  %v4022_v61 = vld [vmem:[%s6822_s4 + $0x778] sm:$0x3] }
 0x48b   : > { %3678 = vadd.xlane.f32.xlu1 %v3677_v60  ;;  %v3512_v27 = vadd.f32 %v3506_v12, %v3485_v40  ;;  %v3513_v54 = vadd.f32 %v3507_v37, %v3486_v41  ;;  %v3641_v11 = vmul.f32 %v4015_v46, %v6516_v49  ;;  %v3642_v45 = vmul.f32 %v4016_v13, %v6532_v24 }
 0x48c   : > { %v3668_v42 = vmul.f32 %v4021_v56, %v6567_v43  ;;  %v3669_v20 = vmul.f32 %v4022_v61, %v6548_v32 }
 0x48d   : > { %v3539_v5 = vadd.f32 %v3533_v30, %v3512_v27  ;;  %v3540_v21 = vadd.f32 %v3534_v18, %v3513_v54 }
 0x48f   : > { %v3566_v28 = vadd.f32 %v3560_v23, %v3539_v5  ;;  %v3567_v34 = vadd.f32 %v3561_v26, %v3540_v21 }
 0x491   : > { %v3593_v38 = vadd.f32 %v3587_v15, %v3566_v28  ;;  %v3594_v51 = vadd.f32 %v3588_v62, %v3567_v34 }
 0x493   : > { %v3620_v17 = vadd.f32 %v3614_v35, %v3593_v38  ;;  %v3621_v63 = vadd.f32 %v3615_v19, %v3594_v51 }
 0x495   : > { %v3647_v25 = vadd.f32 %v3641_v11, %v3620_v17  ;;  %v3648_v57 = vadd.f32 %v3642_v45, %v3621_v63 }
 0x497   : > { %v3674_v39 = vadd.f32 %v3668_v42, %v3647_v25  ;;  %v3675_v1 = vadd.f32 %v3669_v20, %v3648_v57 }
 0x499   : > { %v3685_v48 = vsel %vm3684_vm0, %v3674_v39, 0.0  ;;  %v3687_v16 = vsel %vm3686_vm1, %v3675_v1, 0.0 }
 0x49a   : > { %v3688_v59 = vadd.f32 %v3687_v16, %v3685_v48 }
 0x49c   : > { %3689 = vadd.xlane.f32.xlu0 %v3688_v59 }
 0x505   : > { %v3683_v50 = vpop.xlane.xlu0 %3682 }
 0x518   : > { %v3679_v52 = vpop.xlane.xlu1 %3678 }
 0x519   : > { %v3692_v49 = vmax.f32 %v3679_v52, %v3683_v50 }
 0x529   : > { %v3690_v36 = vpop.xlane.xlu0 %3689 }
 0x52a   : > { %v3691_v24 = vsel %vm3684_vm0, %v3690_v36, -inf }
 0x52b   : > { %v3693_v22 = vmax.f32 %v3692_v49, %v3691_v24 }
 0x52d   : > { %v3694_v53 = vrot.slane %v3693_v22, 4 }
 0x52f   : > { %v3695_v43 = vmax.f32 %v3693_v22, %v3694_v53 }
 0x531   : > { %v3696_v58 = vrot.slane %v3695_v43, 2 }
 0x533   : > { %v3697_v32 = vmax.f32 %v3695_v43, %v3696_v58 }
 0x535   : > { %v3698_v55 = vrot.slane %v3697_v32, 1 }
 0x537   : > { %v3699_v8 = vmax.f32 %v3697_v32, %v3698_v55 }
 0x539   : > { %v3700_v29 = vsub.f32 %v3679_v52, %v3699_v8  ;;  %v3701_v7 = vsub.f32 %v3683_v50, %v3699_v8  ;;  %v3702_v33 = vsub.f32 %v3690_v36, %v3699_v8 }
 0x53b   : > { %v3703_v0 = vmul.f32 1.442695, %v3700_v29  ;;  %v3705_v10 = vmul.f32 1.442695, %v3701_v7  ;;  %v3707_v14 = vmul.f32 1.442695, %v3702_v33 }
 0x53d   : > { %4430 = vpow2.f32 %v3703_v0 }
 0x53e   : > { %4432 = vpow2.f32 %v3705_v10 }
 0x53f   : > { %4434 = vpow2.f32 %v3707_v14 }
 0x547   : > { %v4431_v12 = vpop.eup %4430 }
 0x548   : > { %v4433_v2 = vpop.eup %4432 }
 0x549   : > { %v4435_v44 = vpop.eup %4434  ;;  %v3709_v60 = vadd.f32 %v4433_v2, %v4431_v12 }
 0x54a   : > { %v3710_v40 = vsel %vm3684_vm0, %v4435_v44, 0.0 }
 0x54b   : > { %v3711_v41 = vadd.f32 %v3710_v40, %v3709_v60 }
 0x54d   : > { %v3712_v37 = vrot.slane %v3711_v41, 4 }
 0x54f   : > { %v3713_v6 = vadd.f32 %v3712_v37, %v3711_v41 }
 0x551   : > { %v3714_v9 = vrot.slane %v3713_v6, 2 }
 0x553   : > { %v3715_v27 = vadd.f32 %v3714_v9, %v3713_v6 }
 0x555   : > { %v3716_v54 = vrot.slane %v3715_v27, 1 }
 0x557   : > { %v3717_v30 = vadd.f32 %v3716_v54, %v3715_v27 }
 0x559   : > { %4436 = vrcp.f32 %v3717_v30 }
 0x563   : > { %v4437_v18 = vpop.eup %4436 }
 0x564   : > { %v3719_v4 = vmul.f32 %v4437_v18, %v4431_v12  ;;  %v3720_v31 = vmul.f32 %v4437_v18, %v4433_v2  ;;  %v3721_v5 = vmul.f32 %v4437_v18, %v4435_v44 }
 0x566   : > { %3723 = vst.msk [vmem:[%s221_s29] sm:$0xff] %vm3722_vm2, %v3719_v4  ;;  %3724 = vst.msk [vmem:[%s221_s29 + $0x8] sm:$0xff] %vm3722_vm2, %v3720_v31 }
 0x567   : > { %3726 = vst.msk [vmem:[%s221_s29 + $0x10] sm:$0x3] %vm3725_vm3, %v3721_v5 }
 0x568 PF: > { %s15_s18 = sadd.s32 1, %s4444_s18  }
 0x569   : > { %p12_p4 = scmp.ge.s32.totalorder %s15_s18, 10  }
 0x56b   :  { %14 = sbr.rel (!%p12_p4) target bundleno = 1 (0x1), region = 117 }

</bundles_post_ra>
